<compile_context>
chip_gen: v7x
topology: tpu7x:2x2x1
jax: 0.10.0
libtpu: 0.0.40
codegen_flags: <defaults>
</compile_context>

<pallas_src>
import functools

import jax
import jax.numpy as jnp
import numpy as np
from jax.experimental import pallas as pl
from jax.experimental.pallas import tpu as pltpu

EPS = 1e-5


def _round_up(x, m):
    return ((x + m - 1) // m) * m


# ---------------------------------------------------------------------------
# Fused kernel: expand (1x1) -> depthwise 3x3 -> project (1x1), one batch item
# per grid step; the expanded hidden activation lives only in a VMEM scratch.
# ---------------------------------------------------------------------------
def _fused_kernel(*refs, stride, expand, use_res, Ho, Wo):
    i = 2
    x_ref, m_ref = refs[0], refs[1]
    if expand:
        we_ref, be_ref = refs[2], refs[3]
        i = 4
    wd_ref, bd_ref, wp_ref, bp_ref = refs[i:i + 4]
    i += 4
    r_ref = None
    if use_res:
        r_ref = refs[i]
        i += 1
    o_ref, hid_ref, dw_ref = refs[i], refs[i + 1], refs[i + 2]

    P, Hp, Wp, hd = hid_ref.shape

    # -- stage 1: 1x1 expand (BN folded into weights) + ReLU6, masked zero-padding --
    x2 = x_ref[0]                                            # (P*Hp*Wp, Cin) bf16
    if expand:
        h = jnp.dot(x2, we_ref[...], preferred_element_type=jnp.float32)
        h = jnp.clip(h + be_ref[...], 0.0, 6.0)              # (P*Hp*Wp, hd) f32
    else:
        h = x2.astype(jnp.float32)
    # expand(0) != 0, so the depthwise zero-padding is realised by masking the padded /
    # phase-tail positions back to zero after the expansion.
    h = (h * m_ref[...]).astype(hid_ref.dtype)
    for k in range(P * Hp):                                  # scatter rows into spatial scratch
        ph, a = k // Hp, k % Hp
        hid_ref[ph, a, :, :] = h[k * Wp:(k + 1) * Wp, :]

    # -- stage 2: 3x3 depthwise (stride 1|2), BN folded, ReLU6 --
    # Every tap is a contiguous slice of the (phase-split) hidden scratch.
    # TODO(synk): on v6e/v7x the per-tap multiply could stay in bf16 (f32 accumulate);
    #             kept in f32 so the same kernel path is exact on v5e's f32-only VPU.
    wd = wd_ref[...].astype(jnp.float32)                     # (9, hd)
    acc = None
    for di in range(3):
        for dj in range(3):
            if stride == 1:
                ph, a, b = 0, di, dj
            else:
                ph, a, b = (di % 2) * 2 + (dj % 2), di // 2, dj // 2
            tap = hid_ref[ph, a:a + Ho, b:b + Wo, :].astype(jnp.float32)
            tap = tap * wd[di * 3 + dj]
            acc = tap if acc is None else acc + tap          # init from first tap
    dw = jnp.clip(acc + bd_ref[0], 0.0, 6.0).astype(dw_ref.dtype)   # (Ho, Wo, hd)
    for o in range(Ho):                                      # lay out flat for the MXU
        dw_ref[o * Wo:(o + 1) * Wo, :] = dw[o]

    # -- stage 3: 1x1 projection (BN folded, no activation) + fused residual --
    y = jnp.dot(dw_ref[...], wp_ref[...], preferred_element_type=jnp.float32)
    y = y + bp_ref[...]
    if use_res:
        y = y + r_ref[0].astype(jnp.float32)
    o_ref[0] = y.astype(o_ref.dtype)


# ---------------------------------------------------------------------------
# Wrapper (NCHW in / NCHW out, like the PyTorch module)
# ---------------------------------------------------------------------------
def inverted_residual(p, x_nchw):
    stride, expand, use_res = p["stride"], p["expand"], p["use_res"]
    hd, oup = p["hd"], p["oup"]
    # bf16 BEFORE the layout transpose (halves the transpose's HBM bytes).
    x = jnp.transpose(x_nchw.astype(jnp.bfloat16), (0, 2, 3, 1))      # NCHW -> NHWC
    N, H, W, Cin = x.shape
    Ho, Wo = (H - 1) // stride + 1, (W - 1) // stride + 1

    # TODO(synk): the zero-pad / stride-2 phase split below still runs in XLA, but it now
    #             touches only the narrow (Cin-channel) input, not the 6x-wider hidden.
    xp = jnp.pad(x, ((0, 0), (1, 1), (1, 1), (0, 0)))
    if stride == 1:
        P, Hp, Wp = 1, H + 2, W + 2
        phases = xp[:, None]                                          # (N, 1, Hp, Wp, Cin)
    else:
        # 4 even/odd row/col phases of the padded input -> every stride-2 depthwise tap
        # becomes a contiguous slice inside the kernel (no strided VMEM access).
        P, Hp, Wp = 4, Ho + 1, Wo + 1
        phs = []
        for pr in range(2):
            for pc in range(2):
                ph = xp[:, pr::2, pc::2, :]
                ph = jnp.pad(ph, ((0, 0), (0, Hp - ph.shape[1]),
                                  (0, Wp - ph.shape[2]), (0, 0)))
                phs.append(ph)
        phases = jnp.stack(phs, axis=1)                               # (N, 4, Hp, Wp, Cin)
    M1 = P * Hp * Wp
    x_flat = phases.reshape(N, M1, Cin)

    # 0/1 validity mask (conv zero-padding + stride-2 phase tail), trace-time constant.
    mask = np.zeros((P, Hp, Wp), np.float32)
    for ph in range(P):
        pr, pc = (ph // 2, ph % 2) if stride == 2 else (0, 0)
        r = stride * np.arange(Hp) + pr
        c = stride * np.arange(Wp) + pc
        mask[ph] = np.outer((r >= 1) & (r <= H), (c >= 1) & (c <= W))
    mask = jnp.asarray(mask.reshape(M1, 1))

    in_specs = [pl.BlockSpec((1, M1, Cin), lambda n: (n, 0, 0)),
                pl.BlockSpec((M1, 1), lambda n: (0, 0))]
    args = [x_flat, mask]
    if expand:
        in_specs += [pl.BlockSpec((Cin, hd), lambda n: (0, 0)),
                     pl.BlockSpec((1, hd), lambda n: (0, 0))]
        args += [p["w_exp"], p["b_exp"]]
    in_specs += [pl.BlockSpec((9, hd), lambda n: (0, 0)),
                 pl.BlockSpec((1, hd), lambda n: (0, 0)),
                 pl.BlockSpec((hd, oup), lambda n: (0, 0)),
                 pl.BlockSpec((1, oup), lambda n: (0, 0))]
    args += [p["w_dw"], p["b_dw"], p["w_proj"], p["b_proj"]]
    if use_res:
        in_specs.append(pl.BlockSpec((1, H * W, oup), lambda n: (n, 0, 0)))
        args.append(x.reshape(N, H * W, Cin))

    Mo = Ho * Wo
    kernel = functools.partial(_fused_kernel, stride=stride, expand=expand,
                               use_res=use_res, Ho=Ho, Wo=Wo)
    # TODO(synk): for large feature maps, additionally block over output rows (1-row halo)
    #             and set vmem_limit_bytes so the hidden scratch respects v7x's 64 MiB
    #             VMEM; unnecessary at these shapes (< 1 MiB of VMEM per grid step).
    out = pl.pallas_call(
        kernel,
        out_shape=jax.ShapeDtypeStruct((N, Mo, oup), jnp.bfloat16),
        grid=(N,),
        in_specs=in_specs,
        out_specs=pl.BlockSpec((1, Mo, oup), lambda n: (n, 0, 0)),
        scratch_shapes=[pltpu.VMEM((P, Hp, Wp, hd), jnp.bfloat16),    # hidden activation
                        pltpu.VMEM((Mo, hd), jnp.bfloat16)],          # depthwise output
        compiler_params=pltpu.CompilerParams(dimension_semantics=("parallel",)),
    )(*args)
    out = out.reshape(N, Ho, Wo, oup)
    # TODO(synk): the projection output keeps oup (<128) lanes -> masked stores; it is the
    #             smallest tensor of the block so a 128-padded packed output slab was skipped.
    return jnp.transpose(out, (0, 3, 1, 2)).astype(jnp.float32)       # NHWC -> NCHW


# ---------------------------------------------------------------------------
# Parameters (deterministic init; eval-mode BN folded into weights + bias)
# ---------------------------------------------------------------------------
def _fold_bn(key, c):
    kg, kb, km, kv = jax.random.split(key, 4)
    gamma = 1.0 + 0.1 * jax.random.normal(kg, (c,), jnp.float32)
    beta = 0.1 * jax.random.normal(kb, (c,), jnp.float32)
    mean = 0.1 * jax.random.normal(km, (c,), jnp.float32)
    var = jnp.abs(1.0 + 0.1 * jax.random.normal(kv, (c,), jnp.float32))
    scale = gamma / jnp.sqrt(var + EPS)
    return scale, beta - mean * scale


def init_inverted_residual(key, inp, oup, stride, expand_ratio):
    # TODO(synk): training-mode BatchNorm batch statistics are not computed in-kernel;
    #             eval-mode running stats are folded into per-channel scale (into W) + bias.
    assert stride in (1, 2)
    hidden = int(round(inp * expand_ratio))
    expand = expand_ratio != 1
    hd = _round_up(hidden, 128) if expand else hidden     # lane-dense hidden channels
    padc = hd - hidden
    ks = jax.random.split(key, 6)
    p = {"stride": stride, "expand": expand, "oup": oup, "hd": hd,
         "use_res": (stride == 1 and inp == oup)}
    if expand:
        w = jax.random.normal(ks[0], (inp, hidden), jnp.float32) / np.sqrt(inp)
        s, b = _fold_bn(ks[1], hidden)
        p["w_exp"] = jnp.pad(w * s[None, :], ((0, 0), (0, padc))).astype(jnp.bfloat16)
        p["b_exp"] = jnp.pad(b, (0, padc)).reshape(1, hd)
    w = jax.random.normal(ks[2], (9, hidden), jnp.float32) / 3.0
    s, b = _fold_bn(ks[3], hidden)
    p["w_dw"] = jnp.pad(w * s[None, :], ((0, 0), (0, padc))).astype(jnp.bfloat16)
    p["b_dw"] = jnp.pad(b, (0, padc)).reshape(1, hd)
    w = jax.random.normal(ks[4], (hidden, oup), jnp.float32) / np.sqrt(hidden)
    s, b = _fold_bn(ks[5], oup)
    p["w_proj"] = jnp.pad(w * s[None, :], ((0, padc), (0, 0))).astype(jnp.bfloat16)
    p["b_proj"] = b.reshape(1, oup)
    return p


# ---------------------------------------------------------------------------
# Pure-JAX f32 reference using the exact same folded / padded (bf16) weights
# ---------------------------------------------------------------------------
def _reference_block(p, x_nchw):
    x = jnp.transpose(x_nchw.astype(jnp.bfloat16), (0, 2, 3, 1)).astype(jnp.float32)
    stride = p["stride"]
    if p["expand"]:
        h = jnp.einsum("nhwc,cd->nhwd", x, p["w_exp"].astype(jnp.float32)) + p["b_exp"][0]
        h = jnp.clip(h, 0.0, 6.0)
    else:
        h = x
    N, H, W, C = h.shape
    Ho, Wo = (H - 1) // stride + 1, (W - 1) // stride + 1
    hp = jnp.pad(h, ((0, 0), (1, 1), (1, 1), (0, 0)))
    wd = p["w_dw"].astype(jnp.float32)
    acc = jnp.zeros((N, Ho, Wo, C), jnp.float32)
    for di in range(3):
        for dj in range(3):
            win = hp[:, di:di + stride * (Ho - 1) + 1:stride,
                     dj:dj + stride * (Wo - 1) + 1:stride, :]
            acc = acc + win * wd[di * 3 + dj]
    dw = jnp.clip(acc + p["b_dw"][0], 0.0, 6.0)
    y = jnp.einsum("nhwc,cd->nhwd", dw, p["w_proj"].astype(jnp.float32)) + p["b_proj"][0]
    if p["use_res"]:
        y = y + x
    return jnp.transpose(y, (0, 3, 1, 2))


if __name__ == "__main__":
    key = jax.random.PRNGKey(0)
    kx, k1, k2, k3, k4 = jax.random.split(key, 5)

    # Small shapes consistent with the module: NCHW (batch=2, channels=16, 16x16).
    x = jax.random.normal(kx, (2, 16, 16, 16), jnp.float32)
    x_odd = x[:, :, :15, :15]          # odd spatial dims exercising the stride-2 tail pad

    configs = [
        ("expand+residual s1", k1, dict(inp=16, oup=16, stride=1, expand_ratio=6), x, (2, 16, 16, 16)),
        ("expand stride2",     k2, dict(inp=16, oup=24, stride=2, expand_ratio=6), x, (2, 24, 8, 8)),
        ("no-expand res s1",   k3, dict(inp=16, oup=16, stride=1, expand_ratio=1), x, (2, 16, 16, 16)),
        ("expand stride2 odd", k4, dict(inp=16, oup=24, stride=2, expand_ratio=6), x_odd, (2, 24, 8, 8)),
    ]
    for name, kp, cfg, xin, expected_shape in configs:
        p = init_inverted_residual(kp, **cfg)
        y = inverted_residual(p, xin)
        jax.block_until_ready(y)
        assert y.shape == expected_shape, (name, y.shape, expected_shape)
        y_ref = _reference_block(p, xin)
        err = float(jnp.max(jnp.abs(y - y_ref)))
        ref_mag = float(jnp.max(jnp.abs(y_ref)))
        # bf16 intermediate storage vs f32 reference -> mixed rel/abs tolerance
        assert err <= 0.03 * ref_mag + 0.05, (name, err, ref_mag)

    print("KERNEL_OK")
</pallas_src>

<mosaic_0001>
module attributes {stable_mosaic.version = 11 : i64} {
  func.func @_fused_kernel(%arg0: i32, %arg1: memref<1x324x16xbf16, #tpu.memory_space<vmem>>, %arg2: memref<324x1xf32, #tpu.memory_space<vmem>>, %arg3: memref<16x128xbf16, #tpu.memory_space<vmem>>, %arg4: memref<1x128xf32, #tpu.memory_space<vmem>>, %arg5: memref<9x128xbf16, #tpu.memory_space<vmem>>, %arg6: memref<1x128xf32, #tpu.memory_space<vmem>>, %arg7: memref<128x16xbf16, #tpu.memory_space<vmem>>, %arg8: memref<1x16xf32, #tpu.memory_space<vmem>>, %arg9: memref<1x256x16xbf16, #tpu.memory_space<vmem>>, %arg10: memref<1x256x16xbf16, #tpu.memory_space<vmem>>, %arg11: memref<1x18x18x128xbf16, #tpu.memory_space<vmem>>, %arg12: memref<256x128xbf16, #tpu.memory_space<vmem>>) attributes {dimension_semantics = [#tpu.dimension_semantics<parallel>], iteration_bounds = array<i64: 2>, scalar_prefetch = 0 : i64, scratch_operands = 2 : i64, tpu.core_type = #tpu.core_type<tc>, window_params = [{transform_indices = @transform_0, window_bounds = array<i64: 1, 324, 16>}, {pipeline_mode = #tpu.pipeline_mode<synchronous>, transform_indices = @transform_1, window_bounds = array<i64: 324, 1>}, {pipeline_mode = #tpu.pipeline_mode<synchronous>, transform_indices = @transform_2, window_bounds = array<i64: 16, 128>}, {pipeline_mode = #tpu.pipeline_mode<synchronous>, transform_indices = @transform_3, window_bounds = array<i64: 1, 128>}, {pipeline_mode = #tpu.pipeline_mode<synchronous>, transform_indices = @transform_4, window_bounds = array<i64: 9, 128>}, {pipeline_mode = #tpu.pipeline_mode<synchronous>, transform_indices = @transform_5, window_bounds = array<i64: 1, 128>}, {pipeline_mode = #tpu.pipeline_mode<synchronous>, transform_indices = @transform_6, window_bounds = array<i64: 128, 16>}, {pipeline_mode = #tpu.pipeline_mode<synchronous>, transform_indices = @transform_7, window_bounds = array<i64: 1, 16>}, {transform_indices = @transform_8, window_bounds = array<i64: 1, 256, 16>}, {transform_indices = @transform_9, window_bounds = array<i64: 1, 256, 16>}]} {
    %c0 = arith.constant 0 : index
    %c0_0 = arith.constant 0 : index
    %c0_1 = arith.constant 0 : index
    %0 = vector.load %arg1[%c0, %c0_0, %c0_1] : memref<1x324x16xbf16, #tpu.memory_space<vmem>>, vector<1x324x16xbf16>
    %1 = vector.shape_cast %0 : vector<1x324x16xbf16> to vector<324x16xbf16>
    %c0_2 = arith.constant 0 : index
    %c0_3 = arith.constant 0 : index
    %2 = vector.load %arg3[%c0_2, %c0_3] : memref<16x128xbf16, #tpu.memory_space<vmem>>, vector<16x128xbf16>
    %cst = arith.constant dense<0.000000e+00> : vector<324x128xf32>
    %3 = tpu.matmul %1, %2, %cst {dimension_numbers = #tpu.dot_dimension_numbers<[1], [0], [0], [1], [0, 0, 1, 1], [], []>} : vector<324x16xbf16>, vector<16x128xbf16>, vector<324x128xf32> -> vector<324x128xf32>
    %c0_4 = arith.constant 0 : index
    %c0_5 = arith.constant 0 : index
    %4 = vector.load %arg4[%c0_4, %c0_5] : memref<1x128xf32, #tpu.memory_space<vmem>>, vector<1x128xf32>
    %5 = vector.broadcast %4 : vector<1x128xf32> to vector<324x128xf32>
    %6 = arith.addf %3, %5 : vector<324x128xf32>
    %cst_6 = arith.constant 0.000000e+00 : f32
    %cst_7 = arith.constant 6.000000e+00 : f32
    %7 = vector.broadcast %cst_6 : f32 to vector<324x128xf32>
    %8 = arith.maximumf %7, %6 : vector<324x128xf32>
    %9 = vector.broadcast %cst_7 : f32 to vector<324x128xf32>
    %10 = arith.minimumf %9, %8 : vector<324x128xf32>
    %c0_8 = arith.constant 0 : index
    %c0_9 = arith.constant 0 : index
    %11 = vector.load %arg2[%c0_8, %c0_9] : memref<324x1xf32, #tpu.memory_space<vmem>>, vector<324x1xf32>
    %12 = vector.broadcast %11 : vector<324x1xf32> to vector<324x128xf32>
    %13 = arith.mulf %10, %12 : vector<324x128xf32>
    %14 = arith.truncf %13 : vector<324x128xf32> to vector<324x128xbf16>
    %15 = vector.extract_strided_slice %14 {offsets = [0, 0], sizes = [18, 128], strides = [1, 1]} : vector<324x128xbf16> to vector<18x128xbf16>
    %c0_10 = arith.constant 0 : index
    %c0_11 = arith.constant 0 : index
    %c0_12 = arith.constant 0 : index
    %c0_13 = arith.constant 0 : index
    %16 = vector.load %arg11[%c0_10, %c0_11, %c0_12, %c0_13] : memref<1x18x18x128xbf16, #tpu.memory_space<vmem>>, vector<1x1x18x128xbf16>
    %17 = vector.shape_cast %16 : vector<1x1x18x128xbf16> to vector<18x128xbf16>
    %18 = vector.shape_cast %15 : vector<18x128xbf16> to vector<1x1x18x128xbf16>
    tpu.vector_store %arg11[%c0_10, %c0_11, %c0_12, %c0_13], %18 {strides = array<i32>} : memref<1x18x18x128xbf16, #tpu.memory_space<vmem>>, vector<1x1x18x128xbf16>,
    %19 = vector.extract_strided_slice %14 {offsets = [18, 0], sizes = [18, 128], strides = [1, 1]} : vector<324x128xbf16> to vector<18x128xbf16>
    %c0_14 = arith.constant 0 : index
    %c1 = arith.constant 1 : index
    %c0_15 = arith.constant 0 : index
    %c0_16 = arith.constant 0 : index
    %20 = vector.load %arg11[%c0_14, %c1, %c0_15, %c0_16] : memref<1x18x18x128xbf16, #tpu.memory_space<vmem>>, vector<1x1x18x128xbf16>
    %21 = vector.shape_cast %20 : vector<1x1x18x128xbf16> to vector<18x128xbf16>
    %22 = vector.shape_cast %19 : vector<18x128xbf16> to vector<1x1x18x128xbf16>
    tpu.vector_store %arg11[%c0_14, %c1, %c0_15, %c0_16], %22 {strides = array<i32>} : memref<1x18x18x128xbf16, #tpu.memory_space<vmem>>, vector<1x1x18x128xbf16>,
    %23 = vector.extract_strided_slice %14 {offsets = [36, 0], sizes = [18, 128], strides = [1, 1]} : vector<324x128xbf16> to vector<18x128xbf16>
    %c0_17 = arith.constant 0 : index
    %c2 = arith.constant 2 : index
    %c0_18 = arith.constant 0 : index
    %c0_19 = arith.constant 0 : index
    %24 = vector.load %arg11[%c0_17, %c2, %c0_18, %c0_19] : memref<1x18x18x128xbf16, #tpu.memory_space<vmem>>, vector<1x1x18x128xbf16>
    %25 = vector.shape_cast %24 : vector<1x1x18x128xbf16> to vector<18x128xbf16>
    %26 = vector.shape_cast %23 : vector<18x128xbf16> to vector<1x1x18x128xbf16>
    tpu.vector_store %arg11[%c0_17, %c2, %c0_18, %c0_19], %26 {strides = array<i32>} : memref<1x18x18x128xbf16, #tpu.memory_space<vmem>>, vector<1x1x18x128xbf16>,
    %27 = vector.extract_strided_slice %14 {offsets = [54, 0], sizes = [18, 128], strides = [1, 1]} : vector<324x128xbf16> to vector<18x128xbf16>
    %c0_20 = arith.constant 0 : index
    %c3 = arith.constant 3 : index
    %c0_21 = arith.constant 0 : index
    %c0_22 = arith.constant 0 : index
    %28 = vector.load %arg11[%c0_20, %c3, %c0_21, %c0_22] : memref<1x18x18x128xbf16, #tpu.memory_space<vmem>>, vector<1x1x18x128xbf16>
    %29 = vector.shape_cast %28 : vector<1x1x18x128xbf16> to vector<18x128xbf16>
    %30 = vector.shape_cast %27 : vector<18x128xbf16> to vector<1x1x18x128xbf16>
    tpu.vector_store %arg11[%c0_20, %c3, %c0_21, %c0_22], %30 {strides = array<i32>} : memref<1x18x18x128xbf16, #tpu.memory_space<vmem>>, vector<1x1x18x128xbf16>,
    %31 = vector.extract_strided_slice %14 {offsets = [72, 0], sizes = [18, 128], strides = [1, 1]} : vector<324x128xbf16> to vector<18x128xbf16>
    %c0_23 = arith.constant 0 : index
    %c4 = arith.constant 4 : index
    %c0_24 = arith.constant 0 : index
    %c0_25 = arith.constant 0 : index
    %32 = vector.load %arg11[%c0_23, %c4, %c0_24, %c0_25] : memref<1x18x18x128xbf16, #tpu.memory_space<vmem>>, vector<1x1x18x128xbf16>
    %33 = vector.shape_cast %32 : vector<1x1x18x128xbf16> to vector<18x128xbf16>
    %34 = vector.shape_cast %31 : vector<18x128xbf16> to vector<1x1x18x128xbf16>
    tpu.vector_store %arg11[%c0_23, %c4, %c0_24, %c0_25], %34 {strides = array<i32>} : memref<1x18x18x128xbf16, #tpu.memory_space<vmem>>, vector<1x1x18x128xbf16>,
    %35 = vector.extract_strided_slice %14 {offsets = [90, 0], sizes = [18, 128], strides = [1, 1]} : vector<324x128xbf16> to vector<18x128xbf16>
    %c0_26 = arith.constant 0 : index
    %c5 = arith.constant 5 : index
    %c0_27 = arith.constant 0 : index
    %c0_28 = arith.constant 0 : index
    %36 = vector.load %arg11[%c0_26, %c5, %c0_27, %c0_28] : memref<1x18x18x128xbf16, #tpu.memory_space<vmem>>, vector<1x1x18x128xbf16>
    %37 = vector.shape_cast %36 : vector<1x1x18x128xbf16> to vector<18x128xbf16>
    %38 = vector.shape_cast %35 : vector<18x128xbf16> to vector<1x1x18x128xbf16>
    tpu.vector_store %arg11[%c0_26, %c5, %c0_27, %c0_28], %38 {strides = array<i32>} : memref<1x18x18x128xbf16, #tpu.memory_space<vmem>>, vector<1x1x18x128xbf16>,
    %39 = vector.extract_strided_slice %14 {offsets = [108, 0], sizes = [18, 128], strides = [1, 1]} : vector<324x128xbf16> to vector<18x128xbf16>
    %c0_29 = arith.constant 0 : index
    %c6 = arith.constant 6 : index
    %c0_30 = arith.constant 0 : index
    %c0_31 = arith.constant 0 : index
    %40 = vector.load %arg11[%c0_29, %c6, %c0_30, %c0_31] : memref<1x18x18x128xbf16, #tpu.memory_space<vmem>>, vector<1x1x18x128xbf16>
    %41 = vector.shape_cast %40 : vector<1x1x18x128xbf16> to vector<18x128xbf16>
    %42 = vector.shape_cast %39 : vector<18x128xbf16> to vector<1x1x18x128xbf16>
    tpu.vector_store %arg11[%c0_29, %c6, %c0_30, %c0_31], %42 {strides = array<i32>} : memref<1x18x18x128xbf16, #tpu.memory_space<vmem>>, vector<1x1x18x128xbf16>,
    %43 = vector.extract_strided_slice %14 {offsets = [126, 0], sizes = [18, 128], strides = [1, 1]} : vector<324x128xbf16> to vector<18x128xbf16>
    %c0_32 = arith.constant 0 : index
    %c7 = arith.constant 7 : index
    %c0_33 = arith.constant 0 : index
    %c0_34 = arith.constant 0 : index
    %44 = vector.load %arg11[%c0_32, %c7, %c0_33, %c0_34] : memref<1x18x18x128xbf16, #tpu.memory_space<vmem>>, vector<1x1x18x128xbf16>
    %45 = vector.shape_cast %44 : vector<1x1x18x128xbf16> to vector<18x128xbf16>
    %46 = vector.shape_cast %43 : vector<18x128xbf16> to vector<1x1x18x128xbf16>
    tpu.vector_store %arg11[%c0_32, %c7, %c0_33, %c0_34], %46 {strides = array<i32>} : memref<1x18x18x128xbf16, #tpu.memory_space<vmem>>, vector<1x1x18x128xbf16>,
    %47 = vector.extract_strided_slice %14 {offsets = [144, 0], sizes = [18, 128], strides = [1, 1]} : vector<324x128xbf16> to vector<18x128xbf16>
    %c0_35 = arith.constant 0 : index
    %c8 = arith.constant 8 : index
    %c0_36 = arith.constant 0 : index
    %c0_37 = arith.constant 0 : index
    %48 = vector.load %arg11[%c0_35, %c8, %c0_36, %c0_37] : memref<1x18x18x128xbf16, #tpu.memory_space<vmem>>, vector<1x1x18x128xbf16>
    %49 = vector.shape_cast %48 : vector<1x1x18x128xbf16> to vector<18x128xbf16>
    %50 = vector.shape_cast %47 : vector<18x128xbf16> to vector<1x1x18x128xbf16>
    tpu.vector_store %arg11[%c0_35, %c8, %c0_36, %c0_37], %50 {strides = array<i32>} : memref<1x18x18x128xbf16, #tpu.memory_space<vmem>>, vector<1x1x18x128xbf16>,
    %51 = vector.extract_strided_slice %14 {offsets = [162, 0], sizes = [18, 128], strides = [1, 1]} : vector<324x128xbf16> to vector<18x128xbf16>
    %c0_38 = arith.constant 0 : index
    %c9 = arith.constant 9 : index
    %c0_39 = arith.constant 0 : index
    %c0_40 = arith.constant 0 : index
    %52 = vector.load %arg11[%c0_38, %c9, %c0_39, %c0_40] : memref<1x18x18x128xbf16, #tpu.memory_space<vmem>>, vector<1x1x18x128xbf16>
    %53 = vector.shape_cast %52 : vector<1x1x18x128xbf16> to vector<18x128xbf16>
    %54 = vector.shape_cast %51 : vector<18x128xbf16> to vector<1x1x18x128xbf16>
    tpu.vector_store %arg11[%c0_38, %c9, %c0_39, %c0_40], %54 {strides = array<i32>} : memref<1x18x18x128xbf16, #tpu.memory_space<vmem>>, vector<1x1x18x128xbf16>,
    %55 = vector.extract_strided_slice %14 {offsets = [180, 0], sizes = [18, 128], strides = [1, 1]} : vector<324x128xbf16> to vector<18x128xbf16>
    %c0_41 = arith.constant 0 : index
    %c10 = arith.constant 10 : index
    %c0_42 = arith.constant 0 : index
    %c0_43 = arith.constant 0 : index
    %56 = vector.load %arg11[%c0_41, %c10, %c0_42, %c0_43] : memref<1x18x18x128xbf16, #tpu.memory_space<vmem>>, vector<1x1x18x128xbf16>
    %57 = vector.shape_cast %56 : vector<1x1x18x128xbf16> to vector<18x128xbf16>
    %58 = vector.shape_cast %55 : vector<18x128xbf16> to vector<1x1x18x128xbf16>
    tpu.vector_store %arg11[%c0_41, %c10, %c0_42, %c0_43], %58 {strides = array<i32>} : memref<1x18x18x128xbf16, #tpu.memory_space<vmem>>, vector<1x1x18x128xbf16>,
    %59 = vector.extract_strided_slice %14 {offsets = [198, 0], sizes = [18, 128], strides = [1, 1]} : vector<324x128xbf16> to vector<18x128xbf16>
    %c0_44 = arith.constant 0 : index
    %c11 = arith.constant 11 : index
    %c0_45 = arith.constant 0 : index
    %c0_46 = arith.constant 0 : index
    %60 = vector.load %arg11[%c0_44, %c11, %c0_45, %c0_46] : memref<1x18x18x128xbf16, #tpu.memory_space<vmem>>, vector<1x1x18x128xbf16>
    %61 = vector.shape_cast %60 : vector<1x1x18x128xbf16> to vector<18x128xbf16>
    %62 = vector.shape_cast %59 : vector<18x128xbf16> to vector<1x1x18x128xbf16>
    tpu.vector_store %arg11[%c0_44, %c11, %c0_45, %c0_46], %62 {strides = array<i32>} : memref<1x18x18x128xbf16, #tpu.memory_space<vmem>>, vector<1x1x18x128xbf16>,
    %63 = vector.extract_strided_slice %14 {offsets = [216, 0], sizes = [18, 128], strides = [1, 1]} : vector<324x128xbf16> to vector<18x128xbf16>
    %c0_47 = arith.constant 0 : index
    %c12 = arith.constant 12 : index
    %c0_48 = arith.constant 0 : index
    %c0_49 = arith.constant 0 : index
    %64 = vector.load %arg11[%c0_47, %c12, %c0_48, %c0_49] : memref<1x18x18x128xbf16, #tpu.memory_space<vmem>>, vector<1x1x18x128xbf16>
    %65 = vector.shape_cast %64 : vector<1x1x18x128xbf16> to vector<18x128xbf16>
    %66 = vector.shape_cast %63 : vector<18x128xbf16> to vector<1x1x18x128xbf16>
    tpu.vector_store %arg11[%c0_47, %c12, %c0_48, %c0_49], %66 {strides = array<i32>} : memref<1x18x18x128xbf16, #tpu.memory_space<vmem>>, vector<1x1x18x128xbf16>,
    %67 = vector.extract_strided_slice %14 {offsets = [234, 0], sizes = [18, 128], strides = [1, 1]} : vector<324x128xbf16> to vector<18x128xbf16>
    %c0_50 = arith.constant 0 : index
    %c13 = arith.constant 13 : index
    %c0_51 = arith.constant 0 : index
    %c0_52 = arith.constant 0 : index
    %68 = vector.load %arg11[%c0_50, %c13, %c0_51, %c0_52] : memref<1x18x18x128xbf16, #tpu.memory_space<vmem>>, vector<1x1x18x128xbf16>
    %69 = vector.shape_cast %68 : vector<1x1x18x128xbf16> to vector<18x128xbf16>
    %70 = vector.shape_cast %67 : vector<18x128xbf16> to vector<1x1x18x128xbf16>
    tpu.vector_store %arg11[%c0_50, %c13, %c0_51, %c0_52], %70 {strides = array<i32>} : memref<1x18x18x128xbf16, #tpu.memory_space<vmem>>, vector<1x1x18x128xbf16>,
    %71 = vector.extract_strided_slice %14 {offsets = [252, 0], sizes = [18, 128], strides = [1, 1]} : vector<324x128xbf16> to vector<18x128xbf16>
    %c0_53 = arith.constant 0 : index
    %c14 = arith.constant 14 : index
    %c0_54 = arith.constant 0 : index
    %c0_55 = arith.constant 0 : index
    %72 = vector.load %arg11[%c0_53, %c14, %c0_54, %c0_55] : memref<1x18x18x128xbf16, #tpu.memory_space<vmem>>, vector<1x1x18x128xbf16>
    %73 = vector.shape_cast %72 : vector<1x1x18x128xbf16> to vector<18x128xbf16>
    %74 = vector.shape_cast %71 : vector<18x128xbf16> to vector<1x1x18x128xbf16>
    tpu.vector_store %arg11[%c0_53, %c14, %c0_54, %c0_55], %74 {strides = array<i32>} : memref<1x18x18x128xbf16, #tpu.memory_space<vmem>>, vector<1x1x18x128xbf16>,
    %75 = vector.extract_strided_slice %14 {offsets = [270, 0], sizes = [18, 128], strides = [1, 1]} : vector<324x128xbf16> to vector<18x128xbf16>
    %c0_56 = arith.constant 0 : index
    %c15 = arith.constant 15 : index
    %c0_57 = arith.constant 0 : index
    %c0_58 = arith.constant 0 : index
    %76 = vector.load %arg11[%c0_56, %c15, %c0_57, %c0_58] : memref<1x18x18x128xbf16, #tpu.memory_space<vmem>>, vector<1x1x18x128xbf16>
    %77 = vector.shape_cast %76 : vector<1x1x18x128xbf16> to vector<18x128xbf16>
    %78 = vector.shape_cast %75 : vector<18x128xbf16> to vector<1x1x18x128xbf16>
    tpu.vector_store %arg11[%c0_56, %c15, %c0_57, %c0_58], %78 {strides = array<i32>} : memref<1x18x18x128xbf16, #tpu.memory_space<vmem>>, vector<1x1x18x128xbf16>,
    %79 = vector.extract_strided_slice %14 {offsets = [288, 0], sizes = [18, 128], strides = [1, 1]} : vector<324x128xbf16> to vector<18x128xbf16>
    %c0_59 = arith.constant 0 : index
    %c16 = arith.constant 16 : index
    %c0_60 = arith.constant 0 : index
    %c0_61 = arith.constant 0 : index
    %80 = vector.load %arg11[%c0_59, %c16, %c0_60, %c0_61] : memref<1x18x18x128xbf16, #tpu.memory_space<vmem>>, vector<1x1x18x128xbf16>
    %81 = vector.shape_cast %80 : vector<1x1x18x128xbf16> to vector<18x128xbf16>
    %82 = vector.shape_cast %79 : vector<18x128xbf16> to vector<1x1x18x128xbf16>
    tpu.vector_store %arg11[%c0_59, %c16, %c0_60, %c0_61], %82 {strides = array<i32>} : memref<1x18x18x128xbf16, #tpu.memory_space<vmem>>, vector<1x1x18x128xbf16>,
    %83 = vector.extract_strided_slice %14 {offsets = [306, 0], sizes = [18, 128], strides = [1, 1]} : vector<324x128xbf16> to vector<18x128xbf16>
    %c0_62 = arith.constant 0 : index
    %c17 = arith.constant 17 : index
    %c0_63 = arith.constant 0 : index
    %c0_64 = arith.constant 0 : index
    %84 = vector.load %arg11[%c0_62, %c17, %c0_63, %c0_64] : memref<1x18x18x128xbf16, #tpu.memory_space<vmem>>, vector<1x1x18x128xbf16>
    %85 = vector.shape_cast %84 : vector<1x1x18x128xbf16> to vector<18x128xbf16>
    %86 = vector.shape_cast %83 : vector<18x128xbf16> to vector<1x1x18x128xbf16>
    tpu.vector_store %arg11[%c0_62, %c17, %c0_63, %c0_64], %86 {strides = array<i32>} : memref<1x18x18x128xbf16, #tpu.memory_space<vmem>>, vector<1x1x18x128xbf16>,
    %c0_65 = arith.constant 0 : index
    %c0_66 = arith.constant 0 : index
    %87 = vector.load %arg5[%c0_65, %c0_66] : memref<9x128xbf16, #tpu.memory_space<vmem>>, vector<9x128xbf16>
    %88 = arith.extf %87 : vector<9x128xbf16> to vector<9x128xf32>
    %c0_67 = arith.constant 0 : index
    %c0_68 = arith.constant 0 : index
    %c0_69 = arith.constant 0 : index
    %c0_70 = arith.constant 0 : index
    %89 = vector.load %arg11[%c0_67, %c0_68, %c0_69, %c0_70] : memref<1x18x18x128xbf16, #tpu.memory_space<vmem>>, vector<1x16x16x128xbf16>
    %90 = vector.shape_cast %89 : vector<1x16x16x128xbf16> to vector<16x16x128xbf16>
    %91 = arith.extf %90 : vector<16x16x128xbf16> to vector<16x16x128xf32>
    %92 = vector.extract_strided_slice %88 {offsets = [0, 0], sizes = [1, 128], strides = [1, 1]} : vector<9x128xf32> to vector<1x128xf32>
    %93 = vector.shape_cast %92 : vector<1x128xf32> to vector<128xf32>
    %94 = vector.shape_cast %93 : vector<128xf32> to vector<1x1x128xf32>
    %95 = vector.broadcast %94 : vector<1x1x128xf32> to vector<16x16x128xf32>
    %96 = arith.mulf %91, %95 : vector<16x16x128xf32>
    %c0_71 = arith.constant 0 : index
    %c0_72 = arith.constant 0 : index
    %c1_73 = arith.constant 1 : index
    %c0_74 = arith.constant 0 : index
    %97 = vector.load %arg11[%c0_71, %c0_72, %c1_73, %c0_74] : memref<1x18x18x128xbf16, #tpu.memory_space<vmem>>, vector<1x16x16x128xbf16>
    %98 = vector.shape_cast %97 : vector<1x16x16x128xbf16> to vector<16x16x128xbf16>
    %99 = arith.extf %98 : vector<16x16x128xbf16> to vector<16x16x128xf32>
    %100 = vector.extract_strided_slice %88 {offsets = [1, 0], sizes = [1, 128], strides = [1, 1]} : vector<9x128xf32> to vector<1x128xf32>
    %101 = vector.shape_cast %100 : vector<1x128xf32> to vector<128xf32>
    %102 = vector.shape_cast %101 : vector<128xf32> to vector<1x1x128xf32>
    %103 = vector.broadcast %102 : vector<1x1x128xf32> to vector<16x16x128xf32>
    %104 = arith.mulf %99, %103 : vector<16x16x128xf32>
    %105 = arith.addf %96, %104 : vector<16x16x128xf32>
    %c0_75 = arith.constant 0 : index
    %c0_76 = arith.constant 0 : index
    %c2_77 = arith.constant 2 : index
    %c0_78 = arith.constant 0 : index
    %106 = vector.load %arg11[%c0_75, %c0_76, %c2_77, %c0_78] : memref<1x18x18x128xbf16, #tpu.memory_space<vmem>>, vector<1x16x16x128xbf16>
    %107 = vector.shape_cast %106 : vector<1x16x16x128xbf16> to vector<16x16x128xbf16>
    %108 = arith.extf %107 : vector<16x16x128xbf16> to vector<16x16x128xf32>
    %109 = vector.extract_strided_slice %88 {offsets = [2, 0], sizes = [1, 128], strides = [1, 1]} : vector<9x128xf32> to vector<1x128xf32>
    %110 = vector.shape_cast %109 : vector<1x128xf32> to vector<128xf32>
    %111 = vector.shape_cast %110 : vector<128xf32> to vector<1x1x128xf32>
    %112 = vector.broadcast %111 : vector<1x1x128xf32> to vector<16x16x128xf32>
    %113 = arith.mulf %108, %112 : vector<16x16x128xf32>
    %114 = arith.addf %105, %113 : vector<16x16x128xf32>
    %c0_79 = arith.constant 0 : index
    %c1_80 = arith.constant 1 : index
    %c0_81 = arith.constant 0 : index
    %c0_82 = arith.constant 0 : index
    %115 = vector.load %arg11[%c0_79, %c1_80, %c0_81, %c0_82] : memref<1x18x18x128xbf16, #tpu.memory_space<vmem>>, vector<1x16x16x128xbf16>
    %116 = vector.shape_cast %115 : vector<1x16x16x128xbf16> to vector<16x16x128xbf16>
    %117 = arith.extf %116 : vector<16x16x128xbf16> to vector<16x16x128xf32>
    %118 = vector.extract_strided_slice %88 {offsets = [3, 0], sizes = [1, 128], strides = [1, 1]} : vector<9x128xf32> to vector<1x128xf32>
    %119 = vector.shape_cast %118 : vector<1x128xf32> to vector<128xf32>
    %120 = vector.shape_cast %119 : vector<128xf32> to vector<1x1x128xf32>
    %121 = vector.broadcast %120 : vector<1x1x128xf32> to vector<16x16x128xf32>
    %122 = arith.mulf %117, %121 : vector<16x16x128xf32>
    %123 = arith.addf %114, %122 : vector<16x16x128xf32>
    %c0_83 = arith.constant 0 : index
    %c1_84 = arith.constant 1 : index
    %c1_85 = arith.constant 1 : index
    %c0_86 = arith.constant 0 : index
    %124 = vector.load %arg11[%c0_83, %c1_84, %c1_85, %c0_86] : memref<1x18x18x128xbf16, #tpu.memory_space<vmem>>, vector<1x16x16x128xbf16>
    %125 = vector.shape_cast %124 : vector<1x16x16x128xbf16> to vector<16x16x128xbf16>
    %126 = arith.extf %125 : vector<16x16x128xbf16> to vector<16x16x128xf32>
    %127 = vector.extract_strided_slice %88 {offsets = [4, 0], sizes = [1, 128], strides = [1, 1]} : vector<9x128xf32> to vector<1x128xf32>
    %128 = vector.shape_cast %127 : vector<1x128xf32> to vector<128xf32>
    %129 = vector.shape_cast %128 : vector<128xf32> to vector<1x1x128xf32>
    %130 = vector.broadcast %129 : vector<1x1x128xf32> to vector<16x16x128xf32>
    %131 = arith.mulf %126, %130 : vector<16x16x128xf32>
    %132 = arith.addf %123, %131 : vector<16x16x128xf32>
    %c0_87 = arith.constant 0 : index
    %c1_88 = arith.constant 1 : index
    %c2_89 = arith.constant 2 : index
    %c0_90 = arith.constant 0 : index
    %133 = vector.load %arg11[%c0_87, %c1_88, %c2_89, %c0_90] : memref<1x18x18x128xbf16, #tpu.memory_space<vmem>>, vector<1x16x16x128xbf16>
    %134 = vector.shape_cast %133 : vector<1x16x16x128xbf16> to vector<16x16x128xbf16>
    %135 = arith.extf %134 : vector<16x16x128xbf16> to vector<16x16x128xf32>
    %136 = vector.extract_strided_slice %88 {offsets = [5, 0], sizes = [1, 128], strides = [1, 1]} : vector<9x128xf32> to vector<1x128xf32>
    %137 = vector.shape_cast %136 : vector<1x128xf32> to vector<128xf32>
    %138 = vector.shape_cast %137 : vector<128xf32> to vector<1x1x128xf32>
    %139 = vector.broadcast %138 : vector<1x1x128xf32> to vector<16x16x128xf32>
    %140 = arith.mulf %135, %139 : vector<16x16x128xf32>
    %141 = arith.addf %132, %140 : vector<16x16x128xf32>
    %c0_91 = arith.constant 0 : index
    %c2_92 = arith.constant 2 : index
    %c0_93 = arith.constant 0 : index
    %c0_94 = arith.constant 0 : index
    %142 = vector.load %arg11[%c0_91, %c2_92, %c0_93, %c0_94] : memref<1x18x18x128xbf16, #tpu.memory_space<vmem>>, vector<1x16x16x128xbf16>
    %143 = vector.shape_cast %142 : vector<1x16x16x128xbf16> to vector<16x16x128xbf16>
    %144 = arith.extf %143 : vector<16x16x128xbf16> to vector<16x16x128xf32>
    %145 = vector.extract_strided_slice %88 {offsets = [6, 0], sizes = [1, 128], strides = [1, 1]} : vector<9x128xf32> to vector<1x128xf32>
    %146 = vector.shape_cast %145 : vector<1x128xf32> to vector<128xf32>
    %147 = vector.shape_cast %146 : vector<128xf32> to vector<1x1x128xf32>
    %148 = vector.broadcast %147 : vector<1x1x128xf32> to vector<16x16x128xf32>
    %149 = arith.mulf %144, %148 : vector<16x16x128xf32>
    %150 = arith.addf %141, %149 : vector<16x16x128xf32>
    %c0_95 = arith.constant 0 : index
    %c2_96 = arith.constant 2 : index
    %c1_97 = arith.constant 1 : index
    %c0_98 = arith.constant 0 : index
    %151 = vector.load %arg11[%c0_95, %c2_96, %c1_97, %c0_98] : memref<1x18x18x128xbf16, #tpu.memory_space<vmem>>, vector<1x16x16x128xbf16>
    %152 = vector.shape_cast %151 : vector<1x16x16x128xbf16> to vector<16x16x128xbf16>
    %153 = arith.extf %152 : vector<16x16x128xbf16> to vector<16x16x128xf32>
    %154 = vector.extract_strided_slice %88 {offsets = [7, 0], sizes = [1, 128], strides = [1, 1]} : vector<9x128xf32> to vector<1x128xf32>
    %155 = vector.shape_cast %154 : vector<1x128xf32> to vector<128xf32>
    %156 = vector.shape_cast %155 : vector<128xf32> to vector<1x1x128xf32>
    %157 = vector.broadcast %156 : vector<1x1x128xf32> to vector<16x16x128xf32>
    %158 = arith.mulf %153, %157 : vector<16x16x128xf32>
    %159 = arith.addf %150, %158 : vector<16x16x128xf32>
    %c0_99 = arith.constant 0 : index
    %c2_100 = arith.constant 2 : index
    %c2_101 = arith.constant 2 : index
    %c0_102 = arith.constant 0 : index
    %160 = vector.load %arg11[%c0_99, %c2_100, %c2_101, %c0_102] : memref<1x18x18x128xbf16, #tpu.memory_space<vmem>>, vector<1x16x16x128xbf16>
    %161 = vector.shape_cast %160 : vector<1x16x16x128xbf16> to vector<16x16x128xbf16>
    %162 = arith.extf %161 : vector<16x16x128xbf16> to vector<16x16x128xf32>
    %163 = vector.extract_strided_slice %88 {offsets = [8, 0], sizes = [1, 128], strides = [1, 1]} : vector<9x128xf32> to vector<1x128xf32>
    %164 = vector.shape_cast %163 : vector<1x128xf32> to vector<128xf32>
    %165 = vector.shape_cast %164 : vector<128xf32> to vector<1x1x128xf32>
    %166 = vector.broadcast %165 : vector<1x1x128xf32> to vector<16x16x128xf32>
    %167 = arith.mulf %162, %166 : vector<16x16x128xf32>
    %168 = arith.addf %159, %167 : vector<16x16x128xf32>
    %c0_103 = arith.constant 0 : index
    %c0_104 = arith.constant 0 : index
    %169 = vector.load %arg6[%c0_103, %c0_104] : memref<1x128xf32, #tpu.memory_space<vmem>>, vector<1x128xf32>
    %170 = vector.shape_cast %169 : vector<1x128xf32> to vector<128xf32>
    %171 = vector.shape_cast %170 : vector<128xf32> to vector<1x1x128xf32>
    %172 = vector.broadcast %171 : vector<1x1x128xf32> to vector<16x16x128xf32>
    %173 = arith.addf %168, %172 : vector<16x16x128xf32>
    %cst_105 = arith.constant 0.000000e+00 : f32
    %cst_106 = arith.constant 6.000000e+00 : f32
    %174 = vector.broadcast %cst_105 : f32 to vector<16x16x128xf32>
    %175 = arith.maximumf %174, %173 : vector<16x16x128xf32>
    %176 = vector.broadcast %cst_106 : f32 to vector<16x16x128xf32>
    %177 = arith.minimumf %176, %175 : vector<16x16x128xf32>
    %178 = arith.truncf %177 : vector<16x16x128xf32> to vector<16x16x128xbf16>
    %179 = vector.extract_strided_slice %178 {offsets = [0, 0, 0], sizes = [1, 16, 128], strides = [1, 1, 1]} : vector<16x16x128xbf16> to vector<1x16x128xbf16>
    %180 = vector.shape_cast %179 : vector<1x16x128xbf16> to vector<16x128xbf16>
    %c0_107 = arith.constant 0 : index
    %c0_108 = arith.constant 0 : index
    %181 = vector.load %arg12[%c0_107, %c0_108] : memref<256x128xbf16, #tpu.memory_space<vmem>>, vector<16x128xbf16>
    tpu.vector_store %arg12[%c0_107, %c0_108], %180 {strides = array<i32>} : memref<256x128xbf16, #tpu.memory_space<vmem>>, vector<16x128xbf16>,
    %182 = vector.extract_strided_slice %178 {offsets = [1, 0, 0], sizes = [1, 16, 128], strides = [1, 1, 1]} : vector<16x16x128xbf16> to vector<1x16x128xbf16>
    %183 = vector.shape_cast %182 : vector<1x16x128xbf16> to vector<16x128xbf16>
    %c16_109 = arith.constant 16 : index
    %c0_110 = arith.constant 0 : index
    %184 = vector.load %arg12[%c16_109, %c0_110] : memref<256x128xbf16, #tpu.memory_space<vmem>>, vector<16x128xbf16>
    tpu.vector_store %arg12[%c16_109, %c0_110], %183 {strides = array<i32>} : memref<256x128xbf16, #tpu.memory_space<vmem>>, vector<16x128xbf16>,
    %185 = vector.extract_strided_slice %178 {offsets = [2, 0, 0], sizes = [1, 16, 128], strides = [1, 1, 1]} : vector<16x16x128xbf16> to vector<1x16x128xbf16>
    %186 = vector.shape_cast %185 : vector<1x16x128xbf16> to vector<16x128xbf16>
    %c32 = arith.constant 32 : index
    %c0_111 = arith.constant 0 : index
    %187 = vector.load %arg12[%c32, %c0_111] : memref<256x128xbf16, #tpu.memory_space<vmem>>, vector<16x128xbf16>
    tpu.vector_store %arg12[%c32, %c0_111], %186 {strides = array<i32>} : memref<256x128xbf16, #tpu.memory_space<vmem>>, vector<16x128xbf16>,
    %188 = vector.extract_strided_slice %178 {offsets = [3, 0, 0], sizes = [1, 16, 128], strides = [1, 1, 1]} : vector<16x16x128xbf16> to vector<1x16x128xbf16>
    %189 = vector.shape_cast %188 : vector<1x16x128xbf16> to vector<16x128xbf16>
    %c48 = arith.constant 48 : index
    %c0_112 = arith.constant 0 : index
    %190 = vector.load %arg12[%c48, %c0_112] : memref<256x128xbf16, #tpu.memory_space<vmem>>, vector<16x128xbf16>
    tpu.vector_store %arg12[%c48, %c0_112], %189 {strides = array<i32>} : memref<256x128xbf16, #tpu.memory_space<vmem>>, vector<16x128xbf16>,
    %191 = vector.extract_strided_slice %178 {offsets = [4, 0, 0], sizes = [1, 16, 128], strides = [1, 1, 1]} : vector<16x16x128xbf16> to vector<1x16x128xbf16>
    %192 = vector.shape_cast %191 : vector<1x16x128xbf16> to vector<16x128xbf16>
    %c64 = arith.constant 64 : index
    %c0_113 = arith.constant 0 : index
    %193 = vector.load %arg12[%c64, %c0_113] : memref<256x128xbf16, #tpu.memory_space<vmem>>, vector<16x128xbf16>
    tpu.vector_store %arg12[%c64, %c0_113], %192 {strides = array<i32>} : memref<256x128xbf16, #tpu.memory_space<vmem>>, vector<16x128xbf16>,
    %194 = vector.extract_strided_slice %178 {offsets = [5, 0, 0], sizes = [1, 16, 128], strides = [1, 1, 1]} : vector<16x16x128xbf16> to vector<1x16x128xbf16>
    %195 = vector.shape_cast %194 : vector<1x16x128xbf16> to vector<16x128xbf16>
    %c80 = arith.constant 80 : index
    %c0_114 = arith.constant 0 : index
    %196 = vector.load %arg12[%c80, %c0_114] : memref<256x128xbf16, #tpu.memory_space<vmem>>, vector<16x128xbf16>
    tpu.vector_store %arg12[%c80, %c0_114], %195 {strides = array<i32>} : memref<256x128xbf16, #tpu.memory_space<vmem>>, vector<16x128xbf16>,
    %197 = vector.extract_strided_slice %178 {offsets = [6, 0, 0], sizes = [1, 16, 128], strides = [1, 1, 1]} : vector<16x16x128xbf16> to vector<1x16x128xbf16>
    %198 = vector.shape_cast %197 : vector<1x16x128xbf16> to vector<16x128xbf16>
    %c96 = arith.constant 96 : index
    %c0_115 = arith.constant 0 : index
    %199 = vector.load %arg12[%c96, %c0_115] : memref<256x128xbf16, #tpu.memory_space<vmem>>, vector<16x128xbf16>
    tpu.vector_store %arg12[%c96, %c0_115], %198 {strides = array<i32>} : memref<256x128xbf16, #tpu.memory_space<vmem>>, vector<16x128xbf16>,
    %200 = vector.extract_strided_slice %178 {offsets = [7, 0, 0], sizes = [1, 16, 128], strides = [1, 1, 1]} : vector<16x16x128xbf16> to vector<1x16x128xbf16>
    %201 = vector.shape_cast %200 : vector<1x16x128xbf16> to vector<16x128xbf16>
    %c112 = arith.constant 112 : index
    %c0_116 = arith.constant 0 : index
    %202 = vector.load %arg12[%c112, %c0_116] : memref<256x128xbf16, #tpu.memory_space<vmem>>, vector<16x128xbf16>
    tpu.vector_store %arg12[%c112, %c0_116], %201 {strides = array<i32>} : memref<256x128xbf16, #tpu.memory_space<vmem>>, vector<16x128xbf16>,
    %203 = vector.extract_strided_slice %178 {offsets = [8, 0, 0], sizes = [1, 16, 128], strides = [1, 1, 1]} : vector<16x16x128xbf16> to vector<1x16x128xbf16>
    %204 = vector.shape_cast %203 : vector<1x16x128xbf16> to vector<16x128xbf16>
    %c128 = arith.constant 128 : index
    %c0_117 = arith.constant 0 : index
    %205 = vector.load %arg12[%c128, %c0_117] : memref<256x128xbf16, #tpu.memory_space<vmem>>, vector<16x128xbf16>
    tpu.vector_store %arg12[%c128, %c0_117], %204 {strides = array<i32>} : memref<256x128xbf16, #tpu.memory_space<vmem>>, vector<16x128xbf16>,
    %206 = vector.extract_strided_slice %178 {offsets = [9, 0, 0], sizes = [1, 16, 128], strides = [1, 1, 1]} : vector<16x16x128xbf16> to vector<1x16x128xbf16>
    %207 = vector.shape_cast %206 : vector<1x16x128xbf16> to vector<16x128xbf16>
    %c144 = arith.constant 144 : index
    %c0_118 = arith.constant 0 : index
    %208 = vector.load %arg12[%c144, %c0_118] : memref<256x128xbf16, #tpu.memory_space<vmem>>, vector<16x128xbf16>
    tpu.vector_store %arg12[%c144, %c0_118], %207 {strides = array<i32>} : memref<256x128xbf16, #tpu.memory_space<vmem>>, vector<16x128xbf16>,
    %209 = vector.extract_strided_slice %178 {offsets = [10, 0, 0], sizes = [1, 16, 128], strides = [1, 1, 1]} : vector<16x16x128xbf16> to vector<1x16x128xbf16>
    %210 = vector.shape_cast %209 : vector<1x16x128xbf16> to vector<16x128xbf16>
    %c160 = arith.constant 160 : index
    %c0_119 = arith.constant 0 : index
    %211 = vector.load %arg12[%c160, %c0_119] : memref<256x128xbf16, #tpu.memory_space<vmem>>, vector<16x128xbf16>
    tpu.vector_store %arg12[%c160, %c0_119], %210 {strides = array<i32>} : memref<256x128xbf16, #tpu.memory_space<vmem>>, vector<16x128xbf16>,
    %212 = vector.extract_strided_slice %178 {offsets = [11, 0, 0], sizes = [1, 16, 128], strides = [1, 1, 1]} : vector<16x16x128xbf16> to vector<1x16x128xbf16>
    %213 = vector.shape_cast %212 : vector<1x16x128xbf16> to vector<16x128xbf16>
    %c176 = arith.constant 176 : index
    %c0_120 = arith.constant 0 : index
    %214 = vector.load %arg12[%c176, %c0_120] : memref<256x128xbf16, #tpu.memory_space<vmem>>, vector<16x128xbf16>
    tpu.vector_store %arg12[%c176, %c0_120], %213 {strides = array<i32>} : memref<256x128xbf16, #tpu.memory_space<vmem>>, vector<16x128xbf16>,
    %215 = vector.extract_strided_slice %178 {offsets = [12, 0, 0], sizes = [1, 16, 128], strides = [1, 1, 1]} : vector<16x16x128xbf16> to vector<1x16x128xbf16>
    %216 = vector.shape_cast %215 : vector<1x16x128xbf16> to vector<16x128xbf16>
    %c192 = arith.constant 192 : index
    %c0_121 = arith.constant 0 : index
    %217 = vector.load %arg12[%c192, %c0_121] : memref<256x128xbf16, #tpu.memory_space<vmem>>, vector<16x128xbf16>
    tpu.vector_store %arg12[%c192, %c0_121], %216 {strides = array<i32>} : memref<256x128xbf16, #tpu.memory_space<vmem>>, vector<16x128xbf16>,
    %218 = vector.extract_strided_slice %178 {offsets = [13, 0, 0], sizes = [1, 16, 128], strides = [1, 1, 1]} : vector<16x16x128xbf16> to vector<1x16x128xbf16>
    %219 = vector.shape_cast %218 : vector<1x16x128xbf16> to vector<16x128xbf16>
    %c208 = arith.constant 208 : index
    %c0_122 = arith.constant 0 : index
    %220 = vector.load %arg12[%c208, %c0_122] : memref<256x128xbf16, #tpu.memory_space<vmem>>, vector<16x128xbf16>
    tpu.vector_store %arg12[%c208, %c0_122], %219 {strides = array<i32>} : memref<256x128xbf16, #tpu.memory_space<vmem>>, vector<16x128xbf16>,
    %221 = vector.extract_strided_slice %178 {offsets = [14, 0, 0], sizes = [1, 16, 128], strides = [1, 1, 1]} : vector<16x16x128xbf16> to vector<1x16x128xbf16>
    %222 = vector.shape_cast %221 : vector<1x16x128xbf16> to vector<16x128xbf16>
    %c224 = arith.constant 224 : index
    %c0_123 = arith.constant 0 : index
    %223 = vector.load %arg12[%c224, %c0_123] : memref<256x128xbf16, #tpu.memory_space<vmem>>, vector<16x128xbf16>
    tpu.vector_store %arg12[%c224, %c0_123], %222 {strides = array<i32>} : memref<256x128xbf16, #tpu.memory_space<vmem>>, vector<16x128xbf16>,
    %224 = vector.extract_strided_slice %178 {offsets = [15, 0, 0], sizes = [1, 16, 128], strides = [1, 1, 1]} : vector<16x16x128xbf16> to vector<1x16x128xbf16>
    %225 = vector.shape_cast %224 : vector<1x16x128xbf16> to vector<16x128xbf16>
    %c240 = arith.constant 240 : index
    %c0_124 = arith.constant 0 : index
    %226 = vector.load %arg12[%c240, %c0_124] : memref<256x128xbf16, #tpu.memory_space<vmem>>, vector<16x128xbf16>
    tpu.vector_store %arg12[%c240, %c0_124], %225 {strides = array<i32>} : memref<256x128xbf16, #tpu.memory_space<vmem>>, vector<16x128xbf16>,
    %c0_125 = arith.constant 0 : index
    %c0_126 = arith.constant 0 : index
    %227 = vector.load %arg12[%c0_125, %c0_126] : memref<256x128xbf16, #tpu.memory_space<vmem>>, vector<256x128xbf16>
    %c0_127 = arith.constant 0 : index
    %c0_128 = arith.constant 0 : index
    %228 = vector.load %arg7[%c0_127, %c0_128] : memref<128x16xbf16, #tpu.memory_space<vmem>>, vector<128x16xbf16>
    %cst_129 = arith.constant dense<0.000000e+00> : vector<256x16xf32>
    %229 = tpu.matmul %227, %228, %cst_129 {dimension_numbers = #tpu.dot_dimension_numbers<[1], [0], [0], [1], [0, 0, 1, 1], [], []>} : vector<256x128xbf16>, vector<128x16xbf16>, vector<256x16xf32> -> vector<256x16xf32>
    %c0_130 = arith.constant 0 : index
    %c0_131 = arith.constant 0 : index
    %230 = vector.load %arg8[%c0_130, %c0_131] : memref<1x16xf32, #tpu.memory_space<vmem>>, vector<1x16xf32>
    %231 = vector.broadcast %230 : vector<1x16xf32> to vector<256x16xf32>
    %232 = arith.addf %229, %231 : vector<256x16xf32>
    %c0_132 = arith.constant 0 : index
    %c0_133 = arith.constant 0 : index
    %c0_134 = arith.constant 0 : index
    %233 = vector.load %arg9[%c0_132, %c0_133, %c0_134] : memref<1x256x16xbf16, #tpu.memory_space<vmem>>, vector<1x256x16xbf16>
    %234 = vector.shape_cast %233 : vector<1x256x16xbf16> to vector<256x16xbf16>
    %235 = arith.extf %234 : vector<256x16xbf16> to vector<256x16xf32>
    %236 = arith.addf %232, %235 : vector<256x16xf32>
    %237 = arith.truncf %236 : vector<256x16xf32> to vector<256x16xbf16>
    %c0_135 = arith.constant 0 : index
    %c0_136 = arith.constant 0 : index
    %c0_137 = arith.constant 0 : index
    %238 = vector.load %arg10[%c0_135, %c0_136, %c0_137] : memref<1x256x16xbf16, #tpu.memory_space<vmem>>, vector<1x256x16xbf16>
    %239 = vector.shape_cast %238 : vector<1x256x16xbf16> to vector<256x16xbf16>
    %240 = vector.shape_cast %237 : vector<256x16xbf16> to vector<1x256x16xbf16>
    tpu.vector_store %arg10[%c0_135, %c0_136, %c0_137], %240 {strides = array<i32>} : memref<1x256x16xbf16, #tpu.memory_space<vmem>>, vector<1x256x16xbf16>,
    return
  }
  func.func @transform_0(%arg0: i32) -> (i32, i32, i32) {
    %c0_i32 = arith.constant 0 : i32
    %c0_i32_0 = arith.constant 0 : i32
    %c0_i32_1 = arith.constant 0 : i32
    return %arg0, %c0_i32, %c0_i32_0 : i32, i32, i32
  }
  func.func @transform_1(%arg0: i32) -> (i32, i32) {
    %c0_i32 = arith.constant 0 : i32
    %c0_i32_0 = arith.constant 0 : i32
    %c0_i32_1 = arith.constant 0 : i32
    return %c0_i32, %c0_i32_0 : i32, i32
  }
  func.func @transform_2(%arg0: i32) -> (i32, i32) {
    %c0_i32 = arith.constant 0 : i32
    %c0_i32_0 = arith.constant 0 : i32
    %c0_i32_1 = arith.constant 0 : i32
    return %c0_i32, %c0_i32_0 : i32, i32
  }
  func.func @transform_3(%arg0: i32) -> (i32, i32) {
    %c0_i32 = arith.constant 0 : i32
    %c0_i32_0 = arith.constant 0 : i32
    %c0_i32_1 = arith.constant 0 : i32
    return %c0_i32, %c0_i32_0 : i32, i32
  }
  func.func @transform_4(%arg0: i32) -> (i32, i32) {
    %c0_i32 = arith.constant 0 : i32
    %c0_i32_0 = arith.constant 0 : i32
    %c0_i32_1 = arith.constant 0 : i32
    return %c0_i32, %c0_i32_0 : i32, i32
  }
  func.func @transform_5(%arg0: i32) -> (i32, i32) {
    %c0_i32 = arith.constant 0 : i32
    %c0_i32_0 = arith.constant 0 : i32
    %c0_i32_1 = arith.constant 0 : i32
    return %c0_i32, %c0_i32_0 : i32, i32
  }
  func.func @transform_6(%arg0: i32) -> (i32, i32) {
    %c0_i32 = arith.constant 0 : i32
    %c0_i32_0 = arith.constant 0 : i32
    %c0_i32_1 = arith.constant 0 : i32
    return %c0_i32, %c0_i32_0 : i32, i32
  }
  func.func @transform_7(%arg0: i32) -> (i32, i32) {
    %c0_i32 = arith.constant 0 : i32
    %c0_i32_0 = arith.constant 0 : i32
    %c0_i32_1 = arith.constant 0 : i32
    return %c0_i32, %c0_i32_0 : i32, i32
  }
  func.func @transform_8(%arg0: i32) -> (i32, i32, i32) {
    %c0_i32 = arith.constant 0 : i32
    %c0_i32_0 = arith.constant 0 : i32
    %c0_i32_1 = arith.constant 0 : i32
    return %arg0, %c0_i32, %c0_i32_0 : i32, i32, i32
  }
  func.func @transform_9(%arg0: i32) -> (i32, i32, i32) {
    %c0_i32 = arith.constant 0 : i32
    %c0_i32_0 = arith.constant 0 : i32
    %c0_i32_1 = arith.constant 0 : i32
    return %arg0, %c0_i32, %c0_i32_0 : i32, i32, i32
  }
}

</mosaic_0001>

<bundles_post_ra>
// kernel: tpu_custom_call.1
= control target key start
LH: loop header
LB: loop body
LE: loop exit
PB: predicated region body
PF: predicated region fallthrough
CT: control target
= control target key end

     0   :  { %s4980_s30 = smov 0   ;;  %s6498_s0 = inlined_call_operand.vmem [shape: bf16[2,324,16], index: 0, kind: input, shape index: {}]   ;;  %s6499_s1 = inlined_call_operand.vmem [shape: f32[324,1], index: 1, kind: input, shape index: {}]   ;;  %s6500_s2 = inlined_call_operand.vmem [shape: bf16[16,128], index: 2, kind: input, shape index: {}]   ;;  %s6501_s3 = inlined_call_operand.vmem [shape: f32[1,128], index: 3, kind: input, shape index: {}]   ;;  %s6502_s4 = inlined_call_operand.vmem [shape: bf16[9,128], index: 4, kind: input, shape index: {}]   ;;  %s6503_s5 = inlined_call_operand.vmem [shape: f32[1,128], index: 5, kind: input, shape index: {}]   ;;  %s6504_s6 = inlined_call_operand.vmem [shape: bf16[128,16], index: 6, kind: input, shape index: {}]   ;;  %s6505_s7 = inlined_call_operand.vmem [shape: f32[1,16], index: 7, kind: input, shape index: {}]   ;;  %s6506_s8 = inlined_call_operand.vmem [shape: bf16[2,256,16], index: 8, kind: input, shape index: {}]   ;;  %s6507_s9 = inlined_call_operand.vmem [shape: bf16[2,256,16], index: 9, kind: output, shape index: {}]  }
   0x1 LB: > { %s4241_s10 = sadd.s32 4294967295, %s4925_s30   ;;  %p4245_p0 = scmp.ge.s32.totalorder %s4925_s30, 1  ;;  %s4925_s30 = sphi %s4980_s30, %s19_s30  }
   0x2   : > { %p297_p1 = scmp.lt.s32.totalorder %s4925_s30, 3 }
   0x4   : > { %p298_p2 = pnand %p4245_p0, %p297_p1 }
   0x6   : > { %301 = sbr.rel (%p298_p2) target bundleno = 893 (0x37d), region = 56 }
   0xd   : > { %v4886_v0 = vld [vmem:[%s6500_s2] sm:$0xff]   ;;  %v4927_v1 = vmov 0.0   ;;  %p338_p3 = scmp.lt.s32.totalorder %s4241_s10, 1  ;;  %vm4928_vm0 = vmmov 0   ;;  %v862_v2 = vld [vmem:[%s6499_s1 + $0x18] sm:$0xff]  ;;  %v861_v3 = vld [vmem:[%s6499_s1 + $0x10] sm:$0xff] }
   0xe   : > { %4736 = vmatprep.subr.bf16.mxu0 %v4927_v1  ;;  %4870 = vmatprep.subr.bf16.mxu1 %v4927_v1  ;;  %v4929_v4 = vmov 0   ;;  %v863_v5 = vld [vmem:[%s6499_s1 + $0x20] sm:$0xff]  ;;  %vm513_vm1 = vcmask 130048   ;;  %v860_v8 = vld [vmem:[%s6499_s1 + $0x8] sm:$0xff]  ;;  %v865_v11 = vld [vmem:[%s6499_s1 + $0x30] sm:$0xff]  ;;  %vm1186_vm2 = vcmask 1042432  }
   0xf   : > { %4737 = vmatpush3.bf16.msra.mxu0 %v4886_v0  ;;  %4738 = vmatprep.mubr.msk.bf16.mxu0 %vm4928_vm0, %v4927_v1  ;;  %s6533_s10 = smov (!%p338_p3, %s4241_s10), 1  ;;  %v859_v6 = vld [vmem:[%s6499_s1] sm:$0xff]  ;;  %v864_v10 = vld [vmem:[%s6499_s1 + $0x28] sm:$0xff]  ;;  %v866_v13 = vld [vmem:[%s6499_s1 + $0x38] sm:$0xff]  ;;  %vm1187_vm3 = vcmask 1046532   ;;  %vm1209_vm4 = vcmask 1041408  }
  0x10   : > { %4871 = vmatpush3.bf16.msra.mxu1 %v4886_v0  ;;  %4798 = vmatprep.mubr.msk.bf16.mxu1 %vm4928_vm0, %v4927_v1  ;;  %s4872_s17 = smul.u32 164, %s6533_s10  ;;  %v867_v15 = vld [vmem:[%s6499_s1 + $0x40] sm:$0xff]  ;;  %v872_v17 = vld [vmem:[%s6499_s1 + $0x68] sm:$0xff]  ;;  %v870_v19 = vld [vmem:[%s6499_s1 + $0x58] sm:$0xff]  ;;  %vm1210_vm5 = vcmask 1045508   ;;  %vm1232_vm7 = vcmask 1040384  }
  0x11   : > { %4884 = vset.pattern.permute.xlu0 %v4929_v4  ;;  %4885 = vset.pattern.permute.xlu1 %v4929_v4  ;;  %v871_v16 = vld [vmem:[%s6499_s1 + $0x60] sm:$0xff]  ;;  %v868_v21 = vld [vmem:[%s6499_s1 + $0x48] sm:$0xff]  ;;  %v869_v22 = vld [vmem:[%s6499_s1 + $0x50] sm:$0xff]  ;;  %vm1233_vm8 = vcmask 1044484   ;;  %vm1744_vm11 = vcmask 1046528   ;;  %vm2021_vm12 = vcmask 1045504  }
  0x12   : > { %917 = vperm.xlu0 %4884, %v862_v2   ;;  %912 = vperm.xlu1 %4885, %v861_v3   ;;  %s5015_s24 = scalar_lea.vmem %s6498_s0, %s4872_s17  ;;  %v873_v23 = vld [vmem:[%s6499_s1 + $0x70] sm:$0xff]  ;;  %v874_v25 = vld [vmem:[%s6499_s1 + $0x78] sm:$0xff]  ;;  %v875_v27 = vld [vmem:[%s6499_s1 + $0x80] sm:$0xff]  ;;  %s4393_s18 = sshll.u32 %s6533_s10, 7  ;;  %vm4141_vm13 = vcmask 125952  }
  0x13   : > { %v4887_v7 = vld [vmem:[%s5015_s24] sm:$0xff]   ;;  %v4889_v9 = vld [vmem:[%s5015_s24 + $0x78] sm:$0xff]   ;;  %v4888_v12 = vld [vmem:[%s5015_s24 + $0x8] sm:$0xff]   ;;  %s6347_s21 = scalar_lea.vmem %s6506_s8, %s4393_s18  ;;  %s6380_s27 = scalar_lea.vmem %s6507_s9, %s4393_s18 }
  0x14   : > { %4739 = vmatmul.mubr.msk.bf16.vlgmr.msra.gmra.mrb[0].mxu0 %vm513_vm1, %v4887_v7  ;;  %4799 = vmatmul.mubr.msk.bf16.vlgmr.msra.gmra.mrb[0].mxu1 %vm513_vm1, %v4889_v9  ;;  %v4891_v14 = vld [vmem:[%s5015_s24 + $0x80] sm:$0xff]   ;;  %v4890_v18 = vld [vmem:[%s5015_s24 + $0x10] sm:$0xff]   ;;  %v4893_v20 = vld [vmem:[%s5015_s24 + $0x88] sm:$0xff]  }
  0x15   : > { %4742 = vmatprep.mubr.msk.bf16.mxu0 %vm4928_vm0, %v4927_v1  ;;  %4802 = vmatprep.mubr.msk.bf16.mxu1 %vm4928_vm0, %v4927_v1  ;;  %v4892_v24 = vld [vmem:[%s5015_s24 + $0x18] sm:$0xff]   ;;  %v4895_v26 = vld [vmem:[%s5015_s24 + $0x90] sm:$0xff]   ;;  %v876_v28 = vld [vmem:[%s6499_s1 + $0x88] sm:$0xff] }
  0x16   : > { %922 = vperm.xlu0 %4884, %v863_v5   ;;  %902 = vperm.xlu1 %4885, %v859_v6   ;;  %v4894_v29 = vld [vmem:[%s5015_s24 + $0x20] sm:$0xff]   ;;  %v880_v30 = vld [vmem:[%s6499_s1 + $0xa8] sm:$0xff]  ;;  %v881_v31 = vld [vmem:[%s6499_s1 + $0xb0] sm:$0xff] }
  0x17   : > { %v4897_v32 = vld [vmem:[%s5015_s24 + $0x98] sm:$0xff]   ;;  %v879_v33 = vld [vmem:[%s6499_s1 + $0xa0] sm:$0xff]  ;;  %v877_v34 = vld [vmem:[%s6499_s1 + $0x90] sm:$0xff] }
  0x18   : > { %v4896_v35 = vld [vmem:[%s5015_s24 + $0x28] sm:$0xff]   ;;  %v878_v36 = vld [vmem:[%s6499_s1 + $0x98] sm:$0xff]  ;;  %v4899_v38 = vld [vmem:[%s5015_s24 + $0xa0] ss:$0 sps:$4 sm:$0x33]  }
  0x19   : > { %v882_v37 = vld [vmem:[%s6499_s1 + $0xb8] sm:$0xff]  ;;  %v883_v39 = vld [vmem:[%s6499_s1 + $0xc0] sm:$0xff]  ;;  %v884_v40 = vld [vmem:[%s6499_s1 + $0xc8] sm:$0xff] }
  0x1a   : > { %907 = vperm.xlu0 %4884, %v860_v8   ;;  %927 = vperm.xlu1 %4885, %v864_v10   ;;  %v4898_v41 = vld [vmem:[%s5015_s24 + $0x30] sm:$0xff]   ;;  %v890_v44 = vld [vmem:[%s6499_s1 + $0xf8] sm:$0xff]  ;;  %v888_v45 = vld [vmem:[%s6499_s1 + $0xe8] sm:$0xff] }
  0x1b   : > { %v885_v42 = vld [vmem:[%s6499_s1 + $0xd0] sm:$0xff]  ;;  %v4900_v46 = vld [vmem:[%s5015_s24 + $0x38] sm:$0xff]   ;;  %v887_v48 = vld [vmem:[%s6499_s1 + $0xe0] sm:$0xff] }
  0x1c   : > { %4743 = vmatmul.mubr.msk.bf16.gmra.mrb[4].mxu0 %vm513_vm1, %v4888_v12  ;;  %4803 = vmatmul.mubr.msk.bf16.gmra.mrb[4].mxu1 %vm513_vm1, %v4891_v14  ;;  %v889_v43 = vld [vmem:[%s6499_s1 + $0xf0] sm:$0xff]  ;;  %v886_v47 = vld [vmem:[%s6499_s1 + $0xd8] sm:$0xff]  ;;  %v891_v49 = vld [vmem:[%s6499_s1 + $0x100] sm:$0xff] }
  0x1d   : > { %4746 = vmatprep.mubr.msk.bf16.mxu0 %vm4928_vm0, %v4927_v1  ;;  %4806 = vmatprep.mubr.msk.bf16.mxu1 %vm4928_vm0, %v4927_v1  ;;  %v892_v50 = vld [vmem:[%s6499_s1 + $0x108] sm:$0xff]  ;;  %v4901_v51 = vld [vmem:[%s5015_s24 + $0x40] sm:$0xff]   ;;  %v893_v52 = vld [vmem:[%s6499_s1 + $0x110] sm:$0xff] }
  0x1e   : > { %932 = vperm.xlu0 %4884, %v865_v11   ;;  %937 = vperm.xlu1 %4885, %v866_v13   ;;  %v894_v53 = vld [vmem:[%s6499_s1 + $0x118] sm:$0xff]  ;;  %v895_v54 = vld [vmem:[%s6499_s1 + $0x120] sm:$0xff]  ;;  %v896_v55 = vld [vmem:[%s6499_s1 + $0x128] sm:$0xff] }
  0x1f   : > { %v4902_v56 = vld [vmem:[%s5015_s24 + $0x48] sm:$0xff]   ;;  %v897_v57 = vld [vmem:[%s6499_s1 + $0x130] sm:$0xff]  ;;  %v898_v58 = vld [vmem:[%s6499_s1 + $0x138] sm:$0xff] }
  0x20   : > { %v899_v59 = vld [vmem:[%s6499_s1 + $0x140] sm:$0xf]  ;;  %v4903_v60 = vld [vmem:[%s5015_s24 + $0x50] sm:$0xff]   ;;  %v4904_v61 = vld [vmem:[%s5015_s24 + $0x58] sm:$0xff]  }
  0x21   : > { %v4905_v62 = vld [vmem:[%s5015_s24 + $0x60] sm:$0xff]   ;;  %v4906_v63 = vld [vmem:[%s5015_s24 + $0x68] sm:$0xff]   ;;  %v4907_v0 = vld [vmem:[%s5015_s24 + $0x70] sm:$0xff]  }
  0x22   : > { %942 = vperm.xlu0 %4884, %v867_v15   ;;  %962 = vperm.xlu1 %4885, %v871_v16   ;;  %v4908_v2 = vld [vmem:[%s6504_s6] sm:$0xff]   ;;  %v4909_v5 = vld [vmem:[%s6504_s6 + $0x8] sm:$0xff]   ;;  %v4911_v8 = vld [vmem:[%s6504_s6 + $0x18] sm:$0xff]  }
  0x23   : > { %4822 = vmatprep.subr.bf16.mxu1 %v4908_v2  ;;  %v4912_v11 = vld [vmem:[%s6504_s6 + $0x20] sm:$0xff]   ;;  %v4913_v12 = vld [vmem:[%s6504_s6 + $0x28] sm:$0xff]   ;;  %v4914_v15 = vld [vmem:[%s6504_s6 + $0x30] sm:$0xff]  }
  0x24   : > { %4747 = vmatmul.mubr.msk.bf16.gmra.mrb[8].mxu0 %vm513_vm1, %v4890_v18  ;;  %4807 = vmatmul.mubr.msk.bf16.gmra.mrb[8].mxu1 %vm513_vm1, %v4893_v20  ;;  %vm5357_vm6 = vmor %vm1186_vm2, %vm1187_vm3 }
  0x25   : > { %4750 = vmatprep.mubr.msk.bf16.mxu0 %vm4928_vm0, %v4927_v1  ;;  %4810 = vmatprep.mubr.msk.bf16.mxu1 %vm4928_vm0, %v4927_v1  ;;  %vm5385_vm9 = vmor %vm1209_vm4, %vm1210_vm5 }
  0x26   : > { %967 = vperm.xlu0 %4884, %v872_v17   ;;  %957 = vperm.xlu1 %4885, %v870_v19   ;;  %vm5412_vm10 = vmor %vm1232_vm7, %vm1233_vm8 }
  0x27   : > { %4823 = vmatpush3.bf16.msra.mxu1 %v4908_v2 }
  0x28   : > { %4824 = vmatprep.subr.bf16.mxu1 %v4909_v5 }
  0x2a   : > { %947 = vperm.xlu0 %4884, %v868_v21   ;;  %952 = vperm.xlu1 %4885, %v869_v22  }
  0x2b   : > { %4825 = vmatpush3.bf16.msra.mxu1 %v4909_v5 }
  0x2c   : > { %4751 = vmatmul.mubr.msk.bf16.gmra.mrb[12].mxu0 %vm513_vm1, %v4892_v24  ;;  %4811 = vmatmul.mubr.msk.bf16.gmra.mrb[12].mxu1 %vm513_vm1, %v4895_v26  ;;  %v4915_v24 = vld [vmem:[%s6504_s6 + $0x38] sm:$0xff]  }
  0x2d   : > { %4754 = vmatprep.mubr.msk.bf16.mxu0 %vm4928_vm0, %v4927_v1  ;;  %4814 = vmatprep.mubr.msk.bf16.mxu1 %vm4928_vm0, %v4927_v1 }
  0x2e   : > { %972 = vperm.xlu0 %4884, %v873_v23   ;;  %977 = vperm.xlu1 %4885, %v874_v25  }
  0x32   : > { %982 = vperm.xlu0 %4884, %v875_v27   ;;  %987 = vperm.xlu1 %4885, %v876_v28  }
  0x34   : > { %4755 = vmatmul.mubr.msk.bf16.gmra.mrb[16].mxu0 %vm513_vm1, %v4894_v29  ;;  %4815 = vmatmul.mubr.msk.bf16.gmra.mrb[16].mxu1 %vm513_vm1, %v4897_v32 }
  0x35   : > { %4758 = vmatprep.mubr.msk.bf16.mxu0 %vm4928_vm0, %v4927_v1  ;;  %4818 = vmatprep.mubr.msk.bf16.mxu1 %vm4928_vm0, %v4927_v1 }
  0x36   : > { %1007 = vperm.xlu0 %4884, %v880_v30   ;;  %1012 = vperm.xlu1 %4885, %v881_v31  }
  0x3a   : > { %1002 = vperm.xlu0 %4884, %v879_v33   ;;  %992 = vperm.xlu1 %4885, %v877_v34  }
  0x3c   : > { %4759 = vmatmul.mubr.msk.bf16.gmra.mrb[20].mxu0 %vm513_vm1, %v4896_v35  ;;  %4819 = vmatmul.mubr.msk.bf16.gmra.mrb[20].mxu1 %vm513_vm1, %v4899_v38  ;;  %v1576_v35 = vlaneseq }
  0x3d   : > { %4762 = vmatprep.mubr.msk.bf16.mxu0 %vm4928_vm0, %v4927_v1 }
  0x3e   : > { %997 = vperm.xlu0 %4884, %v878_v36   ;;  %1017 = vperm.xlu1 %4885, %v882_v37   ;;  %v5286_v38 = vshrl.u32 %v1576_v35, 7 }
  0x40   : > { %v2232_v5 = vsub.s32 3, %v5286_v38 }
  0x42   : > { %1022 = vperm.xlu0 %4884, %v883_v39   ;;  %1027 = vperm.xlu1 %4885, %v884_v40   ;;  %v1508_v39 = vld [vmem:[%s6502_s4] sm:$0xf] }
  0x43   : > { %v5294_v40 = vld [vmem:[%s6501_s3] ss:$0 sm:$0xff] }
  0x44   : > { %4763 = vmatmul.mubr.msk.bf16.gmra.mrb[24].mxu0 %vm513_vm1, %v4898_v41 }
  0x45   : > { %4766 = vmatprep.mubr.msk.bf16.mxu0 %vm4928_vm0, %v4927_v1 }
  0x46   : > { %1032 = vperm.xlu0 %4884, %v885_v42   ;;  %1052 = vperm.xlu1 %4885, %v889_v43   ;;  %v1510_v43 = vunpack.c.l.bf16 %v1508_v39 }
  0x4a   : > { %1057 = vperm.xlu0 %4884, %v890_v44   ;;  %1047 = vperm.xlu1 %4885, %v888_v45   ;;  %v1578_v44 = vsub.s32 0, %v5286_v38 }
  0x4c   : > { %4767 = vmatmul.mubr.msk.bf16.gmra.mrb[28].mxu0 %vm513_vm1, %v4900_v46 }
  0x4d   : > { %4770 = vmatprep.mubr.msk.bf16.mxu0 %vm4928_vm0, %v4927_v1 }
  0x4e   : > { %1037 = vperm.xlu0 %4884, %v886_v47   ;;  %1042 = vperm.xlu1 %4885, %v887_v48  }
  0x52   : > { %1062 = vperm.xlu0 %4884, %v891_v49   ;;  %1067 = vperm.xlu1 %4885, %v892_v50  }
  0x54   : > { %4771 = vmatmul.mubr.msk.bf16.gmra.mrb[32].mxu0 %vm513_vm1, %v4901_v51 }
  0x55   : > { %4774 = vmatprep.mubr.msk.bf16.mxu0 %vm4928_vm0, %v4927_v1 }
  0x56   : > { %1072 = vperm.xlu0 %4884, %v893_v52   ;;  %1077 = vperm.xlu1 %4885, %v894_v53  }
  0x5a   : > { %1082 = vperm.xlu0 %4884, %v895_v54   ;;  %1087 = vperm.xlu1 %4885, %v896_v55   ;;  %v1509_v55 = vld [vmem:[%s6502_s4 + $0x4] sm:$0x1] }
  0x5b   : > { %v1511_v2 = vunpack.c.l.bf16 %v1509_v55 }
  0x5c   : > { %4775 = vmatmul.mubr.msk.bf16.gmra.mrb[36].mxu0 %vm513_vm1, %v4902_v56  ;;  %v1646_v56 = vsub.s32 1, %v5286_v38 }
  0x5d   : > { %4778 = vmatprep.mubr.msk.bf16.mxu0 %vm4928_vm0, %v4927_v1 }
  0x5e   : > { %1092 = vperm.xlu0 %4884, %v897_v57   ;;  %1097 = vperm.xlu1 %4885, %v898_v58   ;;  %v5306_v58 = vrot.slane %v1510_v43, %v1578_v44 }
  0x62   : > { %1102 = vperm.xlu0 %4884, %v899_v59   ;;  %v1923_v59 = vsub.s32 2, %v5286_v38 }
  0x64   : > { %4779 = vmatmul.mubr.msk.bf16.gmra.mrb[40].mxu0 %vm513_vm1, %v4903_v60 }
  0x65   : > { %4782 = vmatprep.mubr.msk.bf16.mxu0 %vm4928_vm0, %v4927_v1 }
  0x6c   : > { %4783 = vmatmul.mubr.msk.bf16.gmra.mrb[44].mxu0 %vm513_vm1, %v4904_v61 }
  0x6d   : > { %4786 = vmatprep.mubr.msk.bf16.mxu0 %vm4928_vm0, %v4927_v1 }
  0x74   : > { %4787 = vmatmul.mubr.msk.bf16.gmra.mrb[48].mxu0 %vm513_vm1, %v4905_v62 }
  0x75   : > { %4790 = vmatprep.mubr.msk.bf16.mxu0 %vm4928_vm0, %v4927_v1 }
  0x7c   : > { %4791 = vmatmul.mubr.msk.bf16.gmra.mrb[52].mxu0 %vm513_vm1, %v4906_v63 }
  0x7d   : > { %4794 = vmatprep.mubr.msk.bf16.mxu0 %vm4928_vm0, %v4927_v1  ;;  %v4910_v1 = vld [vmem:[%s6504_s6 + $0x10] sm:$0xff]  }
  0x7e   : > { %4826 = vmatprep.subr.bf16.mxu1 %v4910_v1 }
  0x7f   : > { %4827 = vmatpush3.bf16.msra.mxu1 %v4910_v1  ;;  %v2332_v1 = vsub.s32 4, %v5286_v38 }
  0x80   : > { %4828 = vmatprep.subr.bf16.mxu1 %v4911_v8 }
  0x83   : > { %4829 = vmatpush3.bf16.msra.mxu1 %v4911_v8  ;;  %v2608_v8 = vsub.s32 5, %v5286_v38 }
  0x84   : > { %4795 = vmatmul.mubr.msk.bf16.gmra.mrb[56].mxu0 %vm513_vm1, %v4907_v0  ;;  %4830 = vmatprep.subr.bf16.mxu1 %v4912_v11 }
  0x87   : > { %4831 = vmatpush3.bf16.msra.mxu1 %v4912_v11 }
  0x88   : > { %4832 = vmatprep.subr.bf16.mxu1 %v4913_v12 }
  0x8b   : > { %4833 = vmatpush3.bf16.msra.mxu1 %v4913_v12 }
  0x8c   : > { %4834 = vmatprep.subr.bf16.mxu1 %v4914_v15 }
  0x8f   : > { %4835 = vmatpush3.bf16.msra.mxu1 %v4914_v15 }
  0x90   : > { %4836 = vmatprep.subr.bf16.mxu1 %v4915_v24 }
  0x91   : > { %v5211_v3 = vpop.permute.xlu0 %917  ;;  %v5213_v4 = vpop.permute.xlu1 %912 }
  0x93   : > { %4837 = vmatpush3.bf16.msra.mxu1 %v4915_v24  ;;  %v5313_v24 = vrot.slane %v1510_v43, %v1646_v56  ;;  %v5326_v56 = vrot.slane %v1510_v43, %v2232_v5 }
  0x95   : > { %v5221_v6 = vpop.permute.xlu0 %922  ;;  %v5223_v7 = vpop.permute.xlu1 %902 }
  0x99   : > { %v5228_v9 = vpop.permute.xlu0 %907  ;;  %v5230_v10 = vpop.permute.xlu1 %927 }
  0x9d   : > { %v5238_v13 = vpop.permute.xlu0 %932  ;;  %v5240_v14 = vpop.permute.xlu1 %937 }
  0xa1   : > { %v5245_v16 = vpop.permute.xlu0 %942  ;;  %v5247_v17 = vpop.permute.xlu1 %962 }
  0xa5   : > { %v5249_v18 = vpop.permute.xlu0 %967  ;;  %v5251_v19 = vpop.permute.xlu1 %957 }
  0xa9   : > { %v5253_v20 = vpop.permute.xlu0 %947  ;;  %v5255_v21 = vpop.permute.xlu1 %952 }
  0xad   : > { %v5257_v22 = vpop.permute.xlu0 %972  ;;  %v5259_v23 = vpop.permute.xlu1 %977 }
  0xb1   : > { %v5264_v25 = vpop.permute.xlu0 %982  ;;  %v5266_v26 = vpop.permute.xlu1 %987 }
  0xb5   : > { %v5268_v27 = vpop.permute.xlu0 %1007  ;;  %v5270_v28 = vpop.permute.xlu1 %1012 }
  0xb9   : > { %v5272_v29 = vpop.permute.xlu0 %1002  ;;  %v5274_v30 = vpop.permute.xlu1 %992 }
  0xbd   : > { %v5276_v31 = vpop.permute.xlu0 %997  ;;  %v5278_v32 = vpop.permute.xlu1 %1017 }
  0xc1   : > { %v5280_v33 = vpop.permute.xlu0 %1022  ;;  %v5282_v34 = vpop.permute.xlu1 %1027 }
  0xc2   : > { %6509 = vst [vmem:[#allocation4_spill] sm:$0xff] %v5280_v33  ;;  %6510 = vst [vmem:[#allocation5_spill] sm:$0xff] %v5282_v34 }
  0xc5   : > { %v5284_v36 = vpop.permute.xlu0 %1032  ;;  %v1053_v37 = vpop.permute.xlu1 %1052 }
  0xc6   : > { %6511 = vst [vmem:[#allocation6_spill] sm:$0xff] %v5284_v36 }
  0xc9   : > { %v1058_v42 = vpop.permute.xlu0 %1057  ;;  %v5298_v47 = vpop.permute.xlu1 %1047 }
  0xca   : > { %6512 = vst [vmem:[#allocation7_spill] sm:$0xff] %v5298_v47 }
  0xe7   : > { %v611_v41 = vpop.f32.mrb[0].mxu0  ;;  %v731_v49 = vpop.f32.mrb[0].mxu1 }
  0xe8   : > { %v612_v45 = vadd.f32 %v5294_v40, %v611_v41  ;;  %v4740_v46 = vpop.f32.mrb[1].mxu0  ;;  %v732_v53 = vadd.f32 %v5294_v40, %v731_v49  ;;  %v4800_v54 = vpop.f32.mrb[1].mxu1 }
  0xe9   : > { %v614_v48 = vpop.f32.mrb[2].mxu0  ;;  %v734_v57 = vpop.f32.mrb[2].mxu1  ;;  %v2916_v46 = vsub.s32 6, %v5286_v38 }
  0xea   : > { %v777_v50 = vmax.f32 %v612_v45, 0.0  ;;  %v615_v51 = vadd.f32 %v5294_v40, %v614_v48  ;;  %v4741_v52 = vpop.f32.mrb[3].mxu0  ;;  %v807_v62 = vmax.f32 %v732_v53, 0.0  ;;  %v735_v63 = vadd.f32 %v5294_v40, %v734_v57  ;;  %v4801_v0 = vpop.f32.mrb[3].mxu1 }
  0xeb   : > { %v5316_v41 = vpop.permute.xlu0 %1037  ;;  %v5318_v45 = vrot.slane %v1510_v43, %v1923_v59  ;;  %v3016_v48 = vsub.s32 7, %v5286_v38  ;;  %v5324_v54 = vpop.permute.xlu1 %1042  ;;  %v5328_v57 = vrot.slane %v1510_v43, %v2332_v1  ;;  %v5330_v59 = vrot.slane %v1510_v43, %v2608_v8 }
  0xec   : > { %v818_v60 = vmin.f32 %v777_v50, 6.0  ;;  %v778_v61 = vmax.f32 %v615_v51, 0.0  ;;  %v848_v12 = vmin.f32 %v807_v62, 6.0  ;;  %v808_v15 = vmax.f32 %v735_v63, 0.0  ;;  %6513 = vst [vmem:[#allocation8_spill] sm:$0xff] %v5316_v41  ;;  %6514 = vst [vmem:[#allocation9_spill] sm:$0xff] %v5324_v54 }
  0xed   : > { %v5338_v1 = vrot.slane %v1510_v43, %v3016_v48 }
  0xee   : > { %v819_v11 = vmin.f32 %v778_v61, 6.0  ;;  %v1105_v35 = vmul.f32 %v5223_v7, %v818_v60  ;;  %v1135_v52 = vmul.f32 %v1053_v37, %v848_v12  ;;  %v849_v53 = vmin.f32 %v808_v15, 6.0 }
  0xef   : > { %v619_v39 = vpop.f32.mrb[4].mxu0  ;;  %v739_v7 = vpop.f32.mrb[4].mxu1  ;;  %v5332_v60 = vrot.slane %v1511_v2, %v1578_v44  ;;  %v5336_v12 = vrot.slane %v1510_v43, %v2916_v46 }
  0xf0   : > { %v1106_v49 = vmul.f32 %v5228_v9, %v819_v11  ;;  %v620_v50 = vadd.f32 %v5294_v40, %v619_v39  ;;  %v4744_v51 = vpop.f32.mrb[5].mxu0  ;;  %v4425_v63 = vpack.c.bf16 %v1135_v52, %v1135_v52  ;;  %v4804_v37 = vpop.f32.mrb[5].mxu1  ;;  %v1136_v0 = vmul.f32 %v1058_v42, %v849_v53 }
  0xf1   : > { %v622_v55 = vpop.f32.mrb[6].mxu0  ;;  %v740_v11 = vadd.f32 %v5294_v40, %v739_v7  ;;  %v742_v5 = vpop.f32.mrb[6].mxu1 }
  0xf2   : > { %v4471_v38 = vpack.c.bf16 %v1106_v49, %v1105_v35  ;;  %v779_v61 = vmax.f32 %v620_v50, 0.0  ;;  %v623_v9 = vadd.f32 %v5294_v40, %v622_v55  ;;  %v4745_v62 = vpop.f32.mrb[7].mxu0  ;;  %v5340_v8 = vrot.slane %v4425_v63, 5  ;;  %v4805_v35 = vpop.f32.mrb[7].mxu1 }
  0xf3   : > { %v743_v15 = vadd.f32 %v5294_v40, %v742_v5  ;;  %v5343_v39 = vpack.c.bf16 %v1136_v0, %v1136_v0  ;;  %v809_v49 = vmax.f32 %v740_v11, 0.0  ;;  %v1063_v52 = vpop.permute.xlu0 %1062  ;;  %v1068_v11 = vpop.permute.xlu1 %1067 }
  0xf4   : > { %4472 = vst [vmem:[#allocation2] sm:$0xff] %v4471_v38   ;;  %v820_v44 = vmin.f32 %v779_v61, 6.0  ;;  %v780_v2 = vmax.f32 %v623_v9, 0.0  ;;  %6515 = vst [vmem:[#allocation10_spill] sm:$0xff] %v5340_v8  ;;  %v4495_v50 = vunpack.c.l.bf16 %v4471_v38  ;;  %v5345_v42 = vunpack.c.h.bf16 %v4471_v38 }
  0xf5   : > { %v1422_v43 = vrot.slane %v5340_v8, 4  ;;  %v810_v48 = vmax.f32 %v743_v15, 0.0  ;;  %v1423_v55 = vrot.slane %v5343_v39, 5  ;;  %v4339_v7 = vrot.slane %v5343_v39, 10 }
  0xf6   : > { %v1107_v51 = vmul.f32 %v5213_v4, %v820_v44  ;;  %v821_v46 = vmin.f32 %v780_v2, 6.0  ;;  %v850_v61 = vmin.f32 %v809_v49, 6.0  ;;  %v5352_v9 = vmul.f32 %v4495_v50, %v5306_v58 }
  0xf7   : > { %v627_v53 = vpop.f32.mrb[8].mxu0  ;;  %v851_v0 = vmin.f32 %v810_v48, 6.0  ;;  %v1424_v44 = vsel %vm5357_vm6, %v1422_v43, %v1423_v55  ;;  %v1425_v2 = vrot.slane %v1423_v55, 4  ;;  %v747_v15 = vpop.f32.mrb[8].mxu1 }
  0xf8   : > { %v4397_v62 = vpack.c.bf16 %v1107_v51, %v1107_v51  ;;  %v1108_v38 = vmul.f32 %v5211_v3, %v821_v46  ;;  %v628_v63 = vadd.f32 %v5294_v40, %v627_v53  ;;  %v4748_v37 = vpop.f32.mrb[9].mxu0  ;;  %v1137_v35 = vmul.f32 %v1063_v52, %v850_v61  ;;  %1431 = vst [vmem:[#allocation2 + $0xa0] sm:$0xf] %v1424_v44  ;;  %v4808_v48 = vpop.f32.mrb[9].mxu1 }
  0xf9   : > { %v630_v5 = vpop.f32.mrb[10].mxu0  ;;  %v5366_v3 = vmul.f32 %v5345_v42, %v5306_v58  ;;  %1432 = vst [vmem:[#allocation2 + $0xa4] sm:$0x1] %v1425_v2  ;;  %v748_v37 = vadd.f32 %v5294_v40, %v747_v15  ;;  %v750_v43 = vpop.f32.mrb[10].mxu1  ;;  %v1138_v8 = vmul.f32 %v1068_v11, %v851_v0  ;;  %v5371_v52 = vmul.f32 %v4495_v50, %v5313_v24 }
  0xfa   : > { %1180 = vst [vmem:[#allocation2 + $0x8] sm:$0x1] %v4397_v62  ;;  %v4300_v39 = vrot.slane %v4397_v62, 9  ;;  %v4398_v49 = vpack.c.bf16 %v1108_v38, %v1108_v38  ;;  %v781_v51 = vmax.f32 %v628_v63, 0.0  ;;  %v631_v46 = vadd.f32 %v5294_v40, %v630_v5  ;;  %v4749_v53 = vpop.f32.mrb[11].mxu0  ;;  %v4809_v38 = vpop.f32.mrb[11].mxu1 }
  0xfb   : > { %v4427_v55 = vpack.c.bf16 %v1137_v35, %v1137_v35  ;;  %v751_v62 = vadd.f32 %v5294_v40, %v750_v43  ;;  %v811_v63 = vmax.f32 %v748_v37, 0.0  ;;  %v5374_v44 = vpack.c.bf16 %v1138_v8, %v1138_v8  ;;  %v5389_v8 = vld [vmem:[#allocation2] sm:$0xe] }
  0xfc   : > { %v1191_v61 = vrot.slane %v4398_v49, 5  ;;  %v822_v47 = vmin.f32 %v781_v51, 6.0  ;;  %v782_v54 = vmax.f32 %v631_v46, 0.0  ;;  %v5378_v2 = vmul.f32 %v5345_v42, %v5313_v24  ;;  %v1073_v49 = vpop.permute.xlu0 %1072 }
  0xfd   : > { %v1440_v5 = vrot.slane %v4427_v55, 6  ;;  %v852_v46 = vmin.f32 %v811_v63, 6.0  ;;  %v812_v53 = vmax.f32 %v751_v62, 0.0  ;;  %v1443_v43 = vrot.slane %v5374_v44, 6  ;;  %v1078_v55 = vpop.permute.xlu1 %1077 }
  0xfe   : > { %v1192_v50 = vsel %vm5357_vm6, %v4300_v39, %v1191_v61  ;;  %v1193_v0 = vrot.slane %v1191_v61, 4  ;;  %v1109_v11 = vmul.f32 %v5221_v6, %v822_v47  ;;  %v823_v15 = vmin.f32 %v782_v54, 6.0 }
  0xff   : > { %1201 = vst [vmem:[#allocation2 + $0xc] sm:$0xf] %v1192_v50  ;;  %v635_v51 = vpop.f32.mrb[12].mxu0  ;;  %v1441_v39 = vsel %vm5385_vm9, %v4339_v7, %v1440_v5  ;;  %v1442_v48 = vrot.slane %v1440_v5, 4  ;;  %v853_v38 = vmin.f32 %v812_v53, 6.0  ;;  %v4342_v50 = vrot.slane %v5374_v44, 11 }
 0x100   : > { %v4399_v37 = vpack.c.bf16 %v1109_v11, %v1109_v11  ;;  %v1110_v6 = vmul.f32 %v5230_v10, %v823_v15  ;;  %v636_v47 = vadd.f32 %v5294_v40, %v635_v51  ;;  %v4752_v54 = vpop.f32.mrb[13].mxu0  ;;  %1450 = vst [vmem:[#allocation2 + $0xa8] sm:$0xf] %v1441_v39  ;;  %v755_v63 = vpop.f32.mrb[12].mxu1  ;;  %v1139_v62 = vmul.f32 %v1073_v49, %v852_v46 }
 0x101   : > { %v638_v61 = vpop.f32.mrb[14].mxu0  ;;  %v4812_v15 = vpop.f32.mrb[13].mxu1  ;;  %v1444_v39 = vsel %vm5385_vm9, %v1442_v48, %v1443_v43  ;;  %v1445_v54 = vrot.slane %v1443_v43, 4  ;;  %v756_v53 = vadd.f32 %v5294_v40, %v755_v63 }
 0x102   : > { %v1194_v7 = vrot.slane %v4399_v37, 5  ;;  %v4303_v5 = vrot.slane %v4399_v37, 10  ;;  %v4400_v11 = vpack.c.bf16 %v1110_v6, %v1110_v6  ;;  %v783_v36 = vmax.f32 %v636_v47, 0.0  ;;  %v4753_v10 = vpop.f32.mrb[15].mxu0  ;;  %v758_v34 = vpop.f32.mrb[14].mxu1 }
 0x103   : > { %v639_v51 = vadd.f32 %v5294_v40, %v638_v61  ;;  %1451 = vst [vmem:[#allocation2 + $0xac] sm:$0xf] %v1444_v39  ;;  %v4813_v37 = vpop.f32.mrb[15].mxu1  ;;  %1452 = vst [vmem:[#allocation2 + $0xb0] sm:$0x1] %v1445_v54  ;;  %v813_v47 = vmax.f32 %v756_v53, 0.0  ;;  %v4429_v61 = vpack.c.bf16 %v1139_v62, %v1139_v62  ;;  %v1140_v10 = vmul.f32 %v1078_v55, %v853_v38  ;;  %v1083_v54 = vpop.permute.xlu0 %1082 }
 0x104   : > { %v1195_v44 = vsel %vm5357_vm6, %v1193_v0, %v1194_v7  ;;  %v1196_v49 = vrot.slane %v1194_v7, 4  ;;  %v1214_v46 = vrot.slane %v4400_v11, 6  ;;  %v824_v41 = vmin.f32 %v783_v36, 6.0  ;;  %v5404_v15 = vld [vmem:[#allocation2 + $0x8] sm:$0x1] }
 0x105   : > { %1202 = vst [vmem:[#allocation2 + $0x10] sm:$0xf] %v1195_v44  ;;  %v784_v6 = vmax.f32 %v639_v51, 0.0  ;;  %v759_v63 = vadd.f32 %v5294_v40, %v758_v34  ;;  %v854_v11 = vmin.f32 %v813_v47, 6.0  ;;  %v1460_v51 = vrot.slane %v4429_v61, 7 }
 0x106   : > { %1203 = vst [vmem:[#allocation2 + $0x14] sm:$0x1] %v1196_v49  ;;  %v1215_v48 = vsel %vm5385_vm9, %v4303_v5, %v1214_v46  ;;  %v1216_v43 = vrot.slane %v1214_v46, 4  ;;  %v1111_v0 = vmul.f32 %v5238_v13, %v824_v41  ;;  %v4430_v39 = vpack.c.bf16 %v1140_v10, %v1140_v10  ;;  %v1088_v41 = vpop.permute.xlu1 %1087 }
 0x107   : > { %1224 = vst [vmem:[#allocation2 + $0x18] sm:$0xf] %v1215_v48  ;;  %v825_v36 = vmin.f32 %v784_v6, 6.0  ;;  %v643_v7 = vpop.f32.mrb[16].mxu0  ;;  %v814_v13 = vmax.f32 %v759_v63, 0.0  ;;  %v1461_v49 = vsel %vm5412_vm10, %v4342_v50, %v1460_v51  ;;  %v1462_v46 = vrot.slane %v1460_v51, 4 }
 0x108   : > { %v4401_v62 = vpack.c.bf16 %v1111_v0, %v1111_v0  ;;  %v644_v38 = vadd.f32 %v5294_v40, %v643_v7  ;;  %v4756_v5 = vpop.f32.mrb[17].mxu0  ;;  %v1463_v37 = vrot.slane %v4430_v39, 7  ;;  %v763_v6 = vpop.f32.mrb[16].mxu1  ;;  %1470 = vst [vmem:[#allocation2 + $0xb4] sm:$0xf] %v1461_v49 }
 0x109   : > { %v1112_v53 = vmul.f32 %v5240_v14, %v825_v36  ;;  %v646_v44 = vpop.f32.mrb[18].mxu0  ;;  %v4816_v63 = vpop.f32.mrb[17].mxu1  ;;  %v855_v36 = vmin.f32 %v814_v13, 6.0 }
 0x10a   : > { %v1217_v47 = vrot.slane %v4401_v62, 6  ;;  %v4306_v61 = vrot.slane %v4401_v62, 11  ;;  %v785_v10 = vmax.f32 %v644_v38, 0.0  ;;  %v647_v48 = vadd.f32 %v5294_v40, %v646_v44  ;;  %v4757_v0 = vpop.f32.mrb[19].mxu0  ;;  %v766_v34 = vpop.f32.mrb[18].mxu1 }
 0x10b   : > { %v4402_v7 = vpack.c.bf16 %v1112_v53, %v1112_v53  ;;  %v1464_v5 = vsel %vm5412_vm10, %v1462_v46, %v1463_v37  ;;  %v1465_v14 = vrot.slane %v1463_v37, 4  ;;  %v4817_v62 = vpop.f32.mrb[19].mxu1  ;;  %v764_v44 = vadd.f32 %v5294_v40, %v763_v6  ;;  %v1093_v6 = vpop.permute.xlu0 %1092 }
 0x10c   : > { %v1218_v50 = vsel %vm5385_vm9, %v1216_v43, %v1217_v47  ;;  %v1219_v51 = vrot.slane %v1217_v47, 4  ;;  %v826_v39 = vmin.f32 %v785_v10, 6.0  ;;  %v786_v33 = vmax.f32 %v647_v48, 0.0  ;;  %1471 = vst [vmem:[#allocation2 + $0xb8] sm:$0xf] %v1464_v5 }
 0x10d   : > { %1225 = vst [vmem:[#allocation2 + $0x1c] sm:$0xf] %v1218_v50  ;;  %v1237_v38 = vrot.slane %v4402_v7, 7  ;;  %1472 = vst [vmem:[#allocation2 + $0xbc] sm:$0x1] %v1465_v14  ;;  %v1141_v53 = vmul.f32 %v1083_v54, %v854_v11  ;;  %v767_v49 = vadd.f32 %v5294_v40, %v766_v34  ;;  %v1142_v37 = vmul.f32 %v1088_v41, %v855_v36  ;;  %v1098_v34 = vpop.permute.xlu1 %1097 }
 0x10e   : > { %1226 = vst [vmem:[#allocation2 + $0x20] sm:$0x1] %v1219_v51  ;;  %v1113_v13 = vmul.f32 %v5245_v16, %v826_v39  ;;  %v827_v46 = vmin.f32 %v786_v33, 6.0  ;;  %v6522_v43 = vunpack.c.l.bf16 %v5404_v15  ;;  %v815_v63 = vmax.f32 %v764_v44, 0.0 }
 0x10f   : > { %v1238_v10 = vsel %vm5412_vm10, %v4306_v61, %v1237_v38  ;;  %v1239_v48 = vrot.slane %v1237_v38, 4  ;;  %v651_v0 = vpop.f32.mrb[20].mxu0  ;;  %v816_v7 = vmax.f32 %v767_v49, 0.0  ;;  %v4491_v41 = vpack.c.bf16 %v1142_v37, %v1141_v53  ;;  %v771_v50 = vpop.f32.mrb[20].mxu1 }
 0x110   : > { %v1650_v47 = vmul.f32 %v5313_v24, %v6522_v43  ;;  %1247 = vst [vmem:[#allocation2 + $0x24] sm:$0xf] %v1238_v10  ;;  %v4403_v11 = vpack.c.bf16 %v1113_v13, %v1113_v13  ;;  %v1114_v54 = vmul.f32 %v5253_v20, %v827_v46  ;;  %v652_v16 = vadd.f32 %v5294_v40, %v651_v0  ;;  %v4760_v33 = vpop.f32.mrb[21].mxu0  ;;  %v4820_v49 = vpop.f32.mrb[21].mxu1 }
 0x111   : > { %v654_v5 = vpop.f32.mrb[22].mxu0  ;;  %v856_v14 = vmin.f32 %v815_v63, 6.0  ;;  %v857_v36 = vmin.f32 %v816_v7, 6.0  ;;  %v1745_v61 = vrot.slane %v5371_v52, 1  ;;  %v1746_v51 = vrot.slane %v5378_v2, 1  ;;  %4492 = vst [vmem:[#allocation2 + $0xc0] sm:$0xff] %v4491_v41  }
 0x112   : > { %v1240_v39 = vrot.slane %v4403_v11, 7  ;;  %v787_v62 = vmax.f32 %v652_v16, 0.0  ;;  %v655_v38 = vadd.f32 %v5294_v40, %v654_v5  ;;  %v4761_v44 = vpop.f32.mrb[23].mxu0  ;;  %v772_v20 = vadd.f32 %v5294_v40, %v771_v50  ;;  %v774_v43 = vpop.f32.mrb[22].mxu1 }
 0x113   : > { %v1143_v53 = vmul.f32 %v1093_v6, %v856_v14  ;;  %v1144_v13 = vmul.f32 %v1098_v34, %v857_v36  ;;  %v1747_v46 = vsel %vm1744_vm11, %v1745_v61, %v1746_v51  ;;  %v1748_v37 = vrot.slane %v1650_v47, 1  ;;  %v4821_v63 = vpop.f32.mrb[23].mxu1  ;;  %v1103_v34 = vpop.permute.xlu0 %1102 }
 0x114   : > { %v1241_v52 = vsel %vm5412_vm10, %v1239_v48, %v1240_v39  ;;  %v1242_v2 = vrot.slane %v1240_v39, 4  ;;  %v828_v10 = vmin.f32 %v787_v62, 6.0  ;;  %v788_v0 = vmax.f32 %v655_v38, 0.0 }
 0x115   : > { %1248 = vst [vmem:[#allocation2 + $0x28] sm:$0xf] %v1241_v52  ;;  %v817_v7 = vmax.f32 %v772_v20, 0.0  ;;  %v4433_v11 = vpack.c.bf16 %v1143_v53, %v1143_v53  ;;  %v4434_v16 = vpack.c.bf16 %v1144_v13, %v1144_v13  ;;  %v1749_v33 = vsel %vm1744_vm11, %v1746_v51, %v1748_v37 }
 0x116   : > { %1249 = vst [vmem:[#allocation2 + $0x2c] sm:$0x1] %v1242_v2  ;;  %v1115_v6 = vmul.f32 %v5255_v21, %v828_v10  ;;  %v829_v41 = vmin.f32 %v788_v0, 6.0  ;;  %v1857_v47 = vadd.f32 %v1747_v46, %v5352_v9  ;;  %v1858_v5 = vadd.f32 %v1749_v33, %v5366_v3  ;;  %v2166_v3 = vld [vmem:[#allocation2 + $0xc] sm:$0xff]  }
 0x117   : > { %v659_v48 = vpop.f32.mrb[24].mxu0  ;;  %v858_v14 = vmin.f32 %v817_v7, 6.0  ;;  %1487 = vst [vmem:[#allocation2 + $0xc8] sm:$0x1] %v4433_v11  ;;  %v4348_v36 = vrot.slane %v4433_v11, 9  ;;  %v1495_v50 = vrot.slane %v4434_v16, 5  ;;  %v6523_v61 = vunpack.c.l.bf16 %v5389_v8 }
 0x118   : > { %v5450_v62 = vpack.c.bf16 %v1115_v6, %v1114_v54  ;;  %v1116_v51 = vmul.f32 %v5251_v19, %v829_v41  ;;  %v660_v21 = vadd.f32 %v5294_v40, %v659_v48  ;;  %v4764_v38 = vpop.f32.mrb[25].mxu0  ;;  %v1926_v9 = vmul.f32 %v5345_v42, %v5318_v45  ;;  %v2298_v11 = vld [vmem:[#allocation2 + $0x14] sm:$0x1] }
 0x119   : > { %v1925_v39 = vmul.f32 %v5318_v45, %v6523_v61  ;;  %v662_v44 = vpop.f32.mrb[26].mxu0  ;;  %v1496_v20 = vsel %vm5357_vm6, %v4348_v36, %v1495_v50  ;;  %v1497_v49 = vrot.slane %v1495_v50, 4  ;;  %v1145_v53 = vmul.f32 %v1103_v34, %v858_v14 }
 0x11a   : > { %v6524_v8 = vunpack.c.l.bf16 %v5404_v15  ;;  %4477 = vst [vmem:[#allocation2 + $0x30] sm:$0xff] %v5450_v62   ;;  %v4406_v19 = vpack.c.bf16 %v1116_v51, %v1116_v51  ;;  %v789_v13 = vmax.f32 %v660_v21, 0.0  ;;  %v663_v46 = vadd.f32 %v5294_v40, %v662_v44  ;;  %v4765_v37 = vpop.f32.mrb[27].mxu0  ;;  %1505 = vst [vmem:[#allocation2 + $0xcc] sm:$0xf] %v1496_v20 }
 0x11b   : > { %v2022_v42 = vrot.slane %v1925_v39, 2  ;;  %v4435_v43 = vpack.c.bf16 %v1145_v53, %v1145_v53  ;;  %v2023_v52 = vrot.slane %v1926_v9, 2  ;;  %v2198_v10 = vunpack.c.l.bf16 %v2166_v3 }
 0x11c   : > { %v1927_v54 = vmul.f32 %v5318_v45, %v6524_v8  ;;  %1263 = vst [vmem:[#allocation2 + $0x38] sm:$0x1] %v4406_v19  ;;  %v4312_v0 = vrot.slane %v4406_v19, 9  ;;  %v830_v63 = vmin.f32 %v789_v13, 6.0  ;;  %v790_v7 = vmax.f32 %v663_v46, 0.0 }
 0x11d   : > { %v2199_v15 = vunpack.c.h.bf16 %v2166_v3  ;;  %v1498_v16 = vrot.slane %v4435_v43, 5  ;;  %v2024_v33 = vsel %vm2021_vm12, %v2022_v42, %v2023_v52  ;;  %v2234_v41 = vmul.f32 %v5326_v56, %v2198_v10 }
 0x11e   : > { %v2025_v2 = vrot.slane %v1927_v54, 2  ;;  %v1117_v34 = vmul.f32 %v5247_v17, %v830_v63  ;;  %v831_v48 = vmin.f32 %v790_v7, 6.0  ;;  %v2134_v14 = vadd.f32 %v2024_v33, %v1857_v47  ;;  %v2574_v17 = vld [vmem:[#allocation2 + $0xc] sm:$0xe] }
 0x11f   : > { %v1499_v50 = vsel %vm5357_vm6, %v1497_v49, %v1498_v16  ;;  %v1500_v61 = vrot.slane %v1498_v16, 4  ;;  %v667_v39 = vpop.f32.mrb[28].mxu0  ;;  %v2235_v51 = vmul.f32 %v5326_v56, %v2199_v15  ;;  %v2314_v21 = vunpack.c.l.bf16 %v2298_v11 }
 0x120   : > { %v2026_v6 = vsel %vm2021_vm12, %v2023_v52, %v2025_v2  ;;  %v4407_v38 = vpack.c.bf16 %v1117_v34, %v1117_v34  ;;  %v1118_v9 = vmul.f32 %v5249_v18, %v831_v48  ;;  %1506 = vst [vmem:[#allocation2 + $0xd0] sm:$0xf] %v1499_v50  ;;  %v668_v3 = vadd.f32 %v5294_v40, %v667_v39  ;;  %v4768_v44 = vpop.f32.mrb[29].mxu0 }
 0x121   : > { %v2135_v36 = vadd.f32 %v2026_v6, %v1858_v5  ;;  %v2266_v20 = vadd.f32 %v2234_v41, %v2134_v14  ;;  %1507 = vst [vmem:[#allocation2 + $0xd4] sm:$0x1] %v1500_v61  ;;  %v670_v47 = vpop.f32.mrb[30].mxu0  ;;  %v2334_v53 = vmul.f32 %v5328_v57, %v2198_v10  ;;  %v2335_v49 = vmul.f32 %v5328_v57, %v2199_v15  ;;  %v4558_v41 = vld [vmem:[#allocation2 + $0x18] sm:$0xff]  }
 0x122   : > { %v2336_v8 = vmul.f32 %v5328_v57, %v2314_v21  ;;  %v1271_v54 = vrot.slane %v4407_v38, 5  ;;  %v4408_v19 = vpack.c.bf16 %v1118_v9, %v1118_v9  ;;  %v791_v13 = vmax.f32 %v668_v3, 0.0  ;;  %v4769_v46 = vpop.f32.mrb[31].mxu0 }
 0x123   : > { %v2267_v5 = vadd.f32 %v2235_v51, %v2135_v36  ;;  %v671_v18 = vadd.f32 %v5294_v40, %v670_v47  ;;  %v2430_v37 = vrot.slane %v2334_v53, 1  ;;  %v2431_v42 = vrot.slane %v2335_v49, 1 }
 0x124   : > { %v2433_v43 = vrot.slane %v2336_v8, 1  ;;  %v2590_v52 = vunpack.c.l.bf16 %v2574_v17  ;;  %v1272_v2 = vsel %vm5357_vm6, %v4312_v0, %v1271_v54  ;;  %v1273_v63 = vrot.slane %v1271_v54, 4 }
 0x125   : > { %v1274_v7 = vrot.slane %v4408_v19, 5  ;;  %v4315_v10 = vrot.slane %v4408_v19, 10  ;;  %1281 = vst [vmem:[#allocation2 + $0x3c] sm:$0xf] %v1272_v2  ;;  %v832_v11 = vmin.f32 %v791_v13, 6.0  ;;  %v792_v16 = vmax.f32 %v671_v18, 0.0 }
 0x126   : > { %v2432_v33 = vsel %vm1744_vm11, %v2430_v37, %v2431_v42  ;;  %v2434_v6 = vsel %vm1744_vm11, %v2431_v42, %v2433_v43  ;;  %v2610_v39 = vmul.f32 %v5330_v59, %v2590_v52  ;;  %v2611_v51 = vmul.f32 %v5330_v59, %v2199_v15  ;;  %v2982_v52 = vld [vmem:[#allocation2 + $0x20] sm:$0x1] }
 0x127   : > { %v1275_v34 = vsel %vm5357_vm6, %v1273_v63, %v1274_v7  ;;  %v1276_v48 = vrot.slane %v1274_v7, 4  ;;  %v2542_v14 = vadd.f32 %v2432_v33, %v2266_v20  ;;  %v2543_v36 = vadd.f32 %v2434_v6, %v2267_v5  ;;  %v675_v61 = vpop.f32.mrb[32].mxu0 }
 0x128   : > { %1282 = vst [vmem:[#allocation2 + $0x40] sm:$0xf] %v1275_v34  ;;  %v1119_v0 = vmul.f32 %v5257_v22, %v832_v11  ;;  %v833_v50 = vmin.f32 %v792_v16, 6.0  ;;  %v676_v38 = vadd.f32 %v5294_v40, %v675_v61  ;;  %v4772_v9 = vpop.f32.mrb[33].mxu0  ;;  %v2612_v3 = vmul.f32 %v5330_v59, %v2314_v21  ;;  %v3258_v34 = vld [vmem:[#allocation2 + $0x18] sm:$0xe] }
 0x129   : > { %1283 = vst [vmem:[#allocation2 + $0x44] sm:$0x1] %v1276_v48  ;;  %v5487_v44 = vunpack.c.l.bf16 %v4558_v41  ;;  %v5489_v17 = vunpack.c.h.bf16 %v4558_v41  ;;  %v678_v22 = vpop.f32.mrb[34].mxu0  ;;  %v2706_v5 = vrot.slane %v2610_v39, 2  ;;  %v2707_v53 = vrot.slane %v2611_v51, 2 }
 0x12a   : > { %v4409_v20 = vpack.c.bf16 %v1119_v0, %v1119_v0  ;;  %v1120_v47 = vmul.f32 %v5259_v23, %v833_v50  ;;  %v793_v49 = vmax.f32 %v676_v38, 0.0  ;;  %v679_v8 = vadd.f32 %v5294_v40, %v678_v22  ;;  %v4773_v19 = vpop.f32.mrb[35].mxu0 }
 0x12b   : > { %v2709_v15 = vrot.slane %v2612_v3, 2  ;;  %v2918_v54 = vmul.f32 %v5487_v44, %v5336_v12  ;;  %v2708_v18 = vsel %vm2021_vm12, %v2706_v5, %v2707_v53  ;;  %v2919_v46 = vmul.f32 %v5489_v17, %v5336_v12 }
 0x12c   : > { %v1291_v13 = vrot.slane %v4409_v20, 6  ;;  %v4410_v21 = vpack.c.bf16 %v1120_v47, %v1120_v47  ;;  %v834_v37 = vmin.f32 %v793_v49, 6.0  ;;  %v794_v23 = vmax.f32 %v679_v8, 0.0 }
 0x12d   : > { %v2710_v42 = vsel %vm2021_vm12, %v2707_v53, %v2709_v15  ;;  %v2818_v43 = vadd.f32 %v2708_v18, %v2542_v14  ;;  %v2998_v50 = vunpack.c.l.bf16 %v2982_v52  ;;  %v3018_v14 = vmul.f32 %v5487_v44, %v5338_v1 }
 0x12e   : > { %v1292_v2 = vsel %vm5385_vm9, %v4315_v10, %v1291_v13  ;;  %v1293_v63 = vrot.slane %v1291_v13, 4  ;;  %v1294_v7 = vrot.slane %v4410_v21, 6  ;;  %v4318_v11 = vrot.slane %v4410_v21, 11 }
 0x12f   : > { %1301 = vst [vmem:[#allocation2 + $0x48] sm:$0xf] %v1292_v2  ;;  %v1121_v16 = vmul.f32 %v5264_v25, %v834_v37  ;;  %v835_v33 = vmin.f32 %v794_v23, 6.0  ;;  %v2819_v6 = vadd.f32 %v2710_v42, %v2543_v36  ;;  %v2950_v41 = vadd.f32 %v2918_v54, %v2818_v43  ;;  %v683_v61 = vpop.f32.mrb[36].mxu0  ;;  %v1514_v37 = vld [vmem:[#allocation2 + $0xc] sm:$0xff]  }
 0x130   : > { %v1295_v48 = vsel %vm5385_vm9, %v1293_v63, %v1294_v7  ;;  %v1296_v0 = vrot.slane %v1294_v7, 4  ;;  %v3019_v25 = vmul.f32 %v5489_v17, %v5338_v1  ;;  %v4776_v36 = vpop.f32.mrb[37].mxu0  ;;  %v3020_v38 = vmul.f32 %v5338_v1, %v2998_v50 }
 0x131   : > { %1302 = vst [vmem:[#allocation2 + $0x4c] sm:$0xf] %v1295_v48  ;;  %v4411_v10 = vpack.c.bf16 %v1121_v16, %v1121_v16  ;;  %v1122_v39 = vmul.f32 %v5266_v26, %v835_v33  ;;  %v2951_v51 = vadd.f32 %v2919_v46, %v2819_v6  ;;  %v3114_v9 = vrot.slane %v3018_v14, 1  ;;  %v686_v47 = vpop.f32.mrb[38].mxu0  ;;  %v1613_v33 = vld [vmem:[#allocation2 + $0x14] sm:$0x1] }
 0x132   : > { %1303 = vst [vmem:[#allocation2 + $0x50] sm:$0x1] %v1296_v0  ;;  %v3274_v3 = vunpack.c.l.bf16 %v3258_v34  ;;  %v3295_v20 = vmul.f32 %v5489_v17, %v5332_v60  ;;  %v3115_v53 = vrot.slane %v3019_v25, 1  ;;  %v3296_v49 = vmul.f32 %v5332_v60, %v2998_v50  ;;  %v4777_v26 = vpop.f32.mrb[39].mxu0  ;;  %v5526_v34 = vld [vmem:[%s6503_s5] ss:$0 sm:$0xff] }
 0x133   : > { %v1311_v22 = vrot.slane %v4411_v10, 7  ;;  %v4412_v5 = vpack.c.bf16 %v1122_v39, %v1122_v39  ;;  %v3117_v8 = vrot.slane %v3020_v38, 1  ;;  %v684_v19 = vadd.f32 %v5294_v40, %v683_v61 }
 0x134   : > { %v3294_v15 = vmul.f32 %v5332_v60, %v3274_v3  ;;  %v3391_v54 = vrot.slane %v3295_v20, 2  ;;  %v3116_v46 = vsel %vm1744_vm11, %v3114_v9, %v3115_v53  ;;  %v3393_v52 = vrot.slane %v3296_v49, 2  ;;  %v1890_v9 = vld [vmem:[#allocation2 + $0xc] sm:$0xe] }
 0x135   : > { %v1312_v13 = vsel %vm5412_vm10, %v4318_v11, %v1311_v22  ;;  %v1313_v21 = vrot.slane %v1311_v22, 4  ;;  %v1314_v18 = vrot.slane %v4412_v5, 7  ;;  %v3118_v23 = vsel %vm1744_vm11, %v3115_v53, %v3117_v8 }
 0x136   : > { %1321 = vst [vmem:[#allocation2 + $0x54] sm:$0xf] %v1312_v13  ;;  %v3226_v42 = vadd.f32 %v3116_v46, %v2950_v41  ;;  %v3390_v43 = vrot.slane %v3294_v15, 2  ;;  %v3227_v7 = vadd.f32 %v3118_v23, %v2951_v51  ;;  %v795_v16 = vmax.f32 %v684_v19, 0.0 }
 0x137   : > { %v1315_v2 = vsel %vm5412_vm10, %v1313_v21, %v1314_v18  ;;  %v1316_v63 = vrot.slane %v1314_v18, 4  ;;  %v3394_v6 = vsel %vm2021_vm12, %v3391_v54, %v3393_v52  ;;  %v687_v41 = vadd.f32 %v5294_v40, %v686_v47  ;;  %v5529_v0 = vpop.f32.mrb[40].mxu0  ;;  %v2299_v52 = vld [vmem:[#allocation2 + $0x20] sm:$0x1] }
 0x138   : > { %1322 = vst [vmem:[#allocation2 + $0x58] sm:$0xf] %v1315_v2  ;;  %v3392_v11 = vsel %vm2021_vm12, %v3390_v43, %v3391_v54  ;;  %v1546_v48 = vunpack.c.l.bf16 %v1514_v37  ;;  %v3503_v14 = vadd.f32 %v3394_v6, %v3227_v7  ;;  %v836_v61 = vmin.f32 %v795_v16, 6.0  ;;  %v4780_v39 = vpop.f32.mrb[41].mxu0 }
 0x139   : > { %1323 = vst [vmem:[#allocation2 + $0x5c] sm:$0x1] %v1316_v63  ;;  %v3502_v50 = vadd.f32 %v3392_v11, %v3226_v42  ;;  %v1547_v10 = vunpack.c.h.bf16 %v1514_v37  ;;  %v796_v51 = vmax.f32 %v687_v41, 0.0  ;;  %v1629_v36 = vunpack.c.l.bf16 %v1613_v33  ;;  %v5533_v3 = vpop.f32.mrb[42].mxu0 }
 0x13a   : > { %v1582_v25 = vmul.f32 %v5306_v58, %v1546_v48  ;;  %v1651_v38 = vmul.f32 %v5313_v24, %v1546_v48  ;;  %v3542_v20 = vadd.f32 %v5526_v34, %v3503_v14  ;;  %v1123_v47 = vmul.f32 %v5274_v30, %v836_v61  ;;  %v4781_v5 = vpop.f32.mrb[43].mxu0  ;;  %v2575_v48 = vld [vmem:[#allocation2 + $0x18] sm:$0xe] }
 0x13b   : > { %v3541_v40 = vadd.f32 %v5526_v34, %v3502_v50  ;;  %v1583_v22 = vmul.f32 %v5306_v58, %v1547_v10  ;;  %v837_v53 = vmin.f32 %v796_v51, 6.0  ;;  %v1652_v49 = vmul.f32 %v5313_v24, %v1547_v10 }
 0x13c   : > { %v1653_v26 = vmul.f32 %v5313_v24, %v1629_v36  ;;  %v1750_v8 = vrot.slane %v1651_v38, 1  ;;  %v3574_v54 = vmax.f32 %v3542_v20, 0.0  ;;  %v1906_v19 = vunpack.c.l.bf16 %v1890_v9 }
 0x13d   : > { %v3573_v15 = vmax.f32 %v3541_v40, 0.0  ;;  %v1929_v13 = vmul.f32 %v5318_v45, %v1547_v10  ;;  %v1124_v21 = vmul.f32 %v5276_v31, %v837_v53  ;;  %v1751_v18 = vrot.slane %v1652_v49, 1  ;;  %v2852_v53 = vld [vmem:[#allocation2 + $0x24] sm:$0xff]  }
 0x13e   : > { %v1753_v46 = vrot.slane %v1653_v26, 1  ;;  %v1930_v30 = vmul.f32 %v5318_v45, %v1629_v36  ;;  %v3606_v23 = vmin.f32 %v3574_v54, 6.0  ;;  %v1928_v42 = vmul.f32 %v5318_v45, %v1906_v19  ;;  %v2983_v54 = vld [vmem:[#allocation2 + $0x2c] sm:$0x1] }
 0x13f   : > { %v3605_v37 = vmin.f32 %v3573_v15, 6.0  ;;  %v2028_v43 = vrot.slane %v1929_v13, 2  ;;  %v4481_v2 = vpack.c.bf16 %v1124_v21, %v1123_v47  ;;  %v1752_v63 = vsel %vm1744_vm11, %v1750_v8, %v1751_v18  ;;  %v5547_v33 = vpop.f32.mrb[44].mxu0 }
 0x140   : > { %v1754_v7 = vsel %vm1744_vm11, %v1751_v18, %v1753_v46  ;;  %v2030_v16 = vrot.slane %v1930_v30, 2  ;;  %v1859_v31 = vadd.f32 %v1752_v63, %v1582_v25  ;;  %v2027_v41 = vrot.slane %v1928_v42, 2  ;;  %v4784_v50 = vpop.f32.mrb[45].mxu0  ;;  %v3259_v63 = vld [vmem:[#allocation2 + $0x24] sm:$0xe] }
 0x141   : > { %v3637_v11 = vpack.c.bf16 %v3606_v23, %v3605_v37  ;;  %v1860_v6 = vadd.f32 %v1754_v7, %v1583_v22  ;;  %4482 = vst [vmem:[#allocation2 + $0x60] sm:$0xff] %v4481_v2   ;;  %v2236_v61 = vmul.f32 %v5487_v44, %v5326_v56  ;;  %v2237_v10 = vmul.f32 %v5489_v17, %v5326_v56  ;;  %v5554_v51 = vpop.f32.mrb[46].mxu0 }
 0x142   : > { %v2031_v14 = vsel %vm2021_vm12, %v2028_v43, %v2030_v16  ;;  %v2315_v39 = vunpack.c.l.bf16 %v2299_v52  ;;  %v2029_v36 = vsel %vm2021_vm12, %v2027_v41, %v2028_v43  ;;  %v2337_v38 = vmul.f32 %v5487_v44, %v5328_v57  ;;  %v4785_v40 = vpop.f32.mrb[47].mxu0 }
 0x143   : > { %4838 = vmatprep.mubr.bf16.mxu1 %v3637_v11  ;;  %v2137_v25 = vadd.f32 %v2031_v14, %v1860_v6  ;;  %v2338_v9 = vmul.f32 %v5489_v17, %v5328_v57  ;;  %v2136_v20 = vadd.f32 %v2029_v36, %v1859_v31  ;;  %v2591_v22 = vunpack.c.l.bf16 %v2575_v48 }
 0x144   : > { %v2339_v47 = vmul.f32 %v5328_v57, %v2315_v39  ;;  %v2614_v5 = vmul.f32 %v5489_v17, %v5330_v59  ;;  %v2435_v26 = vrot.slane %v2337_v38, 1  ;;  %v2615_v15 = vmul.f32 %v5330_v59, %v2315_v39 }
 0x145   : > { %v2269_v49 = vadd.f32 %v2237_v10, %v2137_v25  ;;  %v2436_v8 = vrot.slane %v2338_v9, 1  ;;  %v2268_v19 = vadd.f32 %v2236_v61, %v2136_v20  ;;  %v2613_v21 = vmul.f32 %v5330_v59, %v2591_v22 }
 0x146   : > { %v2438_v13 = vrot.slane %v2339_v47, 1  ;;  %v2712_v18 = vrot.slane %v2614_v5, 2  ;;  %v2714_v30 = vrot.slane %v2615_v15, 2  ;;  %v2884_v37 = vunpack.c.l.bf16 %v2852_v53 }
 0x147   : > { %v2437_v46 = vsel %vm1744_vm11, %v2435_v26, %v2436_v8  ;;  %v2885_v23 = vunpack.c.h.bf16 %v2852_v53  ;;  %v2711_v52 = vrot.slane %v2613_v21, 2  ;;  %v2999_v2 = vunpack.c.l.bf16 %v2983_v54  ;;  %v5568_v7 = vpop.f32.mrb[48].mxu0 }
 0x148   : > { %v2439_v42 = vsel %vm1744_vm11, %v2436_v8, %v2438_v13  ;;  %v2544_v43 = vadd.f32 %v2437_v46, %v2268_v19  ;;  %v2715_v11 = vsel %vm2021_vm12, %v2712_v18, %v2714_v30  ;;  %v2920_v31 = vmul.f32 %v5336_v12, %v2884_v37  ;;  %v4788_v41 = vpop.f32.mrb[49].mxu0  ;;  %v1614_v8 = vld [vmem:[#allocation2 + $0x20] sm:$0x1] }
 0x149   : > { %v2545_v16 = vadd.f32 %v2439_v42, %v2269_v49  ;;  %v2921_v6 = vmul.f32 %v5336_v12, %v2885_v23  ;;  %v2713_v48 = vsel %vm2021_vm12, %v2711_v52, %v2712_v18  ;;  %v3021_v50 = vmul.f32 %v5338_v1, %v2884_v37  ;;  %v5577_v10 = vpop.f32.mrb[50].mxu0  ;;  %v5587_v13 = vld [vmem:[%s6501_s3] ss:$0 sm:$0xff] }
 0x14a   : > { %v3022_v14 = vmul.f32 %v5338_v1, %v2885_v23  ;;  %v3023_v61 = vmul.f32 %v5338_v1, %v2999_v2  ;;  %v2820_v39 = vadd.f32 %v2713_v48, %v2544_v43  ;;  %v3275_v25 = vunpack.c.l.bf16 %v3259_v63  ;;  %v4789_v9 = vpop.f32.mrb[51].mxu0 }
 0x14b   : > { %v2821_v36 = vadd.f32 %v2715_v11, %v2545_v16  ;;  %v3298_v38 = vmul.f32 %v5332_v60, %v2885_v23  ;;  %v3119_v40 = vrot.slane %v3021_v50, 1  ;;  %v3299_v22 = vmul.f32 %v5332_v60, %v2999_v2  ;;  %v1891_v23 = vld [vmem:[#allocation2 + $0x18] sm:$0xe] }
 0x14c   : > { %v3120_v20 = vrot.slane %v3022_v14, 1  ;;  %v3122_v47 = vrot.slane %v3023_v61, 1  ;;  %v2952_v5 = vadd.f32 %v2920_v31, %v2820_v39  ;;  %v3297_v49 = vmul.f32 %v5332_v60, %v3275_v25 }
 0x14d   : > { %v2953_v53 = vadd.f32 %v2921_v6, %v2821_v36  ;;  %v3396_v26 = vrot.slane %v3298_v38, 2  ;;  %v3398_v19 = vrot.slane %v3299_v22, 2  ;;  %v692_v21 = vadd.f32 %v5587_v13, %v5529_v0 }
 0x14e   : > { %v3121_v15 = vsel %vm1744_vm11, %v3119_v40, %v3120_v20  ;;  %v3123_v54 = vsel %vm1744_vm11, %v3120_v20, %v3122_v47  ;;  %v3395_v30 = vrot.slane %v3297_v49, 2  ;;  %v1584_v37 = vmul.f32 %v5487_v44, %v5306_v58 }
 0x14f   : > { %v3228_v18 = vadd.f32 %v3121_v15, %v2952_v5  ;;  %v3229_v46 = vadd.f32 %v3123_v54, %v2953_v53  ;;  %v3399_v42 = vsel %vm2021_vm12, %v3396_v26, %v3398_v19  ;;  %v797_v43 = vmax.f32 %v692_v21, 0.0  ;;  %v5596_v63 = vpop.f32.mrb[52].mxu0  ;;  %v2300_v19 = vld [vmem:[#allocation2 + $0x2c] sm:$0x1]  ;;  %v2576_v21 = vld [vmem:[#allocation2 + $0x24] sm:$0xe] }
 0x150   : > { %v1585_v52 = vmul.f32 %v5489_v17, %v5306_v58  ;;  %v1630_v2 = vunpack.c.l.bf16 %v1614_v8  ;;  %v3397_v16 = vsel %vm2021_vm12, %v3395_v30, %v3396_v26  ;;  %v1654_v0 = vmul.f32 %v5487_v44, %v5313_v24  ;;  %v4792_v6 = vpop.f32.mrb[53].mxu0  ;;  %v2170_v26 = vld [vmem:[#allocation2 + $0x24] sm:$0xff]  }
 0x151   : > { %v3505_v11 = vadd.f32 %v3399_v42, %v3229_v46  ;;  %v1655_v31 = vmul.f32 %v5489_v17, %v5313_v24  ;;  %v3504_v41 = vadd.f32 %v3397_v16, %v3228_v18  ;;  %v838_v48 = vmin.f32 %v797_v43, 6.0  ;;  %v5604_v61 = vpop.f32.mrb[54].mxu0 }
 0x152   : > { %v1656_v50 = vmul.f32 %v5313_v24, %v1630_v2  ;;  %v1907_v14 = vunpack.c.l.bf16 %v1891_v23  ;;  %v1755_v36 = vrot.slane %v1654_v0, 1  ;;  %v1932_v38 = vmul.f32 %v5489_v17, %v5318_v45  ;;  %v4793_v9 = vpop.f32.mrb[55].mxu0 }
 0x153   : > { %v3544_v39 = vadd.f32 %v5526_v34, %v3505_v11  ;;  %v1756_v25 = vrot.slane %v1655_v31, 1  ;;  %v3543_v44 = vadd.f32 %v5526_v34, %v3504_v41  ;;  %v1125_v40 = vmul.f32 %v5272_v29, %v838_v48 }
 0x154   : > { %v1758_v20 = vrot.slane %v1656_v50, 1  ;;  %v1931_v47 = vmul.f32 %v5318_v45, %v1907_v14  ;;  %v1933_v53 = vmul.f32 %v5318_v45, %v1630_v2  ;;  %v2033_v49 = vrot.slane %v1932_v38, 2 }
 0x155   : > { %v3576_v22 = vmax.f32 %v3544_v39, 0.0  ;;  %v1757_v5 = vsel %vm1744_vm11, %v1755_v36, %v1756_v25  ;;  %v3575_v8 = vmax.f32 %v3543_v44, 0.0  ;;  %v5614_v15 = vpack.c.bf16 %v1125_v40, %v1125_v40 }
 0x156   : > { %v1759_v17 = vsel %vm1744_vm11, %v1756_v25, %v1758_v20  ;;  %v1861_v54 = vadd.f32 %v1757_v5, %v1584_v37  ;;  %v2032_v46 = vrot.slane %v1931_v47, 2  ;;  %v2035_v30 = vrot.slane %v1933_v53, 2 }
 0x157   : > { %v3608_v18 = vmin.f32 %v3576_v22, 6.0  ;;  %v1862_v29 = vadd.f32 %v1759_v17, %v1585_v52  ;;  %v3607_v23 = vmin.f32 %v3575_v8, 6.0  ;;  %1338 = vst [vmem:[#allocation2 + $0x68] sm:$0x1] %v5614_v15  ;;  %v4324_v42 = vrot.slane %v5614_v15, 9  ;;  %v5619_v16 = vpop.f32.mrb[56].mxu0 }
 0x158   : > { %v2202_v43 = vunpack.c.l.bf16 %v2170_v26  ;;  %v2203_v2 = vunpack.c.h.bf16 %v2170_v26  ;;  %v2034_v11 = vsel %vm2021_vm12, %v2032_v46, %v2033_v49  ;;  %v2036_v0 = vsel %vm2021_vm12, %v2033_v49, %v2035_v30  ;;  %v4796_v6 = vpop.f32.mrb[57].mxu0  ;;  %v2984_v22 = vld [vmem:[#allocation2 + $0x38] sm:$0x1]  ;;  %v3260_v30 = vld [vmem:[#allocation2 + $0x30] sm:$0xe] }
 0x159   : > { %v2316_v37 = vunpack.c.l.bf16 %v2300_v19  ;;  %v2592_v31 = vunpack.c.l.bf16 %v2576_v21  ;;  %v3638_v41 = vpack.c.bf16 %v3608_v18, %v3607_v23  ;;  %v2138_v52 = vadd.f32 %v2034_v11, %v1861_v54  ;;  %v5624_v14 = vpop.f32.mrb[58].mxu0 }
 0x15a   : > { %v2139_v48 = vadd.f32 %v2036_v0, %v1862_v29  ;;  %v2238_v50 = vmul.f32 %v5326_v56, %v2202_v43  ;;  %v2239_v39 = vmul.f32 %v5326_v56, %v2203_v2  ;;  %v2340_v36 = vmul.f32 %v5328_v57, %v2202_v43  ;;  %v4797_v9 = vpop.f32.mrb[59].mxu0 }
 0x15b   : > { %v2341_v25 = vmul.f32 %v5328_v57, %v2203_v2  ;;  %v2342_v38 = vmul.f32 %v5328_v57, %v2316_v37  ;;  %4839 = vmatmul.mubr.bf16.vlgmr.msra.gmra.mrb[24].mxu1 %v3638_v41  ;;  %v2616_v40 = vmul.f32 %v5330_v59, %v2592_v31  ;;  %v2617_v20 = vmul.f32 %v5330_v59, %v2203_v2 }
 0x15c   : > { %v2270_v44 = vadd.f32 %v2238_v50, %v2138_v52  ;;  %v2618_v47 = vmul.f32 %v5330_v59, %v2316_v37  ;;  %v2271_v5 = vadd.f32 %v2239_v39, %v2139_v48  ;;  %v2440_v53 = vrot.slane %v2340_v36, 1 }
 0x15d   : > { %v2441_v49 = vrot.slane %v2341_v25, 1  ;;  %v2443_v26 = vrot.slane %v2342_v38, 1  ;;  %v2716_v8 = vrot.slane %v2616_v40, 2  ;;  %v2717_v17 = vrot.slane %v2617_v20, 2 }
 0x15e   : > { %v2719_v54 = vrot.slane %v2618_v47, 2  ;;  %v4563_v19 = vunpack.c.l.bf16 %v5450_v62  ;;  %v4564_v29 = vunpack.c.h.bf16 %v5450_v62  ;;  %v3000_v46 = vunpack.c.l.bf16 %v2984_v22 }
 0x15f   : > { %v2442_v21 = vsel %vm1744_vm11, %v2440_v53, %v2441_v49  ;;  %v2444_v18 = vsel %vm1744_vm11, %v2441_v49, %v2443_v26  ;;  %v2718_v2 = vsel %vm2021_vm12, %v2716_v8, %v2717_v17  ;;  %v3276_v48 = vunpack.c.l.bf16 %v3260_v30  ;;  %v1518_v53 = vld [vmem:[#allocation2 + $0x24] sm:$0xff]  }
 0x160   : > { %v2546_v23 = vadd.f32 %v2442_v21, %v2270_v44  ;;  %v2547_v43 = vadd.f32 %v2444_v18, %v2271_v5  ;;  %v2720_v11 = vsel %vm2021_vm12, %v2717_v17, %v2719_v54  ;;  %v2922_v0 = vmul.f32 %v4563_v19, %v5336_v12 }
 0x161   : > { %v2923_v37 = vmul.f32 %v4564_v29, %v5336_v12  ;;  %v3024_v31 = vmul.f32 %v4563_v19, %v5338_v1  ;;  %v3025_v6 = vmul.f32 %v4564_v29, %v5338_v1  ;;  %v3026_v62 = vmul.f32 %v5338_v1, %v3000_v46 }
 0x162   : > { %v2822_v41 = vadd.f32 %v2718_v2, %v2546_v23  ;;  %v2823_v52 = vadd.f32 %v2720_v11, %v2547_v43  ;;  %v3301_v36 = vmul.f32 %v4564_v29, %v5332_v60  ;;  %v3302_v25 = vmul.f32 %v5332_v60, %v3000_v46  ;;  %v1615_v29 = vld [vmem:[#allocation2 + $0x2c] sm:$0x1] }
 0x163   : > { %v3124_v50 = vrot.slane %v3024_v31, 1  ;;  %v3125_v39 = vrot.slane %v3025_v6, 1  ;;  %v3127_v44 = vrot.slane %v3026_v62, 1  ;;  %v3300_v40 = vmul.f32 %v5332_v60, %v3276_v48 }
 0x164   : > { %v2954_v38 = vadd.f32 %v2922_v0, %v2822_v41  ;;  %v2955_v9 = vadd.f32 %v2923_v37, %v2823_v52  ;;  %v3401_v47 = vrot.slane %v3301_v36, 2  ;;  %v3403_v22 = vrot.slane %v3302_v25, 2 }
 0x165   : > { %v3126_v20 = vsel %vm1744_vm11, %v3124_v50, %v3125_v39  ;;  %v695_v5 = vadd.f32 %v5587_v13, %v5533_v3  ;;  %v3128_v49 = vsel %vm1744_vm11, %v3125_v39, %v3127_v44  ;;  %v3400_v8 = vrot.slane %v3300_v40, 2 }
 0x166   : > { %v3230_v26 = vadd.f32 %v3126_v20, %v2954_v38  ;;  %v700_v17 = vadd.f32 %v5587_v13, %v5547_v33  ;;  %v3231_v54 = vadd.f32 %v3128_v49, %v2955_v9  ;;  %v3404_v19 = vsel %vm2021_vm12, %v3401_v47, %v3403_v22 }
 0x167   : > { %v798_v21 = vmax.f32 %v695_v5, 0.0  ;;  %v703_v18 = vadd.f32 %v5587_v13, %v5554_v51  ;;  %v3402_v46 = vsel %vm2021_vm12, %v3400_v8, %v3401_v47  ;;  %v1550_v3 = vunpack.c.l.bf16 %v1518_v53 }
 0x168   : > { %v799_v30 = vmax.f32 %v700_v17, 0.0  ;;  %v1551_v23 = vunpack.c.h.bf16 %v1518_v53  ;;  %v3506_v43 = vadd.f32 %v3402_v46, %v3230_v26  ;;  %v3507_v2 = vadd.f32 %v3404_v19, %v3231_v54 }
 0x169   : > { %v839_v11 = vmin.f32 %v798_v21, 6.0  ;;  %v800_v0 = vmax.f32 %v703_v18, 0.0  ;;  %v1586_v33 = vmul.f32 %v5306_v58, %v1550_v3  ;;  %v1631_v6 = vunpack.c.l.bf16 %v1615_v29  ;;  %v4661_v29 = vld [vmem:[#allocation2 + $0x30] sm:$0xff]  }
 0x16a   : > { %v840_v37 = vmin.f32 %v799_v30, 6.0  ;;  %v1587_v31 = vmul.f32 %v5306_v58, %v1551_v23  ;;  %v3545_v41 = vadd.f32 %v5526_v34, %v3506_v43  ;;  %v3546_v51 = vadd.f32 %v5526_v34, %v3507_v2  ;;  %v2301_v2 = vld [vmem:[#allocation2 + $0x38] sm:$0x1] }
 0x16b   : > { %v1126_v52 = vmul.f32 %v5268_v27, %v839_v11  ;;  %v841_v62 = vmin.f32 %v800_v0, 6.0  ;;  %v1657_v50 = vmul.f32 %v5313_v24, %v1550_v3  ;;  %v1658_v39 = vmul.f32 %v5313_v24, %v1551_v23  ;;  %v2577_v11 = vld [vmem:[#allocation2 + $0x30] sm:$0xe]  ;;  %v2856_v0 = vld [vmem:[#allocation2 + $0x3c] sm:$0xff]  }
 0x16c   : > { %v1127_v48 = vmul.f32 %v5270_v28, %v840_v37  ;;  %v1659_v36 = vmul.f32 %v5313_v24, %v1631_v6  ;;  %v3577_v25 = vmax.f32 %v3545_v41, 0.0  ;;  %v3578_v38 = vmax.f32 %v3546_v51, 0.0  ;;  %v1892_v28 = vld [vmem:[#allocation2 + $0x24] sm:$0xe] }
 0x16d   : > { %v4416_v9 = vpack.c.bf16 %v1126_v52, %v1126_v52  ;;  %v1128_v44 = vmul.f32 %v5278_v32, %v841_v62  ;;  %v1760_v20 = vrot.slane %v1657_v50, 1  ;;  %v1761_v47 = vrot.slane %v1658_v39, 1 }
 0x16e   : > { %v4417_v40 = vpack.c.bf16 %v1127_v48, %v1127_v48  ;;  %v1763_v22 = vrot.slane %v1659_v36, 1  ;;  %v3609_v5 = vmin.f32 %v3577_v25, 6.0  ;;  %v3610_v27 = vmin.f32 %v3578_v38, 6.0 }
 0x16f   : > { %v1346_v53 = vrot.slane %v4416_v9, 5  ;;  %v4418_v49 = vpack.c.bf16 %v1128_v44, %v1128_v44  ;;  %v1762_v17 = vsel %vm1744_vm11, %v1760_v20, %v1761_v47  ;;  %v1908_v43 = vunpack.c.l.bf16 %v1892_v28 }
 0x170   : > { %v1349_v26 = vrot.slane %v4417_v40, 5  ;;  %v4327_v8 = vrot.slane %v4417_v40, 10  ;;  %v1764_v54 = vsel %vm1744_vm11, %v1761_v47, %v1763_v22  ;;  %v3639_v19 = vpack.c.bf16 %v3610_v27, %v3609_v5 }
 0x171   : > { %v1347_v32 = vsel %vm5357_vm6, %v4324_v42, %v1346_v53  ;;  %v1348_v21 = vrot.slane %v1346_v53, 4  ;;  %v5673_v18 = vrot.slane %v4418_v49, 6  ;;  %v1863_v30 = vadd.f32 %v1762_v17, %v1586_v33 }
 0x172   : > { %1356 = vst [vmem:[#allocation2 + $0x6c] sm:$0xf] %v1347_v32  ;;  %v1351_v46 = vrot.slane %v1349_v26, 4  ;;  %v1864_v3 = vadd.f32 %v1764_v54, %v1587_v31  ;;  %4842 = vmatprep.mubr.bf16.mxu1 %v3639_v19  ;;  %v1935_v41 = vmul.f32 %v5318_v45, %v1551_v23  ;;  %v1934_v33 = vmul.f32 %v5318_v45, %v1908_v43  ;;  %v2985_v19 = vld [vmem:[#allocation2 + $0x44] sm:$0x1] }
 0x173   : > { %v1350_v37 = vsel %vm5357_vm6, %v1348_v21, %v1349_v26  ;;  %v1367_v15 = vsel %vm5385_vm9, %v4327_v8, %v5673_v18  ;;  %v1368_v42 = vrot.slane %v5673_v18, 4  ;;  %v1936_v31 = vmul.f32 %v5318_v45, %v1631_v6  ;;  %v3261_v43 = vld [vmem:[#allocation2 + $0x3c] sm:$0xe] }
 0x174   : > { %1357 = vst [vmem:[#allocation2 + $0x70] sm:$0xf] %v1350_v37  ;;  %1358 = vst [vmem:[#allocation2 + $0x74] sm:$0x1] %v1351_v46  ;;  %v5684_v51 = vunpack.c.l.bf16 %v4661_v29  ;;  %v5686_v52 = vunpack.c.h.bf16 %v4661_v29  ;;  %v2038_v62 = vrot.slane %v1935_v41, 2  ;;  %v2317_v48 = vunpack.c.l.bf16 %v2301_v2 }
 0x175   : > { %1376 = vst [vmem:[#allocation2 + $0x78] sm:$0xf] %v1367_v15  ;;  %v2593_v50 = vunpack.c.l.bf16 %v2577_v11  ;;  %v2888_v39 = vunpack.c.l.bf16 %v2856_v0  ;;  %v2037_v36 = vrot.slane %v1934_v33, 2  ;;  %v2040_v25 = vrot.slane %v1936_v31, 2 }
 0x176   : > { %v2240_v23 = vmul.f32 %v5684_v51, %v5326_v56  ;;  %v2241_v38 = vmul.f32 %v5686_v52, %v5326_v56  ;;  %v2343_v9 = vmul.f32 %v5684_v51, %v5328_v57  ;;  %v2344_v6 = vmul.f32 %v5686_v52, %v5328_v57 }
 0x177   : > { %v2345_v44 = vmul.f32 %v5328_v57, %v2317_v48  ;;  %v2619_v40 = vmul.f32 %v5330_v59, %v2593_v50  ;;  %v2039_v20 = vsel %vm2021_vm12, %v2037_v36, %v2038_v62  ;;  %v2041_v47 = vsel %vm2021_vm12, %v2038_v62, %v2040_v25 }
 0x178   : > { %v2620_v22 = vmul.f32 %v5686_v52, %v5330_v59  ;;  %v2621_v5 = vmul.f32 %v5330_v59, %v2317_v48  ;;  %v2140_v27 = vadd.f32 %v2039_v20, %v1863_v30  ;;  %v2141_v53 = vadd.f32 %v2041_v47, %v1864_v3 }
 0x179   : > { %v2445_v49 = vrot.slane %v2343_v9, 1  ;;  %v2446_v28 = vrot.slane %v2344_v6, 1  ;;  %v2448_v26 = vrot.slane %v2345_v44, 1  ;;  %v2721_v8 = vrot.slane %v2619_v40, 2 }
 0x17a   : > { %v2722_v17 = vrot.slane %v2620_v22, 2  ;;  %v2724_v54 = vrot.slane %v2621_v5, 2  ;;  %v2272_v32 = vadd.f32 %v2240_v23, %v2140_v27  ;;  %v2273_v21 = vadd.f32 %v2241_v38, %v2141_v53 }
 0x17b   : > { %v2447_v29 = vsel %vm1744_vm11, %v2445_v49, %v2446_v28  ;;  %v2889_v46 = vunpack.c.h.bf16 %v2856_v0  ;;  %v2449_v2 = vsel %vm1744_vm11, %v2446_v28, %v2448_v26  ;;  %v2924_v3 = vmul.f32 %v5336_v12, %v2888_v39  ;;  %v1616_v49 = vld [vmem:[#allocation2 + $0x38] sm:$0x1] }
 0x17c   : > { %v2723_v11 = vsel %vm2021_vm12, %v2721_v8, %v2722_v17  ;;  %v2725_v30 = vsel %vm2021_vm12, %v2722_v17, %v2724_v54  ;;  %v2548_v37 = vadd.f32 %v2447_v29, %v2272_v32  ;;  %v2549_v15 = vadd.f32 %v2449_v2, %v2273_v21  ;;  %v1893_v29 = vld [vmem:[#allocation2 + $0x30] sm:$0xe] }
 0x17d   : > { %v2925_v41 = vmul.f32 %v5336_v12, %v2889_v46  ;;  %v3001_v33 = vunpack.c.l.bf16 %v2985_v19  ;;  %v3027_v31 = vmul.f32 %v5338_v1, %v2888_v39  ;;  %v3028_v62 = vmul.f32 %v5338_v1, %v2889_v46 }
 0x17e   : > { %v3277_v48 = vunpack.c.l.bf16 %v3261_v43  ;;  %v3304_v0 = vmul.f32 %v5332_v60, %v2889_v46  ;;  %v2824_v50 = vadd.f32 %v2723_v11, %v2548_v37  ;;  %v2825_v36 = vadd.f32 %v2725_v30, %v2549_v15 }
 0x17f   : > { %v3029_v25 = vmul.f32 %v5338_v1, %v3001_v33  ;;  %v3305_v23 = vmul.f32 %v5332_v60, %v3001_v33  ;;  %v3129_v38 = vrot.slane %v3027_v31, 1  ;;  %v3130_v9 = vrot.slane %v3028_v62, 1  ;;  %v6525_v62 = vld [vmem:[#allocation4_spill] sm:$0xff] }
 0x180   : > { %v3303_v6 = vmul.f32 %v5332_v60, %v3277_v48  ;;  %v3406_v44 = vrot.slane %v3304_v0, 2  ;;  %v2956_v40 = vadd.f32 %v2924_v3, %v2824_v50  ;;  %v2957_v20 = vadd.f32 %v2925_v41, %v2825_v36  ;;  %v6526_v0 = vld [vmem:[#allocation5_spill] sm:$0xff] }
 0x181   : > { %v3132_v47 = vrot.slane %v3029_v25, 1  ;;  %v3408_v39 = vrot.slane %v3305_v23, 2  ;;  %v3131_v22 = vsel %vm1744_vm11, %v3129_v38, %v3130_v9  ;;  %v708_v27 = vadd.f32 %v5587_v13, %v5568_v7 }
 0x182   : > { %v3405_v5 = vrot.slane %v3303_v6, 2  ;;  %v711_v53 = vadd.f32 %v5587_v13, %v5577_v10  ;;  %v3232_v26 = vadd.f32 %v3131_v22, %v2956_v40  ;;  %v1588_v17 = vmul.f32 %v5684_v51, %v5306_v58 }
 0x183   : > { %v3133_v28 = vsel %vm1744_vm11, %v3130_v9, %v3132_v47  ;;  %v3409_v8 = vsel %vm2021_vm12, %v3406_v44, %v3408_v39  ;;  %v801_v32 = vmax.f32 %v708_v27, 0.0  ;;  %v1589_v7 = vmul.f32 %v5686_v52, %v5306_v58 }
 0x184   : > { %v3233_v54 = vadd.f32 %v3133_v28, %v2957_v20  ;;  %v3407_v19 = vsel %vm2021_vm12, %v3405_v5, %v3406_v44  ;;  %v802_v21 = vmax.f32 %v711_v53, 0.0  ;;  %v1632_v10 = vunpack.c.l.bf16 %v1616_v49  ;;  %v2174_v28 = vld [vmem:[#allocation2 + $0x3c] sm:$0xff]  }
 0x185   : > { %v3508_v46 = vadd.f32 %v3407_v19, %v3232_v26  ;;  %v1660_v43 = vmul.f32 %v5684_v51, %v5313_v24  ;;  %v842_v11 = vmin.f32 %v801_v32, 6.0  ;;  %v1661_v3 = vmul.f32 %v5686_v52, %v5313_v24  ;;  %v2302_v19 = vld [vmem:[#allocation2 + $0x44] sm:$0x1] }
 0x186   : > { %v3509_v2 = vadd.f32 %v3409_v8, %v3233_v54  ;;  %v843_v30 = vmin.f32 %v802_v21, 6.0  ;;  %v1662_v15 = vmul.f32 %v5313_v24, %v1632_v10  ;;  %v1909_v33 = vunpack.c.l.bf16 %v1893_v29 }
 0x187   : > { %v3547_v37 = vadd.f32 %v5526_v34, %v3508_v46  ;;  %v1765_v41 = vrot.slane %v1660_v43, 1  ;;  %v1129_v48 = vmul.f32 %v6525_v62, %v842_v11  ;;  %v1766_v36 = vrot.slane %v1661_v3, 1  ;;  %v2578_v46 = vld [vmem:[#allocation2 + $0x3c] sm:$0xe] }
 0x188   : > { %v3548_v31 = vadd.f32 %v5526_v34, %v3509_v2  ;;  %v1130_v50 = vmul.f32 %v6526_v0, %v843_v30  ;;  %v1768_v25 = vrot.slane %v1662_v15, 1  ;;  %v1937_v23 = vmul.f32 %v5318_v45, %v1909_v33 }
 0x189   : > { %v3579_v51 = vmax.f32 %v3547_v37, 0.0  ;;  %v1938_v38 = vmul.f32 %v5686_v52, %v5318_v45  ;;  %v4419_v6 = vpack.c.bf16 %v1129_v48, %v1129_v48  ;;  %v1767_v40 = vsel %vm1744_vm11, %v1765_v41, %v1766_v36 }
 0x18a   : > { %v3580_v9 = vmax.f32 %v3548_v31, 0.0  ;;  %v4420_v44 = vpack.c.bf16 %v1130_v50, %v1130_v50  ;;  %v1769_v47 = vsel %vm1744_vm11, %v1766_v36, %v1768_v25  ;;  %v1865_v39 = vadd.f32 %v1767_v40, %v1588_v17  ;;  %v2986_v25 = vld [vmem:[#allocation2 + $0x50] sm:$0x1] }
 0x18b   : > { %v3611_v20 = vmin.f32 %v3579_v51, 6.0  ;;  %v1939_v22 = vmul.f32 %v5318_v45, %v1632_v10  ;;  %v1369_v27 = vrot.slane %v4419_v6, 6  ;;  %v4330_v53 = vrot.slane %v4419_v6, 11  ;;  %v4669_v10 = vld [vmem:[#allocation2 + $0x48] sm:$0xff]  }
 0x18c   : > { %v3612_v5 = vmin.f32 %v3580_v9, 6.0  ;;  %v5742_v49 = vrot.slane %v4420_v44, 7  ;;  %v1866_v26 = vadd.f32 %v1769_v47, %v1589_v7  ;;  %v2042_v8 = vrot.slane %v1937_v23, 2 }
 0x18d   : > { %v2043_v52 = vrot.slane %v1938_v38, 2  ;;  %v2045_v54 = vrot.slane %v1939_v22, 2  ;;  %v1370_v21 = vsel %vm5385_vm9, %v1368_v42, %v1369_v27  ;;  %v1371_v17 = vrot.slane %v1369_v27, 4 }
 0x18e   : > { %v3640_v32 = vpack.c.bf16 %v3612_v5, %v3611_v20  ;;  %v1387_v29 = vsel %vm5412_vm10, %v4330_v53, %v5742_v49  ;;  %1377 = vst [vmem:[#allocation2 + $0x7c] sm:$0xf] %v1370_v21  ;;  %v1388_v7 = vrot.slane %v5742_v49, 4  ;;  %v2206_v11 = vunpack.c.l.bf16 %v2174_v28  ;;  %v3262_v53 = vld [vmem:[#allocation2 + $0x48] sm:$0xe] }
 0x18f   : > { %1396 = vst [vmem:[#allocation2 + $0x84] sm:$0xf] %v1387_v29  ;;  %v2044_v43 = vsel %vm2021_vm12, %v2042_v8, %v2043_v52  ;;  %v2046_v2 = vsel %vm2021_vm12, %v2043_v52, %v2045_v54  ;;  %1378 = vst [vmem:[#allocation2 + $0x80] sm:$0x1] %v1371_v17  ;;  %v2207_v42 = vunpack.c.h.bf16 %v2174_v28  ;;  %v2318_v30 = vunpack.c.l.bf16 %v2302_v19 }
 0x190   : > { %4843 = vmatmul.mubr.bf16.gmra.mrb[28].mxu1 %v3640_v32  ;;  %v2142_v35 = vadd.f32 %v2044_v43, %v1865_v39  ;;  %v2143_v18 = vadd.f32 %v2046_v2, %v1866_v26  ;;  %v2242_v3 = vmul.f32 %v5326_v56, %v2206_v11  ;;  %v2346_v37 = vmul.f32 %v5328_v57, %v2206_v11 }
 0x191   : > { %v2594_v15 = vunpack.c.l.bf16 %v2578_v46  ;;  %v5756_v41 = vunpack.c.l.bf16 %v4669_v10  ;;  %v2243_v33 = vmul.f32 %v5326_v56, %v2207_v42  ;;  %v2347_v31 = vmul.f32 %v5328_v57, %v2207_v42 }
 0x192   : > { %v2348_v62 = vmul.f32 %v5328_v57, %v2318_v30  ;;  %v2623_v48 = vmul.f32 %v5330_v59, %v2207_v42  ;;  %v2274_v0 = vadd.f32 %v2242_v3, %v2142_v35  ;;  %v2450_v50 = vrot.slane %v2346_v37, 1  ;;  %v1522_v37 = vld [vmem:[#allocation2 + $0x3c] sm:$0xff]  }
 0x193   : > { %v2622_v36 = vmul.f32 %v5330_v59, %v2594_v15  ;;  %v2624_v51 = vmul.f32 %v5330_v59, %v2318_v30  ;;  %v2275_v23 = vadd.f32 %v2243_v33, %v2143_v18  ;;  %v2451_v38 = vrot.slane %v2347_v31, 1 }
 0x194   : > { %v2453_v9 = vrot.slane %v2348_v62, 1  ;;  %v2727_v6 = vrot.slane %v2623_v48, 2  ;;  %v5764_v20 = vunpack.c.h.bf16 %v4669_v10  ;;  %v2926_v47 = vmul.f32 %v5756_v41, %v5336_v12  ;;  %v1617_v48 = vld [vmem:[#allocation2 + $0x44] sm:$0x1] }
 0x195   : > { %v2726_v44 = vrot.slane %v2622_v36, 2  ;;  %v2729_v40 = vrot.slane %v2624_v51, 2  ;;  %v2452_v39 = vsel %vm1744_vm11, %v2450_v50, %v2451_v38  ;;  %v3002_v5 = vunpack.c.l.bf16 %v2986_v25 }
 0x196   : > { %v2454_v22 = vsel %vm1744_vm11, %v2451_v38, %v2453_v9  ;;  %v3030_v27 = vmul.f32 %v5756_v41, %v5338_v1  ;;  %v2550_v28 = vadd.f32 %v2452_v39, %v2274_v0  ;;  %v2927_v54 = vmul.f32 %v5764_v20, %v5336_v12 }
 0x197   : > { %v2551_v26 = vadd.f32 %v2454_v22, %v2275_v23  ;;  %v2728_v8 = vsel %vm2021_vm12, %v2726_v44, %v2727_v6  ;;  %v2730_v52 = vsel %vm2021_vm12, %v2727_v6, %v2729_v40  ;;  %v3031_v19 = vmul.f32 %v5764_v20, %v5338_v1  ;;  %v6527_v22 = vld [vmem:[#allocation6_spill] sm:$0xff] }
 0x198   : > { %v3032_v32 = vmul.f32 %v5338_v1, %v3002_v5  ;;  %v3134_v21 = vrot.slane %v3030_v27, 1  ;;  %v2826_v17 = vadd.f32 %v2728_v8, %v2550_v28  ;;  %v3278_v46 = vunpack.c.l.bf16 %v3262_v53 }
 0x199   : > { %v2827_v29 = vadd.f32 %v2730_v52, %v2551_v26  ;;  %v3307_v10 = vmul.f32 %v5764_v20, %v5332_v60  ;;  %v3135_v43 = vrot.slane %v3031_v19, 1  ;;  %v3308_v11 = vmul.f32 %v5332_v60, %v3002_v5 }
 0x19a   : > { %v3137_v2 = vrot.slane %v3032_v32, 1  ;;  %v716_v35 = vadd.f32 %v5587_v13, %v5596_v63  ;;  %v2958_v18 = vadd.f32 %v2926_v47, %v2826_v17  ;;  %v3306_v30 = vmul.f32 %v5332_v60, %v3278_v46  ;;  %v1894_v47 = vld [vmem:[#allocation2 + $0x3c] sm:$0xe] }
 0x19b   : > { %v2959_v42 = vadd.f32 %v2927_v54, %v2827_v29  ;;  %v3411_v3 = vrot.slane %v3307_v10, 2  ;;  %v3136_v15 = vsel %vm1744_vm11, %v3134_v21, %v3135_v43  ;;  %v3413_v31 = vrot.slane %v3308_v11, 2  ;;  %v6528_v17 = vld [vmem:[#allocation8_spill] sm:$0xff] }
 0x19c   : > { %v3138_v33 = vsel %vm1744_vm11, %v3135_v43, %v3137_v2  ;;  %v803_v62 = vmax.f32 %v716_v35, 0.0  ;;  %v3234_v0 = vadd.f32 %v3136_v15, %v2958_v18  ;;  %v3410_v36 = vrot.slane %v3306_v30, 2 }
 0x19d   : > { %v3235_v50 = vadd.f32 %v3138_v33, %v2959_v42  ;;  %v719_v51 = vadd.f32 %v5587_v13, %v5604_v61  ;;  %v3414_v63 = vsel %vm2021_vm12, %v3411_v3, %v3413_v31  ;;  %v1554_v23 = vunpack.c.l.bf16 %v1522_v37  ;;  %v2303_v31 = vld [vmem:[#allocation2 + $0x50] sm:$0x1] }
 0x19e   : > { %v844_v25 = vmin.f32 %v803_v62, 6.0  ;;  %v1555_v38 = vunpack.c.h.bf16 %v1522_v37  ;;  %v3412_v9 = vsel %vm2021_vm12, %v3410_v36, %v3411_v3  ;;  %v1633_v40 = vunpack.c.l.bf16 %v1617_v48  ;;  %v2579_v36 = vld [vmem:[#allocation2 + $0x48] sm:$0xe] }
 0x19f   : > { %v3511_v6 = vadd.f32 %v3414_v63, %v3235_v50  ;;  %v804_v44 = vmax.f32 %v719_v51, 0.0  ;;  %v3510_v39 = vadd.f32 %v3412_v9, %v3234_v0  ;;  %v1590_v27 = vmul.f32 %v5306_v58, %v1554_v23 }
 0x1a0   : > { %v1131_v5 = vmul.f32 %v6527_v22, %v844_v25  ;;  %v1591_v53 = vmul.f32 %v5306_v58, %v1555_v38  ;;  %v1663_v26 = vmul.f32 %v5313_v24, %v1554_v23  ;;  %v1664_v8 = vmul.f32 %v5313_v24, %v1555_v38 }
 0x1a1   : > { %v3550_v61 = vadd.f32 %v5526_v34, %v3511_v6  ;;  %v845_v28 = vmin.f32 %v804_v44, 6.0  ;;  %v3549_v52 = vadd.f32 %v5526_v34, %v3510_v39  ;;  %v1665_v19 = vmul.f32 %v5313_v24, %v1633_v40 }
 0x1a2   : > { %v4421_v54 = vpack.c.bf16 %v1131_v5, %v1131_v5  ;;  %v1910_v32 = vunpack.c.l.bf16 %v1894_v47  ;;  %v1770_v46 = vrot.slane %v1663_v26, 1  ;;  %v1771_v10 = vrot.slane %v1664_v8, 1  ;;  %v2860_v47 = vld [vmem:[#allocation2 + $0x54] sm:$0xff]   ;;  %v2987_v8 = vld [vmem:[#allocation2 + $0x5c] sm:$0x1] }
 0x1a3   : > { %v3582_v21 = vmax.f32 %v3550_v61, 0.0  ;;  %v5800_v29 = vmul.f32 %v6528_v17, %v845_v28  ;;  %v3581_v43 = vmax.f32 %v3549_v52, 0.0  ;;  %v1773_v11 = vrot.slane %v1665_v19, 1 }
 0x1a4   : > { %v1389_v2 = vrot.slane %v4421_v54, 7  ;;  %v1940_v35 = vmul.f32 %v5318_v45, %v1910_v32  ;;  %v1772_v42 = vsel %vm1744_vm11, %v1770_v46, %v1771_v10  ;;  %v1941_v34 = vmul.f32 %v5318_v45, %v1555_v38 }
 0x1a5   : > { %v3614_v18 = vmin.f32 %v3582_v21, 6.0  ;;  %v1942_v30 = vmul.f32 %v5318_v45, %v1633_v40  ;;  %v3613_v3 = vmin.f32 %v3581_v43, 6.0  ;;  %v1774_v33 = vsel %vm1744_vm11, %v1771_v10, %v1773_v11 }
 0x1a6   : > { %v1390_v37 = vsel %vm5412_vm10, %v1388_v7, %v1389_v2  ;;  %v1391_v15 = vrot.slane %v1389_v2, 4  ;;  %v1867_v62 = vadd.f32 %v1772_v42, %v1590_v27  ;;  %v1868_v48 = vadd.f32 %v1774_v33, %v1591_v53 }
 0x1a7   : > { %1397 = vst [vmem:[#allocation2 + $0x88] sm:$0xf] %v1390_v37  ;;  %v2047_v0 = vrot.slane %v1940_v35, 2  ;;  %v2048_v50 = vrot.slane %v1941_v34, 2  ;;  %v3641_v51 = vpack.c.bf16 %v3614_v18, %v3613_v3  ;;  %v2050_v63 = vrot.slane %v1942_v30, 2 }
 0x1a8   : > { %1398 = vst [vmem:[#allocation2 + $0x8c] sm:$0x1] %v1391_v15  ;;  %v2244_v25 = vmul.f32 %v5756_v41, %v5326_v56  ;;  %v2245_v55 = vmul.f32 %v5764_v20, %v5326_v56  ;;  %v2319_v7 = vunpack.c.l.bf16 %v2303_v31  ;;  %v2349_v23 = vmul.f32 %v5756_v41, %v5328_v57  ;;  %v3263_v18 = vld [vmem:[#allocation2 + $0x54] sm:$0xe] }
 0x1a9   : > { %v2049_v49 = vsel %vm2021_vm12, %v2047_v0, %v2048_v50  ;;  %v2350_v38 = vmul.f32 %v5764_v20, %v5328_v57  ;;  %4846 = vmatprep.mubr.bf16.mxu1 %v3641_v51  ;;  %v2051_v9 = vsel %vm2021_vm12, %v2048_v50, %v2050_v63  ;;  %v2595_v44 = vunpack.c.l.bf16 %v2579_v36 }
 0x1aa   : > { %v2144_v6 = vadd.f32 %v2049_v49, %v1867_v62  ;;  %v2626_v40 = vmul.f32 %v5764_v20, %v5330_v59  ;;  %v2145_v39 = vadd.f32 %v2051_v9, %v1868_v48  ;;  %v2351_v22 = vmul.f32 %v5328_v57, %v2319_v7 }
 0x1ab   : > { %v2455_v5 = vrot.slane %v2349_v23, 1  ;;  %v2456_v27 = vrot.slane %v2350_v38, 1  ;;  %v2625_v61 = vmul.f32 %v5330_v59, %v2595_v44  ;;  %v2627_v28 = vmul.f32 %v5330_v59, %v2319_v7 }
 0x1ac   : > { %v2276_v53 = vadd.f32 %v2244_v25, %v2144_v6  ;;  %v2732_v26 = vrot.slane %v2626_v40, 2  ;;  %v2277_v52 = vadd.f32 %v2245_v55, %v2145_v39  ;;  %v2458_v19 = vrot.slane %v2351_v22, 1  ;;  %v1618_v40 = vld [vmem:[#allocation2 + $0x50] sm:$0x1] }
 0x1ad   : > { %v2457_v54 = vsel %vm1744_vm11, %v2455_v5, %v2456_v27  ;;  %v2892_v32 = vunpack.c.l.bf16 %v2860_v47  ;;  %v2731_v17 = vrot.slane %v2625_v61, 2  ;;  %v2734_v46 = vrot.slane %v2627_v28, 2  ;;  %v1895_v28 = vld [vmem:[#allocation2 + $0x48] sm:$0xe] }
 0x1ae   : > { %v2552_v21 = vadd.f32 %v2457_v54, %v2276_v53  ;;  %v2893_v10 = vunpack.c.h.bf16 %v2860_v47  ;;  %v2459_v43 = vsel %vm1744_vm11, %v2456_v27, %v2458_v19  ;;  %v3003_v11 = vunpack.c.l.bf16 %v2987_v8  ;;  %v6529_v54 = vld [vmem:[#allocation9_spill] sm:$0xff] }
 0x1af   : > { %v2928_v2 = vmul.f32 %v5336_v12, %v2892_v32  ;;  %v3033_v35 = vmul.f32 %v5338_v1, %v2892_v32  ;;  %v2553_v42 = vadd.f32 %v2459_v43, %v2277_v52  ;;  %v2733_v34 = vsel %vm2021_vm12, %v2731_v17, %v2732_v26  ;;  %v5858_v17 = vld [vmem:[%s6503_s5] ss:$0 sm:$0xff] }
 0x1b0   : > { %v2735_v30 = vsel %vm2021_vm12, %v2732_v26, %v2734_v46  ;;  %v2929_v3 = vmul.f32 %v5336_v12, %v2893_v10  ;;  %v2828_v37 = vadd.f32 %v2733_v34, %v2552_v21  ;;  %v3034_v15 = vmul.f32 %v5338_v1, %v2893_v10 }
 0x1b1   : > { %v3035_v33 = vmul.f32 %v5338_v1, %v3003_v11  ;;  %v3139_v31 = vrot.slane %v3033_v35, 1  ;;  %v2829_v62 = vadd.f32 %v2735_v30, %v2553_v42  ;;  %v3279_v48 = vunpack.c.l.bf16 %v3263_v18  ;;  %v6530_v35 = vld [vmem:[#allocation7_spill] sm:$0xff] }
 0x1b2   : > { %v3310_v0 = vmul.f32 %v5332_v60, %v2893_v10  ;;  %v3311_v50 = vmul.f32 %v5332_v60, %v3003_v11  ;;  %v2960_v36 = vadd.f32 %v2928_v2, %v2828_v37  ;;  %v3140_v51 = vrot.slane %v3034_v15, 1 }
 0x1b3   : > { %v3142_v63 = vrot.slane %v3035_v33, 1  ;;  %v724_v25 = vadd.f32 %v5587_v13, %v5619_v16  ;;  %v2961_v55 = vadd.f32 %v2929_v3, %v2829_v62  ;;  %v3309_v49 = vmul.f32 %v5332_v60, %v3279_v48  ;;  %v2304_v48 = vld [vmem:[#allocation2 + $0x5c] sm:$0x1] }
 0x1b4   : > { %v3416_v7 = vrot.slane %v3310_v0, 2  ;;  %v3418_v23 = vrot.slane %v3311_v50, 2  ;;  %v3141_v38 = vsel %vm1744_vm11, %v3139_v31, %v3140_v51  ;;  %v727_v44 = vadd.f32 %v5587_v13, %v5624_v14 }
 0x1b5   : > { %v3143_v9 = vsel %vm1744_vm11, %v3140_v51, %v3142_v63  ;;  %v805_v6 = vmax.f32 %v724_v25, 0.0  ;;  %v3236_v47 = vadd.f32 %v3141_v38, %v2960_v36  ;;  %v3415_v22 = vrot.slane %v3309_v49, 2  ;;  %v2580_v63 = vld [vmem:[#allocation2 + $0x54] sm:$0xe] }
 0x1b6   : > { %v3237_v39 = vadd.f32 %v3143_v9, %v2961_v55  ;;  %v3419_v5 = vsel %vm2021_vm12, %v3416_v7, %v3418_v23  ;;  %v806_v27 = vmax.f32 %v727_v44, 0.0  ;;  %v1592_v53 = vmul.f32 %v5756_v41, %v5306_v58  ;;  %v6531_v44 = vld [vmem:[#allocation10_spill] sm:$0xff] }
 0x1b7   : > { %v846_v16 = vmin.f32 %v805_v6, 6.0  ;;  %v1593_v61 = vmul.f32 %v5764_v20, %v5306_v58  ;;  %v3417_v26 = vsel %vm2021_vm12, %v3415_v22, %v3416_v7  ;;  %v1634_v52 = vunpack.c.l.bf16 %v1618_v40 }
 0x1b8   : > { %v3513_v8 = vadd.f32 %v3419_v5, %v3237_v39  ;;  %v1666_v13 = vmul.f32 %v5756_v41, %v5313_v24  ;;  %v3512_v14 = vadd.f32 %v3417_v26, %v3236_v47  ;;  %v847_v32 = vmin.f32 %v806_v27, 6.0  ;;  %v4670_v26 = vld [vmem:[#allocation2 + $0x60] sm:$0xff]  }
 0x1b9   : > { %v1133_v19 = vmul.f32 %v6529_v54, %v846_v16  ;;  %v1667_v21 = vmul.f32 %v5764_v20, %v5313_v24  ;;  %v1668_v10 = vmul.f32 %v5313_v24, %v1634_v52  ;;  %v1911_v2 = vunpack.c.l.bf16 %v1895_v28  ;;  %v2988_v54 = vld [vmem:[#allocation2 + $0x68] sm:$0x1] }
 0x1ba   : > { %v3552_v46 = vadd.f32 %v5858_v17, %v3513_v8  ;;  %v1775_v43 = vrot.slane %v1666_v13, 1  ;;  %v3551_v41 = vadd.f32 %v5858_v17, %v3512_v14  ;;  %v1134_v18 = vmul.f32 %v6530_v35, %v847_v32 }
 0x1bb   : > { %v5864_v11 = vpack.c.bf16 %v1133_v19, %v5800_v29  ;;  %v1776_v42 = vrot.slane %v1667_v21, 1  ;;  %v1778_v30 = vrot.slane %v1668_v10, 1  ;;  %v1943_v3 = vmul.f32 %v5318_v45, %v1911_v2  ;;  %v2178_v29 = vld [vmem:[#allocation2 + $0x54] sm:$0xff]  }
 0x1bc   : > { %v3584_v34 = vmax.f32 %v3552_v46, 0.0  ;;  %v1944_v37 = vmul.f32 %v5764_v20, %v5318_v45  ;;  %v3583_v15 = vmax.f32 %v3551_v41, 0.0  ;;  %v4424_v33 = vpack.c.bf16 %v1134_v18, %v1134_v18 }
 0x1bd   : > { %4487 = vst [vmem:[#allocation2 + $0x90] sm:$0xff] %v5864_v11   ;;  %v1777_v31 = vsel %vm1744_vm11, %v1775_v43, %v1776_v42  ;;  %v1945_v62 = vmul.f32 %v5318_v45, %v1634_v52  ;;  %v1779_v50 = vsel %vm1744_vm11, %v1776_v42, %v1778_v30  ;;  %v2052_v51 = vrot.slane %v1943_v3, 2  ;;  %v3264_v30 = vld [vmem:[#allocation2 + $0x60] sm:$0xe] }
 0x1be   : > { %v3616_v0 = vmin.f32 %v3584_v34, 6.0  ;;  %v1869_v36 = vadd.f32 %v1777_v31, %v1592_v53  ;;  %v3615_v25 = vmin.f32 %v3583_v15, 6.0  ;;  %1412 = vst [vmem:[#allocation2 + $0x98] sm:$0x1] %v4424_v33  ;;  %v4336_v55 = vrot.slane %v4424_v33, 9 }
 0x1bf   : > { %v1870_v20 = vadd.f32 %v1779_v50, %v1593_v61  ;;  %v2053_v49 = vrot.slane %v1944_v37, 2  ;;  %v2055_v7 = vrot.slane %v1945_v62, 2  ;;  %v2210_v23 = vunpack.c.l.bf16 %v2178_v29 }
 0x1c0   : > { %v2211_v38 = vunpack.c.h.bf16 %v2178_v29  ;;  %v2320_v9 = vunpack.c.l.bf16 %v2304_v48  ;;  %v3642_v6 = vpack.c.bf16 %v3616_v0, %v3615_v25  ;;  %v1421_v40 = vsel %vm5357_vm6, %v4336_v55, %v6531_v44 }
 0x1c1   : > { %v2054_v47 = vsel %vm2021_vm12, %v2052_v51, %v2053_v49  ;;  %v2596_v39 = vunpack.c.l.bf16 %v2580_v63  ;;  %1430 = vst [vmem:[#allocation2 + $0x9c] sm:$0xf] %v1421_v40  ;;  %v2056_v22 = vsel %vm2021_vm12, %v2053_v49, %v2055_v7  ;;  %v2246_v16 = vmul.f32 %v5326_v56, %v2210_v23  ;;  %v1526_v63 = vld [vmem:[#allocation2 + $0x54] sm:$0xff]  }
 0x1c2   : > { %v2146_v5 = vadd.f32 %v2054_v47, %v1869_v36  ;;  %v2247_v27 = vmul.f32 %v5326_v56, %v2211_v38  ;;  %4847 = vmatmul.mubr.bf16.gmra.mrb[32].mxu1 %v3642_v6  ;;  %v2147_v53 = vadd.f32 %v2056_v22, %v1870_v20  ;;  %v2352_v61 = vmul.f32 %v5328_v57, %v2210_v23  ;;  %v1619_v6 = vld [vmem:[#allocation2 + $0x5c] sm:$0x1] }
 0x1c3   : > { %v2353_v28 = vmul.f32 %v5328_v57, %v2211_v38  ;;  %v2354_v4 = vmul.f32 %v5328_v57, %v2320_v9  ;;  %v2628_v52 = vmul.f32 %v5330_v59, %v2596_v39  ;;  %v2629_v13 = vmul.f32 %v5330_v59, %v2211_v38 }
 0x1c4   : > { %v2278_v8 = vadd.f32 %v2246_v16, %v2146_v5  ;;  %v2630_v14 = vmul.f32 %v5330_v59, %v2320_v9  ;;  %v2279_v19 = vadd.f32 %v2247_v27, %v2147_v53  ;;  %v2460_v32 = vrot.slane %v2352_v61, 1  ;;  %v1896_v53 = vld [vmem:[#allocation2 + $0x54] sm:$0xe] }
 0x1c5   : > { %v2461_v21 = vrot.slane %v2353_v28, 1  ;;  %v2463_v46 = vrot.slane %v2354_v4, 1  ;;  %v2736_v10 = vrot.slane %v2628_v52, 2  ;;  %v2737_v43 = vrot.slane %v2629_v13, 2 }
 0x1c6   : > { %v2739_v2 = vrot.slane %v2630_v14, 2  ;;  %v5887_v41 = vunpack.c.l.bf16 %v4670_v26  ;;  %v5891_v42 = vunpack.c.h.bf16 %v4670_v26  ;;  %v3004_v34 = vunpack.c.l.bf16 %v2988_v54 }
 0x1c7   : > { %v2462_v35 = vsel %vm1744_vm11, %v2460_v32, %v2461_v21  ;;  %v2464_v18 = vsel %vm1744_vm11, %v2461_v21, %v2463_v46  ;;  %v2738_v15 = vsel %vm2021_vm12, %v2736_v10, %v2737_v43  ;;  %v3280_v51 = vunpack.c.l.bf16 %v3264_v30 }
 0x1c8   : > { %v2554_v3 = vadd.f32 %v2462_v35, %v2278_v8  ;;  %v2555_v37 = vadd.f32 %v2464_v18, %v2279_v19  ;;  %v2740_v33 = vsel %vm2021_vm12, %v2737_v43, %v2739_v2  ;;  %v2930_v31 = vmul.f32 %v5887_v41, %v5336_v12 }
 0x1c9   : > { %v2931_v62 = vmul.f32 %v5891_v42, %v5336_v12  ;;  %v3036_v29 = vmul.f32 %v5887_v41, %v5338_v1  ;;  %v3037_v48 = vmul.f32 %v5891_v42, %v5338_v1  ;;  %v3038_v36 = vmul.f32 %v5338_v1, %v3004_v34 }
 0x1ca   : > { %v2830_v0 = vadd.f32 %v2738_v15, %v2554_v3  ;;  %v2831_v50 = vadd.f32 %v2740_v33, %v2555_v37  ;;  %v3313_v20 = vmul.f32 %v5891_v42, %v5332_v60  ;;  %v3314_v49 = vmul.f32 %v5332_v60, %v3004_v34 }
 0x1cb   : > { %v3144_v25 = vrot.slane %v3036_v29, 1  ;;  %v3145_v55 = vrot.slane %v3037_v48, 1  ;;  %v3147_v38 = vrot.slane %v3038_v36, 1  ;;  %v3312_v9 = vmul.f32 %v5332_v60, %v3280_v51 }
 0x1cc   : > { %v2962_v7 = vadd.f32 %v2930_v31, %v2830_v0  ;;  %v2963_v23 = vadd.f32 %v2931_v62, %v2831_v50  ;;  %v3421_v40 = vrot.slane %v3313_v20, 2  ;;  %v3423_v47 = vrot.slane %v3314_v49, 2  ;;  %v2305_v31 = vld [vmem:[#allocation2 + $0x68] sm:$0x1]  ;;  %v2581_v50 = vld [vmem:[#allocation2 + $0x60] sm:$0xe] }
 0x1cd   : > { %v3146_v44 = vsel %vm1744_vm11, %v3144_v25, %v3145_v55  ;;  %v1558_v39 = vunpack.c.l.bf16 %v1526_v63  ;;  %v3148_v22 = vsel %vm1744_vm11, %v3145_v55, %v3147_v38  ;;  %v3420_v16 = vrot.slane %v3312_v9, 2 }
 0x1ce   : > { %v3238_v5 = vadd.f32 %v3146_v44, %v2962_v7  ;;  %v1559_v27 = vunpack.c.h.bf16 %v1526_v63  ;;  %v3239_v61 = vadd.f32 %v3148_v22, %v2963_v23  ;;  %v3424_v28 = vsel %vm2021_vm12, %v3421_v40, %v3423_v47  ;;  %v2864_v44 = vld [vmem:[#allocation2 + $0x6c] sm:$0xff]  }
 0x1cf   : > { %v1594_v4 = vmul.f32 %v5306_v58, %v1558_v39  ;;  %v1635_v26 = vunpack.c.l.bf16 %v1619_v6  ;;  %v3422_v8 = vsel %vm2021_vm12, %v3420_v16, %v3421_v40  ;;  %v1669_v13 = vmul.f32 %v5313_v24, %v1558_v39 }
 0x1d0   : > { %v1595_v52 = vmul.f32 %v5306_v58, %v1559_v27  ;;  %v1670_v14 = vmul.f32 %v5313_v24, %v1559_v27  ;;  %v3514_v54 = vadd.f32 %v3422_v8, %v3238_v5  ;;  %v3515_v19 = vadd.f32 %v3424_v28, %v3239_v61  ;;  %v2989_v8 = vld [vmem:[#allocation2 + $0x74] sm:$0x1] }
 0x1d1   : > { %v1671_v32 = vmul.f32 %v5313_v24, %v1635_v26  ;;  %v1912_v21 = vunpack.c.l.bf16 %v1896_v53  ;;  %v1780_v46 = vrot.slane %v1669_v13, 1  ;;  %v1947_v43 = vmul.f32 %v5318_v45, %v1559_v27 }
 0x1d2   : > { %v1781_v10 = vrot.slane %v1670_v14, 1  ;;  %v1948_v2 = vmul.f32 %v5318_v45, %v1635_v26  ;;  %v3553_v35 = vadd.f32 %v5858_v17, %v3514_v54  ;;  %v3554_v18 = vadd.f32 %v5858_v17, %v3515_v19 }
 0x1d3   : > { %v1783_v34 = vrot.slane %v1671_v32, 1  ;;  %v1946_v30 = vmul.f32 %v5318_v45, %v1912_v21  ;;  %v2058_v37 = vrot.slane %v1947_v43, 2  ;;  %v2248_v33 = vmul.f32 %v5887_v41, %v5326_v56 }
 0x1d4   : > { %v1782_v3 = vsel %vm1744_vm11, %v1780_v46, %v1781_v10  ;;  %v2060_v15 = vrot.slane %v1948_v2, 2  ;;  %v3585_v62 = vmax.f32 %v3553_v35, 0.0  ;;  %v3586_v29 = vmax.f32 %v3554_v18, 0.0 }
 0x1d5   : > { %v1784_v48 = vsel %vm1744_vm11, %v1781_v10, %v1783_v34  ;;  %v1871_v0 = vadd.f32 %v1782_v3, %v1594_v4  ;;  %v2057_v51 = vrot.slane %v1946_v30, 2  ;;  %v2249_v25 = vmul.f32 %v5891_v42, %v5326_v56  ;;  %v3265_v10 = vld [vmem:[#allocation2 + $0x6c] sm:$0xe] }
 0x1d6   : > { %v1872_v36 = vadd.f32 %v1784_v48, %v1595_v52  ;;  %v2061_v63 = vsel %vm2021_vm12, %v2058_v37, %v2060_v15  ;;  %v3617_v55 = vmin.f32 %v3585_v62, 6.0  ;;  %v3618_v20 = vmin.f32 %v3586_v29, 6.0 }
 0x1d7   : > { %v2321_v49 = vunpack.c.l.bf16 %v2305_v31  ;;  %v2355_v7 = vmul.f32 %v5887_v41, %v5328_v57  ;;  %v2059_v23 = vsel %vm2021_vm12, %v2057_v51, %v2058_v37  ;;  %v2356_v9 = vmul.f32 %v5891_v42, %v5328_v57 }
 0x1d8   : > { %v2149_v38 = vadd.f32 %v2061_v63, %v1872_v36  ;;  %v2597_v6 = vunpack.c.l.bf16 %v2581_v50  ;;  %v3643_v40 = vpack.c.bf16 %v3618_v20, %v3617_v55  ;;  %v2148_v47 = vadd.f32 %v2059_v23, %v1871_v0  ;;  %v1620_v36 = vld [vmem:[#allocation2 + $0x68] sm:$0x1] }
 0x1d9   : > { %v2357_v39 = vmul.f32 %v5328_v57, %v2321_v49  ;;  %v2465_v22 = vrot.slane %v2355_v7, 1  ;;  %v2466_v16 = vrot.slane %v2356_v9, 1  ;;  %v2632_v53 = vmul.f32 %v5891_v42, %v5330_v59 }
 0x1da   : > { %v2281_v5 = vadd.f32 %v2249_v25, %v2149_v38  ;;  %v2631_v27 = vmul.f32 %v5330_v59, %v2597_v6  ;;  %4850 = vmatprep.mubr.bf16.mxu1 %v3643_v40  ;;  %v2280_v61 = vadd.f32 %v2248_v33, %v2148_v47  ;;  %v2633_v4 = vmul.f32 %v5330_v59, %v2321_v49  ;;  %v1897_v38 = vld [vmem:[#allocation2 + $0x60] sm:$0xe] }
 0x1db   : > { %v2468_v28 = vrot.slane %v2357_v39, 1  ;;  %v2896_v26 = vunpack.c.l.bf16 %v2864_v44  ;;  %v2467_v52 = vsel %vm1744_vm11, %v2465_v22, %v2466_v16  ;;  %v2742_v14 = vrot.slane %v2632_v53, 2 }
 0x1dc   : > { %v2741_v13 = vrot.slane %v2631_v27, 2  ;;  %v2897_v54 = vunpack.c.h.bf16 %v2864_v44  ;;  %v2556_v32 = vadd.f32 %v2467_v52, %v2280_v61  ;;  %v2744_v21 = vrot.slane %v2633_v4, 2 }
 0x1dd   : > { %v2469_v19 = vsel %vm1744_vm11, %v2466_v16, %v2468_v28  ;;  %v2932_v46 = vmul.f32 %v5336_v12, %v2896_v26  ;;  %v3005_v18 = vunpack.c.l.bf16 %v2989_v8  ;;  %v3039_v3 = vmul.f32 %v5338_v1, %v2896_v26  ;;  %v2182_v28 = vld [vmem:[#allocation2 + $0x6c] sm:$0xff]  }
 0x1de   : > { %v2557_v43 = vadd.f32 %v2469_v19, %v2281_v5  ;;  %v2743_v2 = vsel %vm2021_vm12, %v2741_v13, %v2742_v14  ;;  %v2933_v35 = vmul.f32 %v5336_v12, %v2897_v54  ;;  %v2745_v34 = vsel %vm2021_vm12, %v2742_v14, %v2744_v21 }
 0x1df   : > { %v2832_v30 = vadd.f32 %v2743_v2, %v2556_v32  ;;  %v3040_v37 = vmul.f32 %v5338_v1, %v2897_v54  ;;  %v3041_v33 = vmul.f32 %v5338_v1, %v3005_v18  ;;  %v3281_v31 = vunpack.c.l.bf16 %v3265_v10  ;;  %v2306_v10 = vld [vmem:[#allocation2 + $0x74] sm:$0x1] }
 0x1e0   : > { %v2833_v15 = vadd.f32 %v2745_v34, %v2557_v43  ;;  %v3316_v62 = vmul.f32 %v5332_v60, %v2897_v54  ;;  %v3149_v48 = vrot.slane %v3039_v3, 1  ;;  %v3317_v50 = vmul.f32 %v5332_v60, %v3005_v18 }
 0x1e1   : > { %v2964_v29 = vadd.f32 %v2932_v46, %v2832_v30  ;;  %v3150_v0 = vrot.slane %v3040_v37, 1  ;;  %v3152_v63 = vrot.slane %v3041_v33, 1  ;;  %v3315_v25 = vmul.f32 %v5332_v60, %v3281_v31 }
 0x1e2   : > { %v2965_v51 = vadd.f32 %v2933_v35, %v2833_v15  ;;  %v3426_v55 = vrot.slane %v3316_v62, 2  ;;  %v3428_v49 = vrot.slane %v3317_v50, 2  ;;  %v1596_v7 = vmul.f32 %v5887_v41, %v5306_v58  ;;  %v2582_v62 = vld [vmem:[#allocation2 + $0x6c] sm:$0xe] }
 0x1e3   : > { %v3151_v20 = vsel %vm1744_vm11, %v3149_v48, %v3150_v0  ;;  %v1597_v23 = vmul.f32 %v5891_v42, %v5306_v58  ;;  %v3153_v9 = vsel %vm1744_vm11, %v3150_v0, %v3152_v63  ;;  %v3425_v44 = vrot.slane %v3315_v25, 2 }
 0x1e4   : > { %v3240_v6 = vadd.f32 %v3151_v20, %v2964_v29  ;;  %v1636_v40 = vunpack.c.l.bf16 %v1620_v36  ;;  %v3241_v47 = vadd.f32 %v3153_v9, %v2965_v51  ;;  %v3429_v39 = vsel %vm2021_vm12, %v3426_v55, %v3428_v49 }
 0x1e5   : > { %v1672_v22 = vmul.f32 %v5887_v41, %v5313_v24  ;;  %v1673_v5 = vmul.f32 %v5891_v42, %v5313_v24  ;;  %v3427_v16 = vsel %vm2021_vm12, %v3425_v44, %v3426_v55  ;;  %v1913_v53 = vunpack.c.l.bf16 %v1897_v38  ;;  %v4671_v55 = vld [vmem:[#allocation2 + $0x78] sm:$0xff]   ;;  %v2990_v38 = vld [vmem:[#allocation2 + $0x80] sm:$0x1] }
 0x1e6   : > { %v1674_v27 = vmul.f32 %v5313_v24, %v1636_v40  ;;  %v1950_v61 = vmul.f32 %v5891_v42, %v5318_v45  ;;  %v3516_v4 = vadd.f32 %v3427_v16, %v3240_v6  ;;  %v3517_v26 = vadd.f32 %v3429_v39, %v3241_v47 }
 0x1e7   : > { %v1785_v8 = vrot.slane %v1672_v22, 1  ;;  %v1786_v52 = vrot.slane %v1673_v5, 1  ;;  %v1949_v14 = vmul.f32 %v5318_v45, %v1913_v53  ;;  %v1951_v41 = vmul.f32 %v5318_v45, %v1636_v40 }
 0x1e8   : > { %v1788_v13 = vrot.slane %v1674_v27, 1  ;;  %v2063_v54 = vrot.slane %v1950_v61, 2  ;;  %v3555_v19 = vadd.f32 %v5858_v17, %v3516_v4  ;;  %v3556_v32 = vadd.f32 %v5858_v17, %v3517_v26 }
 0x1e9   : > { %v1787_v21 = vsel %vm1744_vm11, %v1785_v8, %v1786_v52  ;;  %v2214_v46 = vunpack.c.l.bf16 %v2182_v28  ;;  %v2062_v2 = vrot.slane %v1949_v14, 2  ;;  %v2065_v35 = vrot.slane %v1951_v41, 2 }
 0x1ea   : > { %v1789_v42 = vsel %vm1744_vm11, %v1786_v52, %v1788_v13  ;;  %v1873_v43 = vadd.f32 %v1787_v21, %v1596_v7  ;;  %v3587_v18 = vmax.f32 %v3555_v19, 0.0  ;;  %v3588_v34 = vmax.f32 %v3556_v32, 0.0 }
 0x1eb   : > { %v1874_v30 = vadd.f32 %v1789_v42, %v1597_v23  ;;  %v2215_v3 = vunpack.c.h.bf16 %v2182_v28  ;;  %v2064_v37 = vsel %vm2021_vm12, %v2062_v2, %v2063_v54  ;;  %v2066_v15 = vsel %vm2021_vm12, %v2063_v54, %v2065_v35  ;;  %v3266_v28 = vld [vmem:[#allocation2 + $0x78] sm:$0xe] }
 0x1ec   : > { %v2250_v33 = vmul.f32 %v5326_v56, %v2214_v46  ;;  %v2322_v31 = vunpack.c.l.bf16 %v2306_v10  ;;  %v3619_v29 = vmin.f32 %v3587_v18, 6.0  ;;  %v3620_v48 = vmin.f32 %v3588_v34, 6.0  ;;  %v1530_v10 = vld [vmem:[#allocation2 + $0x6c] sm:$0xff]  }
 0x1ed   : > { %v2150_v0 = vadd.f32 %v2064_v37, %v1873_v43  ;;  %v2151_v50 = vadd.f32 %v2066_v15, %v1874_v30  ;;  %v2251_v36 = vmul.f32 %v5326_v56, %v2215_v3  ;;  %v2358_v51 = vmul.f32 %v5328_v57, %v2214_v46 }
 0x1ee   : > { %v2359_v63 = vmul.f32 %v5328_v57, %v2215_v3  ;;  %v2360_v25 = vmul.f32 %v5328_v57, %v2322_v31  ;;  %v3644_v20 = vpack.c.bf16 %v3620_v48, %v3619_v29  ;;  %v2598_v7 = vunpack.c.l.bf16 %v2582_v62  ;;  %v1621_v62 = vld [vmem:[#allocation2 + $0x74] sm:$0x1] }
 0x1ef   : > { %v2282_v49 = vadd.f32 %v2250_v33, %v2150_v0  ;;  %v2635_v23 = vmul.f32 %v5330_v59, %v2215_v3  ;;  %v2283_v9 = vadd.f32 %v2251_v36, %v2151_v50  ;;  %v2470_v6 = vrot.slane %v2358_v51, 1 }
 0x1f0   : > { %v2471_v44 = vrot.slane %v2359_v63, 1  ;;  %v2473_v40 = vrot.slane %v2360_v25, 1  ;;  %4851 = vmatmul.mubr.bf16.gmra.mrb[36].mxu1 %v3644_v20  ;;  %v2634_v47 = vmul.f32 %v5330_v59, %v2598_v7  ;;  %v2636_v39 = vmul.f32 %v5330_v59, %v2322_v31 }
 0x1f1   : > { %v2747_v22 = vrot.slane %v2635_v23, 2  ;;  %v5982_v5 = vunpack.c.l.bf16 %v4671_v55  ;;  %v5986_v53 = vunpack.c.h.bf16 %v4671_v55  ;;  %v3006_v61 = vunpack.c.l.bf16 %v2990_v38  ;;  %v1898_v55 = vld [vmem:[#allocation2 + $0x6c] sm:$0xe] }
 0x1f2   : > { %v2472_v16 = vsel %vm1744_vm11, %v2470_v6, %v2471_v44  ;;  %v2474_v27 = vsel %vm1744_vm11, %v2471_v44, %v2473_v40  ;;  %v2746_v8 = vrot.slane %v2634_v47, 2  ;;  %v2749_v52 = vrot.slane %v2636_v39, 2 }
 0x1f3   : > { %v2558_v4 = vadd.f32 %v2472_v16, %v2282_v49  ;;  %v2559_v26 = vadd.f32 %v2474_v27, %v2283_v9  ;;  %v2934_v13 = vmul.f32 %v5982_v5, %v5336_v12  ;;  %v2935_v14 = vmul.f32 %v5986_v53, %v5336_v12 }
 0x1f4   : > { %v3042_v41 = vmul.f32 %v5982_v5, %v5338_v1  ;;  %v3043_v54 = vmul.f32 %v5986_v53, %v5338_v1  ;;  %v2748_v19 = vsel %vm2021_vm12, %v2746_v8, %v2747_v22  ;;  %v2750_v32 = vsel %vm2021_vm12, %v2747_v22, %v2749_v52 }
 0x1f5   : > { %v3044_v21 = vmul.f32 %v5338_v1, %v3006_v61  ;;  %v3282_v46 = vunpack.c.l.bf16 %v3266_v28  ;;  %v2834_v42 = vadd.f32 %v2748_v19, %v2558_v4  ;;  %v2835_v43 = vadd.f32 %v2750_v32, %v2559_v26  ;;  %v2307_v19 = vld [vmem:[#allocation2 + $0x80] sm:$0x1] }
 0x1f6   : > { %v3154_v2 = vrot.slane %v3042_v41, 1  ;;  %v3155_v35 = vrot.slane %v3043_v54, 1  ;;  %v3319_v30 = vmul.f32 %v5986_v53, %v5332_v60  ;;  %v3320_v3 = vmul.f32 %v5332_v60, %v3006_v61 }
 0x1f7   : > { %v3157_v18 = vrot.slane %v3044_v21, 1  ;;  %v3318_v34 = vmul.f32 %v5332_v60, %v3282_v46  ;;  %v2966_v37 = vadd.f32 %v2934_v13, %v2834_v42  ;;  %v2967_v15 = vadd.f32 %v2935_v14, %v2835_v43  ;;  %v2583_v42 = vld [vmem:[#allocation2 + $0x78] sm:$0xe] }
 0x1f8   : > { %v3156_v33 = vsel %vm1744_vm11, %v3154_v2, %v3155_v35  ;;  %v1562_v31 = vunpack.c.l.bf16 %v1530_v10  ;;  %v3431_v0 = vrot.slane %v3319_v30, 2  ;;  %v3433_v50 = vrot.slane %v3320_v3, 2 }
 0x1f9   : > { %v3158_v29 = vsel %vm1744_vm11, %v3155_v35, %v3157_v18  ;;  %v3430_v48 = vrot.slane %v3318_v34, 2  ;;  %v3242_v36 = vadd.f32 %v3156_v33, %v2966_v37  ;;  %v1563_v63 = vunpack.c.h.bf16 %v1530_v10 }
 0x1fa   : > { %v3243_v51 = vadd.f32 %v3158_v29, %v2967_v15  ;;  %v1598_v25 = vmul.f32 %v5306_v58, %v1562_v31  ;;  %v3434_v49 = vsel %vm2021_vm12, %v3431_v0, %v3433_v50  ;;  %v1637_v7 = vunpack.c.l.bf16 %v1621_v62  ;;  %v2868_v29 = vld [vmem:[#allocation2 + $0x84] sm:$0xff]  }
 0x1fb   : > { %v3432_v20 = vsel %vm2021_vm12, %v3430_v48, %v3431_v0  ;;  %v1675_v23 = vmul.f32 %v5313_v24, %v1562_v31  ;;  %v1599_v6 = vmul.f32 %v5306_v58, %v1563_v63  ;;  %v1676_v44 = vmul.f32 %v5313_v24, %v1563_v63 }
 0x1fc   : > { %v3518_v38 = vadd.f32 %v3432_v20, %v3242_v36  ;;  %v3519_v9 = vadd.f32 %v3434_v49, %v3243_v51  ;;  %v1677_v40 = vmul.f32 %v5313_v24, %v1637_v7  ;;  %v1914_v39 = vunpack.c.l.bf16 %v1898_v55  ;;  %v2991_v20 = vld [vmem:[#allocation2 + $0x8c] sm:$0x1] }
 0x1fd   : > { %v1790_v47 = vrot.slane %v1675_v23, 1  ;;  %v1953_v22 = vmul.f32 %v5318_v45, %v1563_v63  ;;  %v1791_v61 = vrot.slane %v1676_v44, 1  ;;  %v1954_v28 = vmul.f32 %v5318_v45, %v1637_v7 }
 0x1fe   : > { %v3557_v16 = vadd.f32 %v5858_v17, %v3518_v38  ;;  %v3558_v27 = vadd.f32 %v5858_v17, %v3519_v9  ;;  %v1793_v4 = vrot.slane %v1677_v40, 1  ;;  %v1952_v26 = vmul.f32 %v5318_v45, %v1914_v39 }
 0x1ff   : > { %v2068_v8 = vrot.slane %v1953_v22, 2  ;;  %v2252_v52 = vmul.f32 %v5982_v5, %v5326_v56  ;;  %v1792_v41 = vsel %vm1744_vm11, %v1790_v47, %v1791_v61  ;;  %v2070_v54 = vrot.slane %v1954_v28, 2 }
 0x200   : > { %v3589_v13 = vmax.f32 %v3557_v16, 0.0  ;;  %v3590_v14 = vmax.f32 %v3558_v27, 0.0  ;;  %v1794_v32 = vsel %vm1744_vm11, %v1791_v61, %v1793_v4  ;;  %v1875_v21 = vadd.f32 %v1792_v41, %v1598_v25  ;;  %v3267_v27 = vld [vmem:[#allocation2 + $0x84] sm:$0xe] }
 0x201   : > { %v2067_v46 = vrot.slane %v1952_v26, 2  ;;  %v2253_v10 = vmul.f32 %v5986_v53, %v5326_v56  ;;  %v1876_v35 = vadd.f32 %v1794_v32, %v1599_v6  ;;  %v2071_v18 = vsel %vm2021_vm12, %v2068_v8, %v2070_v54 }
 0x202   : > { %v3621_v43 = vmin.f32 %v3589_v13, 6.0  ;;  %v3622_v2 = vmin.f32 %v3590_v14, 6.0  ;;  %v2323_v30 = vunpack.c.l.bf16 %v2307_v19  ;;  %v2361_v3 = vmul.f32 %v5982_v5, %v5328_v57 }
 0x203   : > { %v2069_v34 = vsel %vm2021_vm12, %v2067_v46, %v2068_v8  ;;  %v2362_v37 = vmul.f32 %v5986_v53, %v5328_v57  ;;  %v2153_v31 = vadd.f32 %v2071_v18, %v1876_v35  ;;  %v2599_v62 = vunpack.c.l.bf16 %v2583_v42 }
 0x204   : > { %v3645_v15 = vpack.c.bf16 %v3622_v2, %v3621_v43  ;;  %v2152_v33 = vadd.f32 %v2069_v34, %v1875_v21  ;;  %v2363_v48 = vmul.f32 %v5328_v57, %v2323_v30  ;;  %v2475_v0 = vrot.slane %v2361_v3, 1  ;;  %v1622_v21 = vld [vmem:[#allocation2 + $0x80] sm:$0x1] }
 0x205   : > { %v2476_v50 = vrot.slane %v2362_v37, 1  ;;  %v2638_v36 = vmul.f32 %v5986_v53, %v5330_v59  ;;  %v2285_v63 = vadd.f32 %v2253_v10, %v2153_v31  ;;  %v2637_v25 = vmul.f32 %v5330_v59, %v2599_v62 }
 0x206   : > { %4854 = vmatprep.mubr.bf16.mxu1 %v3645_v15  ;;  %v2284_v51 = vadd.f32 %v2252_v52, %v2152_v33  ;;  %v2639_v55 = vmul.f32 %v5330_v59, %v2323_v30  ;;  %v2478_v7 = vrot.slane %v2363_v48, 1  ;;  %v2900_v38 = vunpack.c.l.bf16 %v2868_v29  ;;  %v1899_v30 = vld [vmem:[#allocation2 + $0x78] sm:$0xe] }
 0x207   : > { %v2477_v49 = vsel %vm1744_vm11, %v2475_v0, %v2476_v50  ;;  %v2752_v23 = vrot.slane %v2638_v36, 2  ;;  %v2751_v6 = vrot.slane %v2637_v25, 2  ;;  %v2901_v40 = vunpack.c.h.bf16 %v2868_v29 }
 0x208   : > { %v2560_v9 = vadd.f32 %v2477_v49, %v2284_v51  ;;  %v2754_v44 = vrot.slane %v2639_v55, 2  ;;  %v2479_v47 = vsel %vm1744_vm11, %v2476_v50, %v2478_v7  ;;  %v2936_v39 = vmul.f32 %v5336_v12, %v2900_v38  ;;  %v2186_v49 = vld [vmem:[#allocation2 + $0x84] sm:$0xff]  }
 0x209   : > { %v3007_v22 = vunpack.c.l.bf16 %v2991_v20  ;;  %v3045_v16 = vmul.f32 %v5338_v1, %v2900_v38  ;;  %v2561_v61 = vadd.f32 %v2479_v47, %v2285_v63  ;;  %v2753_v28 = vsel %vm2021_vm12, %v2751_v6, %v2752_v23 }
 0x20a   : > { %v2755_v4 = vsel %vm2021_vm12, %v2752_v23, %v2754_v44  ;;  %v2937_v26 = vmul.f32 %v5336_v12, %v2901_v40  ;;  %v2836_v8 = vadd.f32 %v2753_v28, %v2560_v9  ;;  %v3046_v52 = vmul.f32 %v5338_v1, %v2901_v40 }
 0x20b   : > { %v3047_v13 = vmul.f32 %v5338_v1, %v3007_v22  ;;  %v3159_v14 = vrot.slane %v3045_v16, 1  ;;  %v2837_v41 = vadd.f32 %v2755_v4, %v2561_v61  ;;  %v3283_v54 = vunpack.c.l.bf16 %v3267_v27  ;;  %v2308_v16 = vld [vmem:[#allocation2 + $0x8c] sm:$0x1] }
 0x20c   : > { %v3322_v19 = vmul.f32 %v5332_v60, %v2901_v40  ;;  %v3323_v32 = vmul.f32 %v5332_v60, %v3007_v22  ;;  %v2968_v46 = vadd.f32 %v2936_v39, %v2836_v8  ;;  %v3160_v10 = vrot.slane %v3046_v52, 1 }
 0x20d   : > { %v3162_v42 = vrot.slane %v3047_v13, 1  ;;  %v1600_v43 = vmul.f32 %v5982_v5, %v5306_v58  ;;  %v2969_v2 = vadd.f32 %v2937_v26, %v2837_v41  ;;  %v3321_v35 = vmul.f32 %v5332_v60, %v3283_v54 }
 0x20e   : > { %v3436_v18 = vrot.slane %v3322_v19, 2  ;;  %v3438_v34 = vrot.slane %v3323_v32, 2  ;;  %v3161_v3 = vsel %vm1744_vm11, %v3159_v14, %v3160_v10  ;;  %v1601_v15 = vmul.f32 %v5986_v53, %v5306_v58  ;;  %v2584_v14 = vld [vmem:[#allocation2 + $0x84] sm:$0xe] }
 0x20f   : > { %v3163_v37 = vsel %vm1744_vm11, %v3160_v10, %v3162_v42  ;;  %v1638_v33 = vunpack.c.l.bf16 %v1622_v21  ;;  %v3244_v31 = vadd.f32 %v3161_v3, %v2968_v46  ;;  %v3435_v29 = vrot.slane %v3321_v35, 2 }
 0x210   : > { %v3245_v62 = vadd.f32 %v3163_v37, %v2969_v2  ;;  %v3439_v48 = vsel %vm2021_vm12, %v3436_v18, %v3438_v34  ;;  %v1678_v0 = vmul.f32 %v5982_v5, %v5313_v24  ;;  %v1679_v50 = vmul.f32 %v5986_v53, %v5313_v24  ;;  %v2992_v34 = vld [vmem:[#allocation2 + $0x98] sm:$0x1] }
 0x211   : > { %v1680_v36 = vmul.f32 %v5313_v24, %v1638_v33  ;;  %v1915_v51 = vunpack.c.l.bf16 %v1899_v30  ;;  %v3437_v63 = vsel %vm2021_vm12, %v3435_v29, %v3436_v18  ;;  %v1956_v55 = vmul.f32 %v5986_v53, %v5318_v45 }
 0x212   : > { %v3521_v25 = vadd.f32 %v3439_v48, %v3245_v62  ;;  %v1957_v20 = vmul.f32 %v5318_v45, %v1638_v33  ;;  %v3520_v7 = vadd.f32 %v3437_v63, %v3244_v31  ;;  %v1795_v23 = vrot.slane %v1678_v0, 1 }
 0x213   : > { %v1796_v38 = vrot.slane %v1679_v50, 1  ;;  %v1798_v9 = vrot.slane %v1680_v36, 1  ;;  %v1955_v6 = vmul.f32 %v5318_v45, %v1915_v51  ;;  %v2073_v44 = vrot.slane %v1956_v55, 2 }
 0x214   : > { %v3560_v5 = vadd.f32 %v5858_v17, %v3521_v25  ;;  %v2075_v40 = vrot.slane %v1957_v20, 2  ;;  %v3559_v47 = vadd.f32 %v5858_v17, %v3520_v7  ;;  %v2218_v53 = vunpack.c.l.bf16 %v2186_v49  ;;  %v3268_v20 = vld [vmem:[#allocation2 + $0x90] sm:$0xe] }
 0x215   : > { %v1797_v39 = vsel %vm1744_vm11, %v1795_v23, %v1796_v38  ;;  %v1799_v22 = vsel %vm1744_vm11, %v1796_v38, %v1798_v9  ;;  %v2072_v4 = vrot.slane %v1955_v6, 2  ;;  %v2219_v52 = vunpack.c.h.bf16 %v2186_v49 }
 0x216   : > { %v3592_v27 = vmax.f32 %v3560_v5, 0.0  ;;  %v1877_v61 = vadd.f32 %v1797_v39, %v1600_v43  ;;  %v1878_v28 = vadd.f32 %v1799_v22, %v1601_v15  ;;  %v3591_v26 = vmax.f32 %v3559_v47, 0.0  ;;  %v1534_v22 = vld [vmem:[#allocation2 + $0x84] sm:$0xff]  }
 0x217   : > { %v2076_v8 = vsel %vm2021_vm12, %v2073_v44, %v2075_v40  ;;  %v2254_v13 = vmul.f32 %v5326_v56, %v2218_v53  ;;  %v2074_v54 = vsel %vm2021_vm12, %v2072_v4, %v2073_v44  ;;  %v2324_v32 = vunpack.c.l.bf16 %v2308_v16 }
 0x218   : > { %v3624_v41 = vmin.f32 %v3592_v27, 6.0  ;;  %v2155_v19 = vadd.f32 %v2076_v8, %v1878_v28  ;;  %v3623_v21 = vmin.f32 %v3591_v26, 6.0  ;;  %v2154_v46 = vadd.f32 %v2074_v54, %v1877_v61 }
 0x219   : > { %v2255_v10 = vmul.f32 %v5326_v56, %v2219_v52  ;;  %v2364_v42 = vmul.f32 %v5328_v57, %v2218_v53  ;;  %v2365_v43 = vmul.f32 %v5328_v57, %v2219_v52  ;;  %v2366_v2 = vmul.f32 %v5328_v57, %v2324_v32 }
 0x21a   : > { %v2600_v35 = vunpack.c.l.bf16 %v2584_v14  ;;  %v2641_v18 = vmul.f32 %v5330_v59, %v2219_v52  ;;  %v3646_v30 = vpack.c.bf16 %v3624_v41, %v3623_v21  ;;  %v2286_v3 = vadd.f32 %v2254_v13, %v2154_v46  ;;  %v1623_v52 = vld [vmem:[#allocation2 + $0x8c] sm:$0x1] }
 0x21b   : > { %v2287_v37 = vadd.f32 %v2255_v10, %v2155_v19  ;;  %v2480_v15 = vrot.slane %v2364_v42, 1  ;;  %v2481_v33 = vrot.slane %v2365_v43, 1  ;;  %v2483_v31 = vrot.slane %v2366_v2, 1  ;;  %v1900_v10 = vld [vmem:[#allocation2 + $0x84] sm:$0xe] }
 0x21c   : > { %v2640_v62 = vmul.f32 %v5330_v59, %v2600_v35  ;;  %v2642_v29 = vmul.f32 %v5330_v59, %v2324_v32  ;;  %4855 = vmatmul.mubr.bf16.gmra.mrb[40].mxu1 %v3646_v30  ;;  %v2757_v48 = vrot.slane %v2641_v18, 2  ;;  %v4579_v0 = vunpack.c.l.bf16 %v5864_v11 }
 0x21d   : > { %v4580_v50 = vunpack.c.h.bf16 %v5864_v11  ;;  %v3008_v36 = vunpack.c.l.bf16 %v2992_v34  ;;  %v2482_v51 = vsel %vm1744_vm11, %v2480_v15, %v2481_v33  ;;  %v2484_v63 = vsel %vm1744_vm11, %v2481_v33, %v2483_v31 }
 0x21e   : > { %v2756_v25 = vrot.slane %v2640_v62, 2  ;;  %v2759_v55 = vrot.slane %v2642_v29, 2  ;;  %v2562_v49 = vadd.f32 %v2482_v51, %v2286_v3  ;;  %v2563_v7 = vadd.f32 %v2484_v63, %v2287_v37  ;;  %v4665_v62 = vld [vmem:[#allocation2 + $0x90] sm:$0xff]  }
 0x21f   : > { %v2938_v23 = vmul.f32 %v4579_v0, %v5336_v12  ;;  %v2939_v38 = vmul.f32 %v4580_v50, %v5336_v12  ;;  %v3048_v11 = vmul.f32 %v4579_v0, %v5338_v1  ;;  %v3049_v6 = vmul.f32 %v4580_v50, %v5338_v1 }
 0x220   : > { %v2758_v9 = vsel %vm2021_vm12, %v2756_v25, %v2757_v48  ;;  %v2760_v5 = vsel %vm2021_vm12, %v2757_v48, %v2759_v55  ;;  %v3050_v47 = vmul.f32 %v5338_v1, %v3008_v36  ;;  %v3284_v39 = vunpack.c.l.bf16 %v3268_v20 }
 0x221   : > { %v2838_v44 = vadd.f32 %v2758_v9, %v2562_v49  ;;  %v2839_v40 = vadd.f32 %v2760_v5, %v2563_v7  ;;  %v3164_v53 = vrot.slane %v3048_v11, 1  ;;  %v3165_v16 = vrot.slane %v3049_v6, 1 }
 0x222   : > { %v3325_v27 = vmul.f32 %v4580_v50, %v5332_v60  ;;  %v3326_v61 = vmul.f32 %v5332_v60, %v3008_v36  ;;  %v3167_v26 = vrot.slane %v3050_v47, 1  ;;  %v3324_v8 = vmul.f32 %v5332_v60, %v3284_v39 }
 0x223   : > { %v2970_v28 = vadd.f32 %v2938_v23, %v2838_v44  ;;  %v2971_v4 = vadd.f32 %v2939_v38, %v2839_v40  ;;  %v3166_v13 = vsel %vm1744_vm11, %v3164_v53, %v3165_v16  ;;  %v1566_v54 = vunpack.c.l.bf16 %v1534_v22  ;;  %v2309_v23 = vld [vmem:[#allocation2 + $0x98] sm:$0x1] }
 0x224   : > { %v3441_v14 = vrot.slane %v3325_v27, 2  ;;  %v3443_v41 = vrot.slane %v3326_v61, 2  ;;  %v3168_v19 = vsel %vm1744_vm11, %v3165_v16, %v3167_v26  ;;  %v3440_v21 = vrot.slane %v3324_v8, 2  ;;  %v2585_v16 = vld [vmem:[#allocation2 + $0x90] sm:$0xe] }
 0x225   : > { %v3246_v32 = vadd.f32 %v3166_v13, %v2970_v28  ;;  %v1567_v46 = vunpack.c.h.bf16 %v1534_v22  ;;  %v3247_v42 = vadd.f32 %v3168_v19, %v2971_v4  ;;  %v1602_v2 = vmul.f32 %v5306_v58, %v1566_v54 }
 0x226   : > { %v3444_v43 = vsel %vm2021_vm12, %v3441_v14, %v3443_v41  ;;  %v1639_v35 = vunpack.c.l.bf16 %v1623_v52  ;;  %v3442_v18 = vsel %vm2021_vm12, %v3440_v21, %v3441_v14  ;;  %v1681_v30 = vmul.f32 %v5313_v24, %v1566_v54  ;;  %v2872_v41 = vld [vmem:[#allocation2 + $0x9c] sm:$0xff]  }
 0x227   : > { %v1603_v34 = vmul.f32 %v5306_v58, %v1567_v46  ;;  %v1682_v3 = vmul.f32 %v5313_v24, %v1567_v46  ;;  %v3522_v37 = vadd.f32 %v3442_v18, %v3246_v32  ;;  %v3523_v15 = vadd.f32 %v3444_v43, %v3247_v42 }
 0x228   : > { %v1683_v33 = vmul.f32 %v5313_v24, %v1639_v35  ;;  %v1916_v31 = vunpack.c.l.bf16 %v1900_v10  ;;  %v1800_v29 = vrot.slane %v1681_v30, 1  ;;  %v1959_v0 = vmul.f32 %v5318_v45, %v1567_v46  ;;  %v2993_v10 = vld [vmem:[#allocation2 + $0xa4] sm:$0x1] }
 0x229   : > { %v1801_v48 = vrot.slane %v1682_v3, 1  ;;  %v1960_v50 = vmul.f32 %v5318_v45, %v1639_v35  ;;  %v3561_v36 = vadd.f32 %v5858_v17, %v3522_v37  ;;  %v3562_v51 = vadd.f32 %v5858_v17, %v3523_v15 }
 0x22a   : > { %v1803_v63 = vrot.slane %v1683_v33, 1  ;;  %v1958_v25 = vmul.f32 %v5318_v45, %v1916_v31  ;;  %v2078_v20 = vrot.slane %v1959_v0, 2  ;;  %v6106_v7 = vunpack.c.l.bf16 %v4665_v62 }
 0x22b   : > { %v1802_v55 = vsel %vm1744_vm11, %v1800_v29, %v1801_v48  ;;  %v2080_v49 = vrot.slane %v1960_v50, 2  ;;  %v3593_v38 = vmax.f32 %v3561_v36, 0.0  ;;  %v3594_v9 = vmax.f32 %v3562_v51, 0.0 }
 0x22c   : > { %v1804_v5 = vsel %vm1744_vm11, %v1801_v48, %v1803_v63  ;;  %v1879_v11 = vadd.f32 %v1802_v55, %v1602_v2  ;;  %v2077_v44 = vrot.slane %v1958_v25, 2  ;;  %v6110_v17 = vunpack.c.h.bf16 %v4665_v62  ;;  %v3269_v48 = vld [vmem:[#allocation2 + $0x9c] sm:$0xe] }
 0x22d   : > { %v1880_v6 = vadd.f32 %v1804_v5, %v1603_v34  ;;  %v2081_v40 = vsel %vm2021_vm12, %v2078_v20, %v2080_v49  ;;  %v3625_v47 = vmin.f32 %v3593_v38, 6.0  ;;  %v3626_v39 = vmin.f32 %v3594_v9, 6.0 }
 0x22e   : > { %v2256_v22 = vmul.f32 %v6106_v7, %v5326_v56  ;;  %v2325_v53 = vunpack.c.l.bf16 %v2309_v23  ;;  %v2079_v27 = vsel %vm2021_vm12, %v2077_v44, %v2078_v20  ;;  %v2257_v28 = vmul.f32 %v6110_v17, %v5326_v56  ;;  %v6119_v26 = vpop.f32.mrb[24].mxu1 }
 0x22f   : > { %v2157_v61 = vadd.f32 %v2081_v40, %v1880_v6  ;;  %v2367_v4 = vmul.f32 %v6106_v7, %v5328_v57  ;;  %v3647_v8 = vpack.c.bf16 %v3626_v39, %v3625_v47  ;;  %v2156_v52 = vadd.f32 %v2079_v27, %v1879_v11  ;;  %v6124_v54 = vpop.f32.mrb[25].mxu1 }
 0x230   : > { %v2368_v13 = vmul.f32 %v6110_v17, %v5328_v57  ;;  %v2369_v14 = vmul.f32 %v5328_v57, %v2325_v53  ;;  %v2601_v21 = vunpack.c.l.bf16 %v2585_v16  ;;  %v2644_v46 = vmul.f32 %v6110_v17, %v5330_v59  ;;  %v6128_v42 = vpop.f32.mrb[26].mxu1 }
 0x231   : > { %v2289_v19 = vadd.f32 %v2257_v28, %v2157_v61  ;;  %v2485_v32 = vrot.slane %v2367_v4, 1  ;;  %4858 = vmatprep.mubr.bf16.mxu1 %v3647_v8  ;;  %v2288_v43 = vadd.f32 %v2256_v22, %v2156_v52  ;;  %v2645_v18 = vmul.f32 %v5330_v59, %v2325_v53  ;;  %v6131_v34 = vpop.f32.mrb[27].mxu1  ;;  %v1624_v53 = vld [vmem:[#allocation2 + $0x98] sm:$0x1]  ;;  %v1901_v4 = vld [vmem:[#allocation2 + $0x90] sm:$0xe] }
 0x232   : > { %v2486_v2 = vrot.slane %v2368_v13, 1  ;;  %v2488_v35 = vrot.slane %v2369_v14, 1  ;;  %v2643_v30 = vmul.f32 %v5330_v59, %v2601_v21  ;;  %v2762_v3 = vrot.slane %v2644_v46, 2 }
 0x233   : > { %v2904_v37 = vunpack.c.l.bf16 %v2872_v41  ;;  %v2905_v15 = vunpack.c.h.bf16 %v2872_v41  ;;  %v2764_v62 = vrot.slane %v2645_v18, 2  ;;  %v3009_v29 = vunpack.c.l.bf16 %v2993_v10 }
 0x234   : > { %v2487_v33 = vsel %vm1744_vm11, %v2485_v32, %v2486_v2  ;;  %v2489_v31 = vsel %vm1744_vm11, %v2486_v2, %v2488_v35  ;;  %v2761_v36 = vrot.slane %v2643_v30, 2  ;;  %v3285_v9 = vunpack.c.l.bf16 %v3269_v48  ;;  %v2190_v35 = vld [vmem:[#allocation2 + $0x9c] sm:$0xff]  }
 0x235   : > { %v2564_v0 = vadd.f32 %v2487_v33, %v2288_v43  ;;  %v2565_v50 = vadd.f32 %v2489_v31, %v2289_v19  ;;  %v2940_v51 = vmul.f32 %v5336_v12, %v2904_v37  ;;  %v2765_v63 = vsel %vm2021_vm12, %v2762_v3, %v2764_v62  ;;  %v6166_v62 = vld [vmem:[%s6503_s5] ss:$0 sm:$0xff] }
 0x236   : > { %v2941_v25 = vmul.f32 %v5336_v12, %v2905_v15  ;;  %v3051_v55 = vmul.f32 %v5338_v1, %v2904_v37  ;;  %v3052_v20 = vmul.f32 %v5338_v1, %v2905_v15  ;;  %v2763_v49 = vsel %vm2021_vm12, %v2761_v36, %v2762_v3 }
 0x237   : > { %v2841_v23 = vadd.f32 %v2765_v63, %v2565_v50  ;;  %v3053_v38 = vmul.f32 %v5338_v1, %v3009_v29  ;;  %v2840_v5 = vadd.f32 %v2763_v49, %v2564_v0  ;;  %v3328_v44 = vmul.f32 %v5332_v60, %v2905_v15 }
 0x238   : > { %v3169_v11 = vrot.slane %v3051_v55, 1  ;;  %v3170_v6 = vrot.slane %v3052_v20, 1  ;;  %v3327_v39 = vmul.f32 %v5332_v60, %v3285_v9  ;;  %v3329_v22 = vmul.f32 %v5332_v60, %v3009_v29 }
 0x239   : > { %v2973_v40 = vadd.f32 %v2941_v25, %v2841_v23  ;;  %v3172_v47 = vrot.slane %v3053_v38, 1  ;;  %v2972_v16 = vadd.f32 %v2940_v51, %v2840_v5  ;;  %v3446_v61 = vrot.slane %v3328_v44, 2  ;;  %v2310_v23 = vld [vmem:[#allocation2 + $0xa4] sm:$0x1] }
 0x23a   : > { %v3171_v27 = vsel %vm1744_vm11, %v3169_v11, %v3170_v6  ;;  %v1604_v28 = vmul.f32 %v6106_v7, %v5306_v58  ;;  %v3445_v52 = vrot.slane %v3327_v39, 2  ;;  %v3448_v13 = vrot.slane %v3329_v22, 2 }
 0x23b   : > { %v3173_v8 = vsel %vm1744_vm11, %v3170_v6, %v3172_v47  ;;  %v1605_v14 = vmul.f32 %v6110_v17, %v5306_v58  ;;  %v3248_v41 = vadd.f32 %v3171_v27, %v2972_v16  ;;  %v1640_v32 = vunpack.c.l.bf16 %v1624_v53  ;;  %v2586_v6 = vld [vmem:[#allocation2 + $0x9c] sm:$0xe] }
 0x23c   : > { %v3249_v19 = vadd.f32 %v3173_v8, %v2973_v40  ;;  %v1684_v21 = vmul.f32 %v6106_v7, %v5313_v24  ;;  %v3447_v46 = vsel %vm2021_vm12, %v3445_v52, %v3446_v61  ;;  %v3449_v10 = vsel %vm2021_vm12, %v3446_v61, %v3448_v13  ;;  %v4673_v61 = vld [vmem:[#allocation2 + $0xa8] sm:$0xff]   ;;  %v2994_v13 = vld [vmem:[#allocation2 + $0xb0] sm:$0x1] }
 0x23d   : > { %v1685_v43 = vmul.f32 %v6110_v17, %v5313_v24  ;;  %v1917_v2 = vunpack.c.l.bf16 %v1901_v4  ;;  %v3524_v18 = vadd.f32 %v3447_v46, %v3248_v41  ;;  %v1686_v3 = vmul.f32 %v5313_v24, %v1640_v32 }
 0x23e   : > { %v3525_v30 = vadd.f32 %v3449_v10, %v3249_v19  ;;  %v1805_v37 = vrot.slane %v1684_v21, 1  ;;  %v1962_v7 = vmul.f32 %v6110_v17, %v5318_v45  ;;  %v1963_v31 = vmul.f32 %v5318_v45, %v1640_v32 }
 0x23f   : > { %v1806_v15 = vrot.slane %v1685_v43, 1  ;;  %v1961_v33 = vmul.f32 %v5318_v45, %v1917_v2  ;;  %v3563_v29 = vadd.f32 %v6166_v62, %v3524_v18  ;;  %v1808_v0 = vrot.slane %v1686_v3, 1 }
 0x240   : > { %v3564_v48 = vadd.f32 %v6166_v62, %v3525_v30  ;;  %v2222_v50 = vunpack.c.l.bf16 %v2190_v35  ;;  %v2083_v63 = vrot.slane %v1962_v7, 2  ;;  %v2085_v25 = vrot.slane %v1963_v31, 2  ;;  %v3270_v7 = vld [vmem:[#allocation2 + $0xa8] sm:$0xe] }
 0x241   : > { %v1807_v36 = vsel %vm1744_vm11, %v1805_v37, %v1806_v15  ;;  %v2082_v51 = vrot.slane %v1961_v33, 2  ;;  %v3595_v55 = vmax.f32 %v3563_v29, 0.0  ;;  %v1809_v20 = vsel %vm1744_vm11, %v1806_v15, %v1808_v0 }
 0x242   : > { %v3596_v17 = vmax.f32 %v3564_v48, 0.0  ;;  %v1881_v49 = vadd.f32 %v1807_v36, %v1604_v28  ;;  %v1882_v38 = vadd.f32 %v1809_v20, %v1605_v14  ;;  %v2086_v5 = vsel %vm2021_vm12, %v2083_v63, %v2085_v25  ;;  %v1538_v25 = vld [vmem:[#allocation2 + $0x9c] sm:$0xff]  }
 0x243   : > { %v2084_v9 = vsel %vm2021_vm12, %v2082_v51, %v2083_v63  ;;  %v2223_v11 = vunpack.c.h.bf16 %v2190_v35  ;;  %v3627_v44 = vmin.f32 %v3595_v55, 6.0  ;;  %v2258_v39 = vmul.f32 %v5326_v56, %v2222_v50 }
 0x244   : > { %v3628_v40 = vmin.f32 %v3596_v17, 6.0  ;;  %v2158_v47 = vadd.f32 %v2084_v9, %v1881_v49  ;;  %v2159_v22 = vadd.f32 %v2086_v5, %v1882_v38  ;;  %v2326_v16 = vunpack.c.l.bf16 %v2310_v23 }
 0x245   : > { %v2259_v53 = vmul.f32 %v5326_v56, %v2223_v11  ;;  %v2370_v27 = vmul.f32 %v5328_v57, %v2222_v50  ;;  %v2371_v8 = vmul.f32 %v5328_v57, %v2223_v11  ;;  %v2602_v52 = vunpack.c.l.bf16 %v2586_v6 }
 0x246   : > { %v3648_v28 = vpack.c.bf16 %v3628_v40, %v3627_v44  ;;  %v2290_v4 = vadd.f32 %v2258_v39, %v2158_v47  ;;  %v2372_v41 = vmul.f32 %v5328_v57, %v2326_v16  ;;  %v2647_v32 = vmul.f32 %v5330_v59, %v2223_v11  ;;  %v1625_v47 = vld [vmem:[#allocation2 + $0xa4] sm:$0x1] }
 0x247   : > { %v2291_v14 = vadd.f32 %v2259_v53, %v2159_v22  ;;  %v2490_v19 = vrot.slane %v2370_v27, 1  ;;  %v2491_v21 = vrot.slane %v2371_v8, 1  ;;  %v2646_v46 = vmul.f32 %v5330_v59, %v2602_v52  ;;  %v1902_v8 = vld [vmem:[#allocation2 + $0x9c] sm:$0xe] }
 0x248   : > { %4859 = vmatmul.mubr.bf16.gmra.mrb[44].mxu1 %v3648_v28  ;;  %v2648_v10 = vmul.f32 %v5330_v59, %v2326_v16  ;;  %v6182_v43 = vunpack.c.l.bf16 %v4673_v61  ;;  %v2493_v2 = vrot.slane %v2372_v41, 1  ;;  %v2767_v35 = vrot.slane %v2647_v32, 2 }
 0x249   : > { %v6184_v18 = vunpack.c.h.bf16 %v4673_v61  ;;  %v3010_v30 = vunpack.c.l.bf16 %v2994_v13  ;;  %v2492_v3 = vsel %vm1744_vm11, %v2490_v19, %v2491_v21  ;;  %v2766_v37 = vrot.slane %v2646_v46, 2 }
 0x24a   : > { %v2769_v15 = vrot.slane %v2648_v10, 2  ;;  %v2942_v33 = vmul.f32 %v6182_v43, %v5336_v12  ;;  %v2494_v31 = vsel %vm1744_vm11, %v2491_v21, %v2493_v2  ;;  %v2566_v29 = vadd.f32 %v2492_v3, %v2290_v4 }
 0x24b   : > { %v2943_v48 = vmul.f32 %v6184_v18, %v5336_v12  ;;  %v3054_v0 = vmul.f32 %v6182_v43, %v5338_v1  ;;  %v2567_v50 = vadd.f32 %v2494_v31, %v2291_v14  ;;  %v2768_v36 = vsel %vm2021_vm12, %v2766_v37, %v2767_v35 }
 0x24c   : > { %v2770_v51 = vsel %vm2021_vm12, %v2767_v35, %v2769_v15  ;;  %v3055_v63 = vmul.f32 %v6184_v18, %v5338_v1  ;;  %v2842_v55 = vadd.f32 %v2768_v36, %v2566_v29  ;;  %v3056_v17 = vmul.f32 %v5338_v1, %v3010_v30 }
 0x24d   : > { %v3174_v20 = vrot.slane %v3054_v0, 1  ;;  %v3286_v49 = vunpack.c.l.bf16 %v3270_v7  ;;  %v2843_v23 = vadd.f32 %v2770_v51, %v2567_v50  ;;  %v3331_v9 = vmul.f32 %v6184_v18, %v5332_v60 }
 0x24e   : > { %v3175_v38 = vrot.slane %v3055_v63, 1  ;;  %v3332_v5 = vmul.f32 %v5332_v60, %v3010_v30  ;;  %v2974_v11 = vadd.f32 %v2942_v33, %v2842_v55  ;;  %v3177_v6 = vrot.slane %v3056_v17, 1  ;;  %v2311_v63 = vld [vmem:[#allocation2 + $0xb0] sm:$0x1] }
 0x24f   : > { %v3330_v44 = vmul.f32 %v5332_v60, %v3286_v49  ;;  %v1570_v40 = vunpack.c.l.bf16 %v1538_v25  ;;  %v2975_v39 = vadd.f32 %v2943_v48, %v2843_v23  ;;  %v3451_v53 = vrot.slane %v3331_v9, 2  ;;  %v2587_v49 = vld [vmem:[#allocation2 + $0xa8] sm:$0xe] }
 0x250   : > { %v3176_v22 = vsel %vm1744_vm11, %v3174_v20, %v3175_v38  ;;  %v3453_v16 = vrot.slane %v3332_v5, 2  ;;  %v3178_v27 = vsel %vm1744_vm11, %v3175_v38, %v3177_v6  ;;  %v1571_v4 = vunpack.c.h.bf16 %v1538_v25 }
 0x251   : > { %v3250_v61 = vadd.f32 %v3176_v22, %v2974_v11  ;;  %v3450_v28 = vrot.slane %v3330_v44, 2  ;;  %v3251_v52 = vadd.f32 %v3178_v27, %v2975_v39  ;;  %v1606_v14 = vmul.f32 %v5306_v58, %v1570_v40 }
 0x252   : > { %v3454_v13 = vsel %vm2021_vm12, %v3451_v53, %v3453_v16  ;;  %v1641_v41 = vunpack.c.l.bf16 %v1625_v47  ;;  %v1607_v32 = vmul.f32 %v5306_v58, %v1571_v4  ;;  %v1687_v21 = vmul.f32 %v5313_v24, %v1570_v40  ;;  %v2876_v16 = vld [vmem:[#allocation2 + $0xb4] sm:$0xff]  }
 0x253   : > { %v3452_v19 = vsel %vm2021_vm12, %v3450_v28, %v3451_v53  ;;  %v1688_v46 = vmul.f32 %v5313_v24, %v1571_v4  ;;  %v3527_v2 = vadd.f32 %v3454_v13, %v3251_v52  ;;  %v1918_v30 = vunpack.c.l.bf16 %v1902_v8 }
 0x254   : > { %v3526_v10 = vadd.f32 %v3452_v19, %v3250_v61  ;;  %v1689_v35 = vmul.f32 %v5313_v24, %v1641_v41  ;;  %v1810_v3 = vrot.slane %v1687_v21, 1  ;;  %v1965_v15 = vmul.f32 %v5318_v45, %v1571_v4 }
 0x255   : > { %v1811_v37 = vrot.slane %v1688_v46, 1  ;;  %v1966_v33 = vmul.f32 %v5318_v45, %v1641_v41  ;;  %v3566_v31 = vadd.f32 %v6166_v62, %v3527_v2  ;;  %v1964_v48 = vmul.f32 %v5318_v45, %v1918_v30  ;;  %v2995_v46 = vld [vmem:[#allocation2 + $0xbc] sm:$0x1] }
 0x256   : > { %v3565_v7 = vadd.f32 %v6166_v62, %v3526_v10  ;;  %v1813_v29 = vrot.slane %v1689_v35, 1  ;;  %v2088_v50 = vrot.slane %v1965_v15, 2  ;;  %v2260_v51 = vmul.f32 %v6182_v43, %v5326_v56 }
 0x257   : > { %v1812_v0 = vsel %vm1744_vm11, %v1810_v3, %v1811_v37  ;;  %v2090_v36 = vrot.slane %v1966_v33, 2  ;;  %v3598_v55 = vmax.f32 %v3566_v31, 0.0  ;;  %v2087_v38 = vrot.slane %v1964_v48, 2 }
 0x258   : > { %v3597_v25 = vmax.f32 %v3565_v7, 0.0  ;;  %v1814_v17 = vsel %vm1744_vm11, %v1811_v37, %v1813_v29  ;;  %v1883_v20 = vadd.f32 %v1812_v0, %v1606_v14  ;;  %v2261_v5 = vmul.f32 %v6184_v18, %v5326_v56  ;;  %v3271_v7 = vld [vmem:[#allocation2 + $0xb4] sm:$0xe] }
 0x259   : > { %v1884_v23 = vadd.f32 %v1814_v17, %v1607_v32  ;;  %v2091_v9 = vsel %vm2021_vm12, %v2088_v50, %v2090_v36  ;;  %v3630_v6 = vmin.f32 %v3598_v55, 6.0  ;;  %v2327_v44 = vunpack.c.l.bf16 %v2311_v63 }
 0x25a   : > { %v3629_v11 = vmin.f32 %v3597_v25, 6.0  ;;  %v2373_v40 = vmul.f32 %v6182_v43, %v5328_v57  ;;  %v2089_v47 = vsel %vm2021_vm12, %v2087_v38, %v2088_v50  ;;  %v2374_v22 = vmul.f32 %v6184_v18, %v5328_v57 }
 0x25b   : > { %v2161_v39 = vadd.f32 %v2091_v9, %v1884_v23  ;;  %v2603_v53 = vunpack.c.l.bf16 %v2587_v49  ;;  %v2160_v61 = vadd.f32 %v2089_v47, %v1883_v20  ;;  %v2375_v28 = vmul.f32 %v5328_v57, %v2327_v44 }
 0x25c   : > { %v3649_v27 = vpack.c.bf16 %v3630_v6, %v3629_v11  ;;  %v2495_v4 = vrot.slane %v2373_v40, 1  ;;  %v2496_v52 = vrot.slane %v2374_v22, 1  ;;  %v2650_v14 = vmul.f32 %v6184_v18, %v5330_v59  ;;  %v1626_v11 = vld [vmem:[#allocation2 + $0xb0] sm:$0x1] }
 0x25d   : > { %v2293_v8 = vadd.f32 %v2261_v5, %v2161_v39  ;;  %v2649_v13 = vmul.f32 %v5330_v59, %v2603_v53  ;;  %v2292_v41 = vadd.f32 %v2260_v51, %v2160_v61  ;;  %v2498_v19 = vrot.slane %v2375_v28, 1  ;;  %v1903_v28 = vld [vmem:[#allocation2 + $0xa8] sm:$0xe] }
 0x25e   : > { %4862 = vmatprep.mubr.bf16.mxu1 %v3649_v27  ;;  %v2651_v32 = vmul.f32 %v5330_v59, %v2327_v44  ;;  %v2908_v21 = vunpack.c.l.bf16 %v2876_v16  ;;  %v2497_v10 = vsel %vm1744_vm11, %v2495_v4, %v2496_v52  ;;  %v2772_v35 = vrot.slane %v2650_v14, 2 }
 0x25f   : > { %v2771_v2 = vrot.slane %v2649_v13, 2  ;;  %v2909_v30 = vunpack.c.h.bf16 %v2876_v16  ;;  %v2499_v3 = vsel %vm1744_vm11, %v2496_v52, %v2498_v19  ;;  %v2568_v37 = vadd.f32 %v2497_v10, %v2292_v41 }
 0x260   : > { %v2774_v15 = vrot.slane %v2651_v32, 2  ;;  %v2944_v33 = vmul.f32 %v5336_v12, %v2908_v21  ;;  %v2569_v31 = vadd.f32 %v2499_v3, %v2293_v8  ;;  %v3011_v0 = vunpack.c.l.bf16 %v2995_v46 }
 0x261   : > { %v2773_v29 = vsel %vm2021_vm12, %v2771_v2, %v2772_v35  ;;  %v2945_v48 = vmul.f32 %v5336_v12, %v2909_v30  ;;  %v3057_v51 = vmul.f32 %v5338_v1, %v2908_v21  ;;  %v3058_v63 = vmul.f32 %v5338_v1, %v2909_v30 }
 0x262   : > { %v2775_v50 = vsel %vm2021_vm12, %v2772_v35, %v2774_v15  ;;  %v2844_v36 = vadd.f32 %v2773_v29, %v2568_v37  ;;  %v3059_v55 = vmul.f32 %v5338_v1, %v3011_v0  ;;  %v3287_v17 = vunpack.c.l.bf16 %v3271_v7 }
 0x263   : > { %v2845_v25 = vadd.f32 %v2775_v50, %v2569_v31  ;;  %v3334_v20 = vmul.f32 %v5332_v60, %v2909_v30  ;;  %v6244_v49 = vpop.f32.mrb[28].mxu1  ;;  %v3179_v38 = vrot.slane %v3057_v51, 1  ;;  %v3180_v9 = vrot.slane %v3058_v63, 1  ;;  %v2194_v30 = vld [vmem:[#allocation2 + $0xb4] sm:$0xff]   ;;  %v2312_v51 = vld [vmem:[#allocation2 + $0xbc] sm:$0x1] }
 0x264   : > { %v2976_v23 = vadd.f32 %v2944_v33, %v2844_v36  ;;  %v3335_v5 = vmul.f32 %v5332_v60, %v3011_v0  ;;  %v6247_v6 = vpop.f32.mrb[29].mxu1  ;;  %v3182_v40 = vrot.slane %v3059_v55, 1  ;;  %v3333_v47 = vmul.f32 %v5332_v60, %v3287_v17 }
 0x265   : > { %v2977_v44 = vadd.f32 %v2945_v48, %v2845_v25  ;;  %v3456_v39 = vrot.slane %v3334_v20, 2  ;;  %v6250_v22 = vpop.f32.mrb[30].mxu1  ;;  %v3181_v53 = vsel %vm1744_vm11, %v3179_v38, %v3180_v9  ;;  %v1608_v27 = vmul.f32 %v6182_v43, %v5306_v58 }
 0x266   : > { %v3458_v16 = vrot.slane %v3335_v5, 2  ;;  %v1609_v61 = vmul.f32 %v6184_v18, %v5306_v58  ;;  %v6257_v4 = vpop.f32.mrb[31].mxu1  ;;  %v3183_v8 = vsel %vm1744_vm11, %v3180_v9, %v3182_v40  ;;  %v3252_v52 = vadd.f32 %v3181_v53, %v2976_v23  ;;  %v2588_v40 = vld [vmem:[#allocation2 + $0xb4] sm:$0xe] }
 0x267   : > { %v3455_v13 = vrot.slane %v3333_v47, 2  ;;  %v1642_v14 = vunpack.c.l.bf16 %v1626_v11  ;;  %v3253_v41 = vadd.f32 %v3183_v8, %v2977_v44  ;;  %v1690_v32 = vmul.f32 %v6182_v43, %v5313_v24 }
 0x268   : > { %v3459_v19 = vsel %vm2021_vm12, %v3456_v39, %v3458_v16  ;;  %v1691_v21 = vmul.f32 %v6184_v18, %v5313_v24  ;;  %v1919_v2 = vunpack.c.l.bf16 %v1903_v28  ;;  %v1968_v35 = vmul.f32 %v6184_v18, %v5318_v45 }
 0x269   : > { %v3457_v46 = vsel %vm2021_vm12, %v3455_v13, %v3456_v39  ;;  %v1692_v10 = vmul.f32 %v5313_v24, %v1642_v14  ;;  %v3529_v37 = vadd.f32 %v3459_v19, %v3253_v41  ;;  %v1815_v15 = vrot.slane %v1690_v32, 1  ;;  %v2996_v32 = vld [vmem:[#allocation2 + $0xc8] sm:$0x1] }
 0x26a   : > { %v3528_v3 = vadd.f32 %v3457_v46, %v3252_v52  ;;  %v1816_v33 = vrot.slane %v1691_v21, 1  ;;  %v1967_v31 = vmul.f32 %v5318_v45, %v1919_v2  ;;  %v1969_v43 = vmul.f32 %v5318_v45, %v1642_v14  ;;  %v4674_v52 = vld [vmem:[#allocation2 + $0xc0] sm:$0xff]  }
 0x26b   : > { %v1818_v7 = vrot.slane %v1692_v10, 1  ;;  %v2093_v29 = vrot.slane %v1968_v35, 2  ;;  %v3568_v0 = vadd.f32 %v6166_v62, %v3529_v37  ;;  %v2226_v36 = vunpack.c.l.bf16 %v2194_v30 }
 0x26c   : > { %v3567_v48 = vadd.f32 %v6166_v62, %v3528_v3  ;;  %v1817_v50 = vsel %vm1744_vm11, %v1815_v15, %v1816_v33  ;;  %v2092_v25 = vrot.slane %v1967_v31, 2  ;;  %v2095_v55 = vrot.slane %v1969_v43, 2  ;;  %v3272_v43 = vld [vmem:[#allocation2 + $0xc0] sm:$0xe] }
 0x26d   : > { %v1819_v18 = vsel %vm1744_vm11, %v1816_v33, %v1818_v7  ;;  %v1885_v63 = vadd.f32 %v1817_v50, %v1608_v27  ;;  %v3600_v20 = vmax.f32 %v3568_v0, 0.0  ;;  %v2227_v38 = vunpack.c.h.bf16 %v2194_v30 }
 0x26e   : > { %v3599_v17 = vmax.f32 %v3567_v48, 0.0  ;;  %v1886_v23 = vadd.f32 %v1819_v18, %v1609_v61  ;;  %v2094_v9 = vsel %vm2021_vm12, %v2092_v25, %v2093_v29  ;;  %v2096_v5 = vsel %vm2021_vm12, %v2093_v29, %v2095_v55 }
 0x26f   : > { %v2262_v11 = vmul.f32 %v5326_v56, %v2226_v36  ;;  %v2328_v44 = vunpack.c.l.bf16 %v2312_v51  ;;  %v3632_v39 = vmin.f32 %v3600_v20, 6.0  ;;  %v2162_v53 = vadd.f32 %v2094_v9, %v1885_v63 }
 0x270   : > { %v3631_v47 = vmin.f32 %v3599_v17, 6.0  ;;  %v2163_v16 = vadd.f32 %v2096_v5, %v1886_v23  ;;  %v2263_v27 = vmul.f32 %v5326_v56, %v2227_v38  ;;  %v2376_v28 = vmul.f32 %v5328_v57, %v2226_v36  ;;  %v1542_v23 = vld [vmem:[#allocation2 + $0xb4] sm:$0xff]  }
 0x271   : > { %v2377_v8 = vmul.f32 %v5328_v57, %v2227_v38  ;;  %v2378_v61 = vmul.f32 %v5328_v57, %v2328_v44  ;;  %v2294_v14 = vadd.f32 %v2262_v11, %v2162_v53  ;;  %v2604_v41 = vunpack.c.l.bf16 %v2588_v40 }
 0x272   : > { %v3650_v13 = vpack.c.bf16 %v3632_v39, %v3631_v47  ;;  %v2653_v19 = vmul.f32 %v5330_v59, %v2227_v38  ;;  %v2295_v21 = vadd.f32 %v2263_v27, %v2163_v16  ;;  %v2500_v46 = vrot.slane %v2376_v28, 1 }
 0x273   : > { %v2501_v10 = vrot.slane %v2377_v8, 1  ;;  %v2503_v2 = vrot.slane %v2378_v61, 1  ;;  %v2652_v35 = vmul.f32 %v5330_v59, %v2604_v41  ;;  %v2654_v30 = vmul.f32 %v5330_v59, %v2328_v44  ;;  %v1627_v8 = vld [vmem:[#allocation2 + $0xbc] sm:$0x1] }
 0x274   : > { %4863 = vmatmul.mubr.bf16.gmra.mrb[48].mxu1 %v3650_v13  ;;  %v2777_v3 = vrot.slane %v2653_v19, 2  ;;  %v6285_v37 = vunpack.c.l.bf16 %v4674_v52  ;;  %v6289_v7 = vunpack.c.h.bf16 %v4674_v52  ;;  %v3012_v31 = vunpack.c.l.bf16 %v2996_v32 }
 0x275   : > { %v2502_v15 = vsel %vm1744_vm11, %v2500_v46, %v2501_v10  ;;  %v2504_v33 = vsel %vm1744_vm11, %v2501_v10, %v2503_v2  ;;  %v2776_v0 = vrot.slane %v2652_v35, 2  ;;  %v2779_v50 = vrot.slane %v2654_v30, 2  ;;  %v1904_v46 = vld [vmem:[#allocation2 + $0xb4] sm:$0xe] }
 0x276   : > { %v2570_v29 = vadd.f32 %v2502_v15, %v2294_v14  ;;  %v2571_v48 = vadd.f32 %v2504_v33, %v2295_v21  ;;  %v2946_v36 = vmul.f32 %v6285_v37, %v5336_v12  ;;  %v2947_v51 = vmul.f32 %v6289_v7, %v5336_v12 }
 0x277   : > { %v3060_v18 = vmul.f32 %v6285_v37, %v5338_v1  ;;  %v3061_v63 = vmul.f32 %v6289_v7, %v5338_v1  ;;  %v2778_v25 = vsel %vm2021_vm12, %v2776_v0, %v2777_v3  ;;  %v2780_v55 = vsel %vm2021_vm12, %v2777_v3, %v2779_v50 }
 0x278   : > { %v3062_v17 = vmul.f32 %v5338_v1, %v3012_v31  ;;  %v3288_v20 = vunpack.c.l.bf16 %v3272_v43  ;;  %v2846_v38 = vadd.f32 %v2778_v25, %v2570_v29  ;;  %v2847_v9 = vadd.f32 %v2780_v55, %v2571_v48 }
 0x279   : > { %v3184_v5 = vrot.slane %v3060_v18, 1  ;;  %v3185_v11 = vrot.slane %v3061_v63, 1  ;;  %v3337_v47 = vmul.f32 %v6289_v7, %v5332_v60  ;;  %v3338_v39 = vmul.f32 %v5332_v60, %v3012_v31 }
 0x27a   : > { %v3187_v44 = vrot.slane %v3062_v17, 1  ;;  %v3336_v40 = vmul.f32 %v5332_v60, %v3288_v20  ;;  %v2978_v53 = vadd.f32 %v2946_v36, %v2846_v38  ;;  %v2979_v16 = vadd.f32 %v2947_v51, %v2847_v9  ;;  %v2313_v38 = vld [vmem:[#allocation2 + $0xc8] sm:$0x1] }
 0x27b   : > { %v3186_v27 = vsel %vm1744_vm11, %v3184_v5, %v3185_v11  ;;  %v1574_v28 = vunpack.c.l.bf16 %v1542_v23  ;;  %v3461_v13 = vrot.slane %v3337_v47, 2  ;;  %v3463_v14 = vrot.slane %v3338_v39, 2 }
 0x27c   : > { %v3188_v61 = vsel %vm1744_vm11, %v3185_v11, %v3187_v44  ;;  %v3460_v52 = vrot.slane %v3336_v40, 2  ;;  %v3254_v41 = vadd.f32 %v3186_v27, %v2978_v53  ;;  %v1575_v32 = vunpack.c.h.bf16 %v1542_v23  ;;  %v2589_v40 = vld [vmem:[#allocation2 + $0xc0] sm:$0xe] }
 0x27d   : > { %v3255_v19 = vadd.f32 %v3188_v61, %v2979_v16  ;;  %v1610_v21 = vmul.f32 %v5306_v58, %v1574_v28  ;;  %v3464_v2 = vsel %vm2021_vm12, %v3461_v13, %v3463_v14  ;;  %v1643_v35 = vunpack.c.l.bf16 %v1627_v8  ;;  %v2880_v14 = vld [vmem:[#allocation2 + $0xcc] sm:$0xff]  }
 0x27e   : > { %v3462_v10 = vsel %vm2021_vm12, %v3460_v52, %v3461_v13  ;;  %v1693_v30 = vmul.f32 %v5313_v24, %v1574_v28  ;;  %v1611_v33 = vmul.f32 %v5306_v58, %v1575_v32  ;;  %v1694_v31 = vmul.f32 %v5313_v24, %v1575_v32 }
 0x27f   : > { %v3530_v3 = vadd.f32 %v3462_v10, %v3254_v41  ;;  %v3531_v15 = vadd.f32 %v3464_v2, %v3255_v19  ;;  %v1695_v43 = vmul.f32 %v5313_v24, %v1643_v35  ;;  %v1920_v48 = vunpack.c.l.bf16 %v1904_v46 }
 0x280   : > { %v1820_v29 = vrot.slane %v1693_v30, 1  ;;  %v1971_v0 = vmul.f32 %v5318_v45, %v1575_v32  ;;  %v1821_v51 = vrot.slane %v1694_v31, 1  ;;  %v1972_v18 = vmul.f32 %v5318_v45, %v1643_v35  ;;  %v2997_v35 = vld [vmem:[#allocation2 + $0xd4] sm:$0x1] }
 0x281   : > { %v3569_v50 = vadd.f32 %v6166_v62, %v3530_v3  ;;  %v3570_v36 = vadd.f32 %v6166_v62, %v3531_v15  ;;  %v1823_v63 = vrot.slane %v1695_v43, 1  ;;  %v1970_v25 = vmul.f32 %v5318_v45, %v1920_v48 }
 0x282   : > { %v2098_v55 = vrot.slane %v1971_v0, 2  ;;  %v2264_v58 = vmul.f32 %v6285_v37, %v5326_v56  ;;  %v1822_v20 = vsel %vm1744_vm11, %v1820_v29, %v1821_v51  ;;  %v2100_v23 = vrot.slane %v1972_v18, 2 }
 0x283   : > { %v3601_v17 = vmax.f32 %v3569_v50, 0.0  ;;  %v3602_v24 = vmax.f32 %v3570_v36, 0.0  ;;  %v1824_v9 = vsel %vm1744_vm11, %v1821_v51, %v1823_v63  ;;  %v1887_v5 = vadd.f32 %v1822_v20, %v1610_v21 }
 0x284   : > { %v2097_v11 = vrot.slane %v1970_v25, 2  ;;  %v2265_v44 = vmul.f32 %v6289_v7, %v5326_v56  ;;  %v1888_v39 = vadd.f32 %v1824_v9, %v1611_v33  ;;  %v2101_v53 = vsel %vm2021_vm12, %v2098_v55, %v2100_v23  ;;  %v6355_v25 = vld [vmem:[%s6505_s7] ss:$0 sm:$0xff] }
 0x285   : > { %v3633_v47 = vmin.f32 %v3601_v17, 6.0  ;;  %v3634_v45 = vmin.f32 %v3602_v24, 6.0  ;;  %v2329_v27 = vunpack.c.l.bf16 %v2313_v38  ;;  %v2379_v28 = vmul.f32 %v6285_v37, %v5328_v57 }
 0x286   : > { %v2099_v16 = vsel %vm2021_vm12, %v2097_v11, %v2098_v55  ;;  %v2380_v8 = vmul.f32 %v6289_v7, %v5328_v57  ;;  %v2165_v13 = vadd.f32 %v2101_v53, %v1888_v39  ;;  %v2605_v56 = vunpack.c.l.bf16 %v2589_v40  ;;  %v4590_v53 = vld [vmem:[%s6347_s21] sm:$0xff]  }
 0x287   : > { %v3651_v61 = vpack.c.bf16 %v3634_v45, %v3633_v47  ;;  %v2164_v52 = vadd.f32 %v2099_v16, %v1887_v5  ;;  %v2381_v41 = vmul.f32 %v5328_v57, %v2329_v27  ;;  %v2505_v19 = vrot.slane %v2379_v28, 1  ;;  %v4675_v5 = vld [vmem:[%s6347_s21 + $0x8] sm:$0xff]  }
 0x288   : > { %v2506_v32 = vrot.slane %v2380_v8, 1  ;;  %v2656_v21 = vmul.f32 %v6289_v7, %v5330_v59  ;;  %v2297_v10 = vadd.f32 %v2265_v44, %v2165_v13  ;;  %v2655_v37 = vmul.f32 %v5330_v59, %v2605_v56 }
 0x289   : > { %4866 = vmatprep.mubr.bf16.mxu1 %v3651_v61  ;;  %v2296_v46 = vadd.f32 %v2264_v58, %v2164_v52  ;;  %v2657_v2 = vmul.f32 %v5330_v59, %v2329_v27  ;;  %v2508_v3 = vrot.slane %v2381_v41, 1  ;;  %v2912_v57 = vunpack.c.l.bf16 %v2880_v14  ;;  %v3273_v59 = vld [vmem:[#allocation2 + $0xcc] sm:$0xe]  ;;  %v4677_v41 = vld [vmem:[%s6347_s21 + $0x18] sm:$0xff]  }
 0x28a   : > { %v2507_v30 = vsel %vm1744_vm11, %v2505_v19, %v2506_v32  ;;  %v2782_v15 = vrot.slane %v2656_v21, 2  ;;  %v2781_v31 = vrot.slane %v2655_v37, 2  ;;  %v2913_v29 = vunpack.c.h.bf16 %v2880_v14 }
 0x28b   : > { %v2572_v33 = vadd.f32 %v2507_v30, %v2296_v46  ;;  %v2784_v43 = vrot.slane %v2657_v2, 2  ;;  %v2509_v7 = vsel %vm1744_vm11, %v2506_v32, %v2508_v3  ;;  %v2948_v48 = vmul.f32 %v5336_v12, %v2912_v57 }
 0x28c   : > { %v3013_v0 = vunpack.c.l.bf16 %v2997_v35  ;;  %v3063_v50 = vmul.f32 %v5338_v1, %v2912_v57  ;;  %v2573_v36 = vadd.f32 %v2509_v7, %v2297_v10  ;;  %v2783_v51 = vsel %vm2021_vm12, %v2781_v31, %v2782_v15 }
 0x28d   : > { %v2785_v18 = vsel %vm2021_vm12, %v2782_v15, %v2784_v43  ;;  %v2949_v63 = vmul.f32 %v5336_v12, %v2913_v29  ;;  %v2848_v55 = vadd.f32 %v2783_v51, %v2572_v33  ;;  %v3064_v58 = vmul.f32 %v5338_v1, %v2913_v29 }
 0x28e   : > { %v3065_v17 = vmul.f32 %v5338_v1, %v3013_v0  ;;  %v3189_v24 = vrot.slane %v3063_v50, 1  ;;  %v2849_v20 = vadd.f32 %v2785_v18, %v2573_v36  ;;  %v3289_v23 = vunpack.c.l.bf16 %v3273_v59 }
 0x28f   : > { %v3340_v38 = vmul.f32 %v5332_v60, %v2913_v29  ;;  %v3341_v9 = vmul.f32 %v5332_v60, %v3013_v0  ;;  %v2980_v12 = vadd.f32 %v2948_v48, %v2848_v55  ;;  %v3190_v11 = vrot.slane %v3064_v58, 1  ;;  %v4678_v55 = vld [vmem:[%s6347_s21 + $0x20] sm:$0xff]  }
 0x290   : > { %v3192_v44 = vrot.slane %v3065_v17, 1  ;;  %v3799_v40 = vadd.f32 %v6119_v26, %v6355_v25  ;;  %v2981_v47 = vadd.f32 %v2949_v63, %v2849_v20  ;;  %v3339_v45 = vmul.f32 %v5332_v60, %v3289_v23  ;;  %v4679_v63 = vld [vmem:[%s6347_s21 + $0x28] sm:$0xff]  }
 0x291   : > { %v3466_v39 = vrot.slane %v3340_v38, 2  ;;  %v3468_v1 = vrot.slane %v3341_v9, 2  ;;  %v3191_v16 = vsel %vm1744_vm11, %v3189_v24, %v3190_v11  ;;  %v4595_v28 = vunpack.c.l.bf16 %v4675_v5 }
 0x292   : > { %v3193_v27 = vsel %vm1744_vm11, %v3190_v11, %v3192_v44  ;;  %v3256_v8 = vadd.f32 %v3191_v16, %v2980_v12  ;;  %v3465_v52 = vrot.slane %v3339_v45, 2  ;;  %v3791_v60 = vadd.f32 %v6355_v25, %v6124_v54 }
 0x293   : > { %v3257_v61 = vadd.f32 %v3193_v27, %v2981_v47  ;;  %v3469_v26 = vsel %vm2021_vm12, %v3466_v39, %v3468_v1  ;;  %v3983_v13 = vadd.f32 %v4595_v28, %v3799_v40  ;;  %v4591_v56 = vunpack.c.l.bf16 %v4590_v53 }
 0x294   : > { %v3802_v14 = vadd.f32 %v6128_v42, %v6355_v25  ;;  %v3467_v19 = vsel %vm2021_vm12, %v3465_v52, %v3466_v39  ;;  %v4596_v21 = vunpack.c.h.bf16 %v4675_v5  ;;  %v3794_v46 = vadd.f32 %v6355_v25, %v6131_v34  ;;  %v4676_v42 = vld [vmem:[%s6347_s21 + $0x10] sm:$0xff]  }
 0x295   : > { %v3533_v32 = vadd.f32 %v3469_v26, %v3257_v61  ;;  %v3532_v54 = vadd.f32 %v3467_v19, %v3256_v8  ;;  %v4438_v10 = vpack.c.bf16 %v3983_v13, %v3983_v13  ;;  %v3981_v37 = vadd.f32 %v4591_v56, %v3791_v60  ;;  %v4848_v35 = vpop.f32.mrb[32].mxu1  ;;  %v4681_v60 = vld [vmem:[%s6347_s21 + $0x38] sm:$0xff]   ;;  %v4680_v56 = vld [vmem:[%s6347_s21 + $0x30] sm:$0xff]  }
 0x296   : > { %v4592_v2 = vunpack.c.h.bf16 %v4590_v53  ;;  %v3984_v3 = vadd.f32 %v4596_v21, %v3802_v14  ;;  %v3815_v15 = vadd.f32 %v6244_v49, %v6355_v25  ;;  %v4603_v57 = vunpack.c.l.bf16 %v4677_v41  ;;  %v3822_v33 = vpop.f32.mrb[33].mxu1 }
 0x297   : > { %v3572_v30 = vadd.f32 %v6166_v62, %v3533_v32  ;;  %v3571_v31 = vadd.f32 %v6166_v62, %v3532_v54  ;;  %4144 = vst.msk [vmem:[%s6380_s27 + $0x8] sm:$0xf] %vm4141_vm13, %v4438_v10  ;;  %v4436_v34 = vpack.c.bf16 %v3981_v37, %v3981_v37  ;;  %v3807_v29 = vadd.f32 %v6355_v25, %v6247_v6  ;;  %v4849_v7 = vpop.f32.mrb[34].mxu1 }
 0x298   : > { %v3982_v43 = vadd.f32 %v4592_v2, %v3794_v46  ;;  %v4439_v0 = vpack.c.bf16 %v3984_v3, %v3984_v3  ;;  %v3987_v50 = vadd.f32 %v4603_v57, %v3815_v15  ;;  %v4599_v49 = vunpack.c.l.bf16 %v4676_v42  ;;  %v3825_v59 = vpop.f32.mrb[35].mxu1 }
 0x299   : > { %v3604_v48 = vmax.f32 %v3572_v30, 0.0  ;;  %v3603_v36 = vmax.f32 %v3571_v31, 0.0  ;;  %4142 = vst.msk [vmem:[%s6380_s27] sm:$0xf] %vm4141_vm13, %v4436_v34  ;;  %v3818_v51 = vadd.f32 %v6250_v22, %v6355_v25  ;;  %v4604_v18 = vunpack.c.h.bf16 %v4677_v41 }
 0x29a   : > { %v4437_v62 = vpack.c.bf16 %v3982_v43, %v3982_v43  ;;  %4145 = vst.msk [vmem:[%s6380_s27 + $0xc] sm:$0xf] %vm4141_vm13, %v4439_v0  ;;  %v4442_v6 = vpack.c.bf16 %v3987_v50, %v3987_v50  ;;  %v3985_v17 = vadd.f32 %v4599_v49, %v3807_v29  ;;  %v3810_v24 = vadd.f32 %v6355_v25, %v6257_v4  ;;  %v4683_v29 = vld [vmem:[%s6347_s21 + $0x48] sm:$0xff]  }
 0x29b   : > { %v3636_v58 = vmin.f32 %v3604_v48, 6.0  ;;  %v3635_v20 = vmin.f32 %v3603_v36, 6.0  ;;  %v3988_v23 = vadd.f32 %v4604_v18, %v3818_v51  ;;  %v4600_v38 = vunpack.c.h.bf16 %v4676_v42 }
 0x29c   : > { %4143 = vst.msk [vmem:[%s6380_s27 + $0x4] sm:$0xf] %vm4141_vm13, %v4437_v62  ;;  %v3831_v9 = vadd.f32 %v4848_v35, %v6355_v25  ;;  %4148 = vst.msk [vmem:[%s6380_s27 + $0x18] sm:$0xf] %vm4141_vm13, %v4442_v6  ;;  %v4440_v22 = vpack.c.bf16 %v3985_v17, %v3985_v17  ;;  %v4611_v5 = vunpack.c.l.bf16 %v4679_v63  ;;  %v3823_v12 = vadd.f32 %v6355_v25, %v3822_v33 }
 0x29d   : > { %v4607_v11 = vunpack.c.l.bf16 %v4678_v55  ;;  %v3652_v44 = vpack.c.bf16 %v3636_v58, %v3635_v20  ;;  %v4443_v40 = vpack.c.bf16 %v3988_v23, %v3988_v23  ;;  %v3986_v47 = vadd.f32 %v4600_v38, %v3810_v24 }
 0x29e   : > { %v3834_v4 = vadd.f32 %v4849_v7, %v6355_v25  ;;  %4146 = vst.msk [vmem:[%s6380_s27 + $0x10] sm:$0xf] %vm4141_vm13, %v4440_v22  ;;  %v3991_v45 = vadd.f32 %v4611_v5, %v3831_v9  ;;  %v4612_v1 = vunpack.c.h.bf16 %v4679_v63  ;;  %v3826_v53 = vadd.f32 %v6355_v25, %v3825_v59  ;;  %v4682_v7 = vld [vmem:[%s6347_s21 + $0x40] sm:$0xff]   ;;  %v4685_v5 = vld [vmem:[%s6347_s21 + $0x58] sm:$0xff]  }
 0x29f   : > { %v3989_v39 = vadd.f32 %v4607_v11, %v3823_v12  ;;  %4867 = vmatmul.mubr.bf16.gmra.mrb[52].mxu1 %v3652_v44  ;;  %4149 = vst.msk [vmem:[%s6380_s27 + $0x1c] sm:$0xf] %vm4141_vm13, %v4443_v40  ;;  %v4441_v16 = vpack.c.bf16 %v3986_v47, %v3986_v47  ;;  %v4608_v27 = vunpack.c.h.bf16 %v4678_v55  ;;  %v4619_v14 = vunpack.c.l.bf16 %v4681_v60  ;;  %v4684_v12 = vld [vmem:[%s6347_s21 + $0x50] sm:$0xff]  }
 0x2a0   : > { %v4446_v28 = vpack.c.bf16 %v3991_v45, %v3991_v45  ;;  %v3992_v61 = vadd.f32 %v4612_v1, %v3834_v4  ;;  %v4615_v19 = vunpack.c.l.bf16 %v4680_v56  ;;  %v4620_v46 = vunpack.c.h.bf16 %v4681_v60 }
 0x2a1   : > { %v4444_v8 = vpack.c.bf16 %v3989_v39, %v3989_v39  ;;  %4147 = vst.msk [vmem:[%s6380_s27 + $0x14] sm:$0xf] %vm4141_vm13, %v4441_v16  ;;  %v3990_v52 = vadd.f32 %v4608_v27, %v3826_v53  ;;  %v4616_v37 = vunpack.c.h.bf16 %v4680_v56  ;;  %v4627_v48 = vunpack.c.l.bf16 %v4683_v29 }
 0x2a2   : > { %4152 = vst.msk [vmem:[%s6380_s27 + $0x28] sm:$0xf] %vm4141_vm13, %v4446_v28  ;;  %v4447_v26 = vpack.c.bf16 %v3992_v61, %v3992_v61  ;;  %v4623_v50 = vunpack.c.l.bf16 %v4682_v7  ;;  %v4628_v36 = vunpack.c.h.bf16 %v4683_v29  ;;  %v4624_v18 = vunpack.c.h.bf16 %v4682_v7 }
 0x2a3   : > { %4150 = vst.msk [vmem:[%s6380_s27 + $0x20] sm:$0xf] %vm4141_vm13, %v4444_v8  ;;  %v4445_v13 = vpack.c.bf16 %v3990_v52, %v3990_v52  ;;  %v4635_v11 = vunpack.c.l.bf16 %v4685_v5  ;;  %v4631_v40 = vunpack.c.l.bf16 %v4684_v12  ;;  %v4636_v45 = vunpack.c.h.bf16 %v4685_v5 }
 0x2a4   : > { %4153 = vst.msk [vmem:[%s6380_s27 + $0x2c] sm:$0xf] %vm4141_vm13, %v4447_v26  ;;  %v4632_v53 = vunpack.c.h.bf16 %v4684_v12 }
 0x2a5   : > { %4151 = vst.msk [vmem:[%s6380_s27 + $0x24] sm:$0xf] %vm4141_vm13, %v4445_v13 }
 0x2c3   : > { %v4852_v41 = vpop.f32.mrb[36].mxu1 }
 0x2c4   : > { %v3847_v32 = vadd.f32 %v4852_v41, %v6355_v25  ;;  %v3838_v21 = vpop.f32.mrb[37].mxu1  ;;  %v4687_v41 = vld [vmem:[%s6347_s21 + $0x68] sm:$0xff]  }
 0x2c5   : > { %v3839_v54 = vadd.f32 %v6355_v25, %v3838_v21  ;;  %v4853_v10 = vpop.f32.mrb[38].mxu1 }
 0x2c6   : > { %v3995_v2 = vadd.f32 %v4619_v14, %v3847_v32  ;;  %v3850_v42 = vadd.f32 %v4853_v10, %v6355_v25  ;;  %v3841_v35 = vpop.f32.mrb[39].mxu1  ;;  %v4643_v32 = vunpack.c.l.bf16 %v4687_v41 }
 0x2c7   : > { %v3993_v30 = vadd.f32 %v4615_v19, %v3839_v54  ;;  %v3842_v3 = vadd.f32 %v6355_v25, %v3841_v35  ;;  %v4686_v19 = vld [vmem:[%s6347_s21 + $0x60] sm:$0xff]  }
 0x2c8   : > { %v4450_v15 = vpack.c.bf16 %v3995_v2, %v3995_v2  ;;  %v3996_v57 = vadd.f32 %v4620_v46, %v3850_v42  ;;  %v4639_v46 = vunpack.c.l.bf16 %v4686_v19  ;;  %v4640_v35 = vunpack.c.h.bf16 %v4686_v19 }
 0x2c9   : > { %v4448_v33 = vpack.c.bf16 %v3993_v30, %v3993_v30  ;;  %v3994_v31 = vadd.f32 %v4616_v37, %v3842_v3  ;;  %v4644_v37 = vunpack.c.h.bf16 %v4687_v41 }
 0x2ca   : > { %4156 = vst.msk [vmem:[%s6380_s27 + $0x38] sm:$0xf] %vm4141_vm13, %v4450_v15  ;;  %v4451_v34 = vpack.c.bf16 %v3996_v57, %v3996_v57 }
 0x2cb   : > { %4154 = vst.msk [vmem:[%s6380_s27 + $0x30] sm:$0xf] %vm4141_vm13, %v4448_v33  ;;  %v4449_v43 = vpack.c.bf16 %v3994_v31, %v3994_v31 }
 0x2cc   : > { %4157 = vst.msk [vmem:[%s6380_s27 + $0x3c] sm:$0xf] %vm4141_vm13, %v4451_v34 }
 0x2cd   : > { %4155 = vst.msk [vmem:[%s6380_s27 + $0x34] sm:$0xf] %vm4141_vm13, %v4449_v43 }
 0x2ef   : > { %v4856_v0 = vpop.f32.mrb[40].mxu1 }
 0x2f0   : > { %v3863_v49 = vadd.f32 %v4856_v0, %v6355_v25  ;;  %v3854_v59 = vpop.f32.mrb[41].mxu1  ;;  %v4689_v0 = vld [vmem:[%s6347_s21 + $0x78] sm:$0xff]  }
 0x2f1   : > { %v3855_v62 = vadd.f32 %v6355_v25, %v3854_v59  ;;  %v4857_v51 = vpop.f32.mrb[42].mxu1 }
 0x2f2   : > { %v3999_v63 = vadd.f32 %v4627_v48, %v3863_v49  ;;  %v3866_v55 = vadd.f32 %v4857_v51, %v6355_v25  ;;  %v3857_v58 = vpop.f32.mrb[43].mxu1  ;;  %v4651_v49 = vunpack.c.l.bf16 %v4689_v0 }
 0x2f3   : > { %v3997_v6 = vadd.f32 %v4623_v50, %v3855_v62  ;;  %v3858_v17 = vadd.f32 %v6355_v25, %v3857_v58  ;;  %v4688_v50 = vld [vmem:[%s6347_s21 + $0x70] sm:$0xff]  }
 0x2f4   : > { %v4454_v24 = vpack.c.bf16 %v3999_v63, %v3999_v63  ;;  %v4000_v20 = vadd.f32 %v4628_v36, %v3866_v55  ;;  %v4647_v36 = vunpack.c.l.bf16 %v4688_v50  ;;  %v4648_v58 = vunpack.c.h.bf16 %v4688_v50 }
 0x2f5   : > { %v4452_v23 = vpack.c.bf16 %v3997_v6, %v3997_v6  ;;  %v3998_v38 = vadd.f32 %v4624_v18, %v3858_v17  ;;  %v4652_v18 = vunpack.c.h.bf16 %v4689_v0 }
 0x2f6   : > { %4160 = vst.msk [vmem:[%s6380_s27 + $0x48] sm:$0xf] %vm4141_vm13, %v4454_v24  ;;  %v4455_v9 = vpack.c.bf16 %v4000_v20, %v4000_v20 }
 0x2f7   : > { %4158 = vst.msk [vmem:[%s6380_s27 + $0x40] sm:$0xf] %vm4141_vm13, %v4452_v23  ;;  %v4453_v22 = vpack.c.bf16 %v3998_v38, %v3998_v38 }
 0x2f8   : > { %4161 = vst.msk [vmem:[%s6380_s27 + $0x4c] sm:$0xf] %vm4141_vm13, %v4455_v9 }
 0x2f9   : > { %4159 = vst.msk [vmem:[%s6380_s27 + $0x44] sm:$0xf] %vm4141_vm13, %v4453_v22 }
 0x31b   : > { %v4860_v44 = vpop.f32.mrb[44].mxu1 }
 0x31c   : > { %v3879_v47 = vadd.f32 %v4860_v44, %v6355_v25  ;;  %v3870_v4 = vpop.f32.mrb[45].mxu1 }
 0x31d   : > { %v3871_v39 = vadd.f32 %v6355_v25, %v3870_v4  ;;  %v4861_v1 = vpop.f32.mrb[46].mxu1 }
 0x31e   : > { %v4003_v16 = vadd.f32 %v4635_v11, %v3879_v47  ;;  %v3882_v27 = vadd.f32 %v4861_v1, %v6355_v25  ;;  %v3873_v28 = vpop.f32.mrb[47].mxu1 }
 0x31f   : > { %v4001_v8 = vadd.f32 %v4631_v40, %v3871_v39  ;;  %v3874_v61 = vadd.f32 %v6355_v25, %v3873_v28 }
 0x320   : > { %v4458_v52 = vpack.c.bf16 %v4003_v16, %v4003_v16  ;;  %v4004_v26 = vadd.f32 %v4636_v45, %v3882_v27 }
 0x321   : > { %v4456_v13 = vpack.c.bf16 %v4001_v8, %v4001_v8  ;;  %v4002_v60 = vadd.f32 %v4632_v53, %v3874_v61 }
 0x322   : > { %4164 = vst.msk [vmem:[%s6380_s27 + $0x58] sm:$0xf] %vm4141_vm13, %v4458_v52  ;;  %v4459_v56 = vpack.c.bf16 %v4004_v26, %v4004_v26 }
 0x323   : > { %4162 = vst.msk [vmem:[%s6380_s27 + $0x50] sm:$0xf] %vm4141_vm13, %v4456_v13  ;;  %v4457_v14 = vpack.c.bf16 %v4002_v60, %v4002_v60 }
 0x324   : > { %4165 = vst.msk [vmem:[%s6380_s27 + $0x5c] sm:$0xf] %vm4141_vm13, %v4459_v56 }
 0x325   : > { %4163 = vst.msk [vmem:[%s6380_s27 + $0x54] sm:$0xf] %vm4141_vm13, %v4457_v14 }
 0x347   : > { %v4864_v21 = vpop.f32.mrb[48].mxu1 }
 0x348   : > { %v3895_v54 = vadd.f32 %v4864_v21, %v6355_v25  ;;  %v3886_v10 = vpop.f32.mrb[49].mxu1 }
 0x349   : > { %v3887_v2 = vadd.f32 %v6355_v25, %v3886_v10  ;;  %v4865_v42 = vpop.f32.mrb[50].mxu1 }
 0x34a   : > { %v4007_v30 = vadd.f32 %v4643_v32, %v3895_v54  ;;  %v3898_v3 = vadd.f32 %v4865_v42, %v6355_v25  ;;  %v3889_v15 = vpop.f32.mrb[51].mxu1 }
 0x34b   : > { %v4005_v57 = vadd.f32 %v4639_v46, %v3887_v2  ;;  %v3890_v33 = vadd.f32 %v6355_v25, %v3889_v15 }
 0x34c   : > { %v4462_v31 = vpack.c.bf16 %v4007_v30, %v4007_v30  ;;  %v4008_v34 = vadd.f32 %v4644_v37, %v3898_v3 }
 0x34d   : > { %v4460_v43 = vpack.c.bf16 %v4005_v57, %v4005_v57  ;;  %v4006_v29 = vadd.f32 %v4640_v35, %v3890_v33 }
 0x34e   : > { %4168 = vst.msk [vmem:[%s6380_s27 + $0x68] sm:$0xf] %vm4141_vm13, %v4462_v31  ;;  %v4463_v7 = vpack.c.bf16 %v4008_v34, %v4008_v34 }
 0x34f   : > { %4166 = vst.msk [vmem:[%s6380_s27 + $0x60] sm:$0xf] %vm4141_vm13, %v4460_v43  ;;  %v4461_v48 = vpack.c.bf16 %v4006_v29, %v4006_v29 }
 0x350   : > { %4169 = vst.msk [vmem:[%s6380_s27 + $0x6c] sm:$0xf] %vm4141_vm13, %v4463_v7 }
 0x351   : > { %4167 = vst.msk [vmem:[%s6380_s27 + $0x64] sm:$0xf] %vm4141_vm13, %v4461_v48 }
 0x372   : > { %v4868_v59 = vpop.f32.mrb[52].mxu1 }
 0x373   : > { %v3911_v62 = vadd.f32 %v4868_v59, %v6355_v25  ;;  %v3902_v51 = vpop.f32.mrb[53].mxu1 }
 0x374   : > { %v3903_v63 = vadd.f32 %v6355_v25, %v3902_v51  ;;  %v4869_v55 = vpop.f32.mrb[54].mxu1 }
 0x375   : > { %v4011_v6 = vadd.f32 %v4651_v49, %v3911_v62  ;;  %v3914_v17 = vadd.f32 %v4869_v55, %v6355_v25  ;;  %v3905_v24 = vpop.f32.mrb[55].mxu1 }
 0x376   : > { %v4009_v20 = vadd.f32 %v4647_v36, %v3903_v63  ;;  %v3906_v23 = vadd.f32 %v6355_v25, %v3905_v24 }
 0x377   : > { %v4466_v38 = vpack.c.bf16 %v4011_v6, %v4011_v6  ;;  %v4012_v9 = vadd.f32 %v4652_v18, %v3914_v17 }
 0x378   : > { %v4464_v22 = vpack.c.bf16 %v4009_v20, %v4009_v20  ;;  %v4010_v5 = vadd.f32 %v4648_v58, %v3906_v23 }
 0x379   : > { %4172 = vst.msk [vmem:[%s6380_s27 + $0x78] sm:$0xf] %vm4141_vm13, %v4466_v38  ;;  %v4467_v12 = vpack.c.bf16 %v4012_v9, %v4012_v9 }
 0x37a   : > { %4170 = vst.msk [vmem:[%s6380_s27 + $0x70] sm:$0xf] %vm4141_vm13, %v4464_v22  ;;  %v4465_v11 = vpack.c.bf16 %v4010_v5, %v4010_v5 }
 0x37b   : > { %4173 = vst.msk [vmem:[%s6380_s27 + $0x7c] sm:$0xf] %vm4141_vm13, %v4467_v12 }
 0x37c   : > { %4171 = vst.msk [vmem:[%s6380_s27 + $0x74] sm:$0xf] %vm4141_vm13, %v4465_v11 }
 0x37d PF: > { %s19_s30 = sadd.s32 1, %s4925_s30  }
 0x37e   : > { %p16_p4 = scmp.ge.s32.totalorder %s19_s30, 4  }
 0x380   :  { %18 = sbr.rel (!%p16_p4) target bundleno = 1 (0x1), region = 106 }

</bundles_post_ra>
